<compile_context>
chip_gen: v6e
topology: v6e:2x2x1
jax: 0.10.0
libtpu: 0.0.40
codegen_flags: <defaults>
</compile_context>

<pallas_src>
import math
import numpy as np
import jax
import jax.numpy as jnp
from jax.experimental import pallas as pl
from jax.experimental.pallas import tpu as pltpu

V = 15          # number of graph nodes (edge_index max node id = 14)
C_IN = 3        # in_channels
C_OUT = 3       # ChebConv out_channels
HIDDEN = 128    # LSTM hidden size
NUM_CLASS = 60  # default num_class

EDGE_INDEX = np.array(
    [[0, 2, 4, 1, 3, 5, 6, 8, 10, 7, 9, 11, 13, 12, 2, 4, 14, 3, 5, 14, 8, 10, 13, 9, 11, 13, 12, 13],
     [2, 4, 14, 3, 5, 14, 8, 10, 13, 9, 11, 13, 14, 13, 0, 2, 4, 1, 3, 5, 6, 8, 10, 7, 9, 11, 13, 14]],
    dtype=np.int64)


def build_scaled_laplacian():
    """Dense operator used by ChebConv(K=2, sym normalization, lambda_max=2):
    Tx_1 = Lhat @ x, Lhat = -D^{-1/2} A D^{-1/2} with zero diagonal.
    Replicates torch_geometric edge-wise scatter semantics (duplicate edges accumulate,
    degree counted over source indices)."""
    row, col = EDGE_INDEX[0], EDGE_INDEX[1]
    deg = np.zeros(V, np.float64)
    np.add.at(deg, row, 1.0)
    dis = np.where(deg > 0, deg ** -0.5, 0.0)
    w = -dis[row] * dis[col]
    lhat = np.zeros((V, V), np.float64)
    np.add.at(lhat, (col, row), w)  # out[i] = sum over edges (j -> i) of w * x[j]
    return lhat.astype(np.float32)


def fuse_cheb_weights(w0, w1, b, lhat):
    """Fold ChebConv(K=2) into one dense weight:
       out[g, v, o] = sum_{u,i} x[g, u, i] * (I[v,u]*w0[i,o] + Lhat[v,u]*w1[i,o]) + b[o]
    Row index of W_cheb is (u, i) [u-major], column index is (v, o) [v-major] — exactly
    the flatten order of x1.view(N*M*T, V, C) / x1.view(N*M, T, V*C)."""
    eye = jnp.eye(V, dtype=jnp.float32)
    wcheb = (jnp.einsum('vu,io->uivo', eye, w0)
             + jnp.einsum('vu,io->uivo', lhat, w1)).reshape(V * C_IN, V * C_OUT)
    bfeat = jnp.tile(b.reshape(1, C_OUT), (1, V))            # (1, V*C_OUT): bias per node
    return wcheb, bfeat


# ---------- Fused kernel: (ChebConv ∘ layer-0 input proj) + 2-layer LSTM + FC + softmax ----------
def fused_kernel(x_ref, win_ref, bin_ref,
                 whh0_ref, w1cat_ref, b1_ref,
                 wfc_ref, bfc_ref, out_ref):
    H = HIDDEN
    Bp = out_ref.shape[0]          # padded batch (multiple of 8)
    TBp = x_ref.shape[0]
    T = TBp // Bp                  # static Python int

    # --- Prologue: ChebConv folded into the hoisted layer-0 input projection (one matmul) ---
    ih0 = (jnp.dot(x_ref[...].astype(jnp.bfloat16), win_ref[...],
                   preferred_element_type=jnp.float32)
           + bin_ref[...])                                               # (T*Bp, 4H) f32

    # --- Hoist loop-invariant loads / broadcasts out of the unrolled recurrence ---
    whh0 = whh0_ref[...]                                                 # (H, 4H) bf16
    w1cat = w1cat_ref[...]                                               # (2H, 4H) bf16
    b1 = jnp.broadcast_to(b1_ref[...], (Bp, 4 * H))                      # (Bp, 4H) f32

    def gate_math(gates, c):
        # PyTorch gate order i, f, g, o; slices sit on exact 128-lane boundaries (H=128).
        i = jax.nn.sigmoid(gates[:, 0 * H:1 * H])
        f = jax.nn.sigmoid(gates[:, 1 * H:2 * H])
        g = jnp.tanh(gates[:, 2 * H:3 * H])
        o = jax.nn.sigmoid(gates[:, 3 * H:4 * H])
        c_new = f * c + i * g
        return o * jnp.tanh(c_new), c_new

    zeros = jnp.zeros((Bp, H), jnp.float32)
    h0, c0, h1, c1 = zeros, zeros, zeros, zeros
    # T is a static Python int -> fully unrolled; only 2 small MXU matmuls + gate VPU/EUP
    # math per step remain on the serial critical path.
    for t in range(T):
        g0 = (ih0[t * Bp:(t + 1) * Bp, :]
              + jnp.dot(h0.astype(jnp.bfloat16), whh0,
                        preferred_element_type=jnp.float32))
        h0, c0 = gate_math(g0, c0)
        hcat = jnp.concatenate([h0.astype(jnp.bfloat16), h1.astype(jnp.bfloat16)], axis=1)
        g1 = jnp.dot(hcat, w1cat, preferred_element_type=jnp.float32) + b1
        h1, c1 = gate_math(g1, c1)

    # --- FC + softmax epilogue on the last hidden state of layer 2 ---
    logits = (jnp.dot(h1.astype(jnp.bfloat16), wfc_ref[...],
                      preferred_element_type=jnp.float32)
              + bfc_ref[...])
    m = jnp.max(logits, axis=1, keepdims=True)
    e = jnp.exp(logits - m)
    denom = jnp.sum(e, axis=1, keepdims=True)
    out_ref[...] = (e * pl.reciprocal(denom)).astype(out_ref.dtype)   # exact 1/x (tiny denom)


def fused_forward(x2d, Bp, p):
    vmem = pl.BlockSpec(memory_space=pltpu.MemorySpace.VMEM)
    return pl.pallas_call(
        fused_kernel,
        out_shape=jax.ShapeDtypeStruct((Bp, NUM_CLASS), jnp.float32),
        in_specs=[vmem] * 8,
        out_specs=vmem,
    )(x2d, p["w_in"], p["b_in"],
      p["whh0"], p["w1cat"], p["b1"],
      p["wfc"], p["bfc"])


# --------------------------------- Parameters ----------------------------------------
def init_params(key):
    ks = jax.random.split(key, 12)
    p = {}
    glorot = math.sqrt(6.0 / (C_IN + C_OUT))
    p["cheb_w0"] = jax.random.uniform(ks[0], (C_IN, C_OUT), jnp.float32, -glorot, glorot)
    p["cheb_w1"] = jax.random.uniform(ks[1], (C_IN, C_OUT), jnp.float32, -glorot, glorot)
    p["cheb_b"] = jnp.zeros((1, C_OUT), jnp.float32)

    k = 1.0 / math.sqrt(HIDDEN)  # PyTorch LSTM init range

    def lstm_layer(kw1, kw2, kb1, kb2, in_dim):
        wih = jax.random.uniform(kw1, (4 * HIDDEN, in_dim), jnp.float32, -k, k)
        whh = jax.random.uniform(kw2, (4 * HIDDEN, HIDDEN), jnp.float32, -k, k)
        bih = jax.random.uniform(kb1, (4 * HIDDEN,), jnp.float32, -k, k)
        bhh = jax.random.uniform(kb2, (4 * HIDDEN,), jnp.float32, -k, k)
        return wih.T, whh.T, (bih + bhh)[None, :]

    p["wih0"], p["whh0"], p["b0"] = lstm_layer(ks[2], ks[3], ks[4], ks[5], V * C_OUT)
    p["wih1"], p["whh1"], p["b1"] = lstm_layer(ks[6], ks[7], ks[8], ks[9], HIDDEN)

    wfc = jax.random.normal(ks[10], (NUM_CLASS, HIDDEN), jnp.float32) * math.sqrt(2.0 / NUM_CLASS)
    p["wfc"] = wfc.T
    p["bfc"] = jax.random.uniform(ks[11], (1, NUM_CLASS), jnp.float32, -k, k)
    return p


def prepare_params(params, lhat):
    """One-time algebraic fusion (outside the hot path):
       * ChebConv folded into the LSTM layer-0 input projection (W_in, b_in).
       * Layer-1 input/recurrent weights concatenated into one RHS (W1cat).
       * All matmul weights cast to bf16 (MXU-native); biases stay f32."""
    wcheb, bfeat = fuse_cheb_weights(params["cheb_w0"], params["cheb_w1"],
                                     params["cheb_b"], lhat)
    w_in = jnp.dot(wcheb, params["wih0"])                    # (45, 4H) f32
    b_in = jnp.dot(bfeat, params["wih0"]) + params["b0"]     # (1, 4H) f32
    w1cat = jnp.concatenate([params["wih1"], params["whh1"]], axis=0)  # (2H, 4H)
    bf16 = jnp.bfloat16
    return {"w_in": w_in.astype(bf16), "b_in": b_in,
            "whh0": params["whh0"].astype(bf16),
            "w1cat": w1cat.astype(bf16), "b1": params["b1"],
            "wfc": params["wfc"].astype(bf16), "bfc": params["bfc"]}


# ----------------------------------- Forward -----------------------------------------
def forward(x1, x2, fused_params):
    # NOTE: the PyTorch forward ignores x2 and data_bn; we reproduce that.
    # TODO(synk): the reference `return x` is a NameError bug; we return the computed
    #             softmax output (the intended `x1`).
    N, C, T, Vv, M = x1.shape
    B = N * M
    Bp = max(8, ((B + 7) // 8) * 8)   # pad batch to the f32 sublane granule
    # (N,C,T,V,M) -> (T, N, M, V, C) -> (T, B, V*C): time-major rows (b = n*M + m minor),
    # features flattened v-major / c-minor to match x1.view(N*M, T, V*C).
    x3d = jnp.transpose(x1, (2, 0, 4, 3, 1)).reshape(T, B, Vv * C)
    if Bp != B:
        x3d = jnp.pad(x3d, ((0, 0), (0, Bp - B), (0, 0)))
    x2d = x3d.reshape(T * Bp, Vv * C)
    out = fused_forward(x2d, Bp, fused_params)               # (Bp, num_class)
    return out[:B]                                           # drop padded rows


if __name__ == "__main__":
    key = jax.random.PRNGKey(0)
    kx, kp = jax.random.split(key)
    N, C, T, M = 2, 3, 8, 2
    x1 = jax.random.normal(kx, (N, C, T, V, M), jnp.float32)
    x2 = jnp.zeros((1,), jnp.float32)  # unused by the reference forward; kept for signature parity

    params = init_params(kp)
    lhat = jnp.asarray(build_scaled_laplacian())
    fused = jax.block_until_ready(prepare_params(params, lhat))

    fwd = jax.jit(forward)
    out = jax.block_until_ready(fwd(x1, x2, fused))

    assert out.shape == (N * M, NUM_CLASS), out.shape
    assert bool(jnp.all(jnp.isfinite(out)))
    # softmax rows sum to ~1 (exact reciprocal in the epilogue; bf16 weights only shift logits)
    assert bool(jnp.allclose(jnp.sum(out, axis=1), 1.0, atol=1e-3))
    print("KERNEL_OK")
</pallas_src>

<mosaic_0001>
module attributes {stable_mosaic.version = 11 : i64} {
  func.func @fused_kernel(%arg0: memref<64x45xf32, #tpu.memory_space<vmem>>, %arg1: memref<45x512xbf16, #tpu.memory_space<vmem>>, %arg2: memref<1x512xf32, #tpu.memory_space<vmem>>, %arg3: memref<128x512xbf16, #tpu.memory_space<vmem>>, %arg4: memref<256x512xbf16, #tpu.memory_space<vmem>>, %arg5: memref<1x512xf32, #tpu.memory_space<vmem>>, %arg6: memref<128x60xbf16, #tpu.memory_space<vmem>>, %arg7: memref<1x60xf32, #tpu.memory_space<vmem>>, %arg8: memref<8x60xf32, #tpu.memory_space<vmem>>) attributes {dimension_semantics = [], scalar_prefetch = 0 : i64, scratch_operands = 0 : i64, tpu.core_type = #tpu.core_type<tc>} {
    %c0 = arith.constant 0 : index
    %c0_0 = arith.constant 0 : index
    %0 = vector.load %arg0[%c0, %c0_0] : memref<64x45xf32, #tpu.memory_space<vmem>>, vector<64x45xf32>
    %1 = arith.truncf %0 : vector<64x45xf32> to vector<64x45xbf16>
    %c0_1 = arith.constant 0 : index
    %c0_2 = arith.constant 0 : index
    %2 = vector.load %arg1[%c0_1, %c0_2] : memref<45x512xbf16, #tpu.memory_space<vmem>>, vector<45x512xbf16>
    %cst = arith.constant dense<0.000000e+00> : vector<64x512xf32>
    %3 = tpu.matmul %1, %2, %cst {dimension_numbers = #tpu.dot_dimension_numbers<[1], [0], [0], [1], [0, 0, 1, 1], [], []>} : vector<64x45xbf16>, vector<45x512xbf16>, vector<64x512xf32> -> vector<64x512xf32>
    %c0_3 = arith.constant 0 : index
    %c0_4 = arith.constant 0 : index
    %4 = vector.load %arg2[%c0_3, %c0_4] : memref<1x512xf32, #tpu.memory_space<vmem>>, vector<1x512xf32>
    %5 = vector.broadcast %4 : vector<1x512xf32> to vector<64x512xf32>
    %6 = arith.addf %3, %5 : vector<64x512xf32>
    %c0_5 = arith.constant 0 : index
    %c0_6 = arith.constant 0 : index
    %7 = vector.load %arg3[%c0_5, %c0_6] : memref<128x512xbf16, #tpu.memory_space<vmem>>, vector<128x512xbf16>
    %c0_7 = arith.constant 0 : index
    %c0_8 = arith.constant 0 : index
    %8 = vector.load %arg4[%c0_7, %c0_8] : memref<256x512xbf16, #tpu.memory_space<vmem>>, vector<256x512xbf16>
    %c0_9 = arith.constant 0 : index
    %c0_10 = arith.constant 0 : index
    %9 = vector.load %arg5[%c0_9, %c0_10] : memref<1x512xf32, #tpu.memory_space<vmem>>, vector<1x512xf32>
    %10 = vector.shape_cast %9 : vector<1x512xf32> to vector<1x512xf32>
    %11 = vector.broadcast %10 : vector<1x512xf32> to vector<8x512xf32>
    %cst_11 = arith.constant 0.000000e+00 : f32
    %12 = vector.broadcast %cst_11 : f32 to vector<8x128xf32>
    %13 = vector.extract_strided_slice %6 {offsets = [0, 0], sizes = [8, 512], strides = [1, 1]} : vector<64x512xf32> to vector<8x512xf32>
    %14 = arith.truncf %12 : vector<8x128xf32> to vector<8x128xbf16>
    %cst_12 = arith.constant dense<0.000000e+00> : vector<8x512xf32>
    %15 = tpu.matmul %14, %7, %cst_12 {dimension_numbers = #tpu.dot_dimension_numbers<[1], [0], [0], [1], [0, 0, 1, 1], [], []>} : vector<8x128xbf16>, vector<128x512xbf16>, vector<8x512xf32> -> vector<8x512xf32>
    %16 = arith.addf %13, %15 : vector<8x512xf32>
    %17 = vector.extract_strided_slice %16 {offsets = [0, 0], sizes = [8, 128], strides = [1, 1]} : vector<8x512xf32> to vector<8x128xf32>
    %18 = arith.negf %17 : vector<8x128xf32>
    %19 = math.exp %18 : vector<8x128xf32>
    %cst_13 = arith.constant 1.000000e+00 : f32
    %20 = vector.broadcast %cst_13 : f32 to vector<8x128xf32>
    %21 = arith.addf %20, %19 : vector<8x128xf32>
    %22 = arith.divf %20, %21 : vector<8x128xf32>
    %23 = vector.extract_strided_slice %16 {offsets = [0, 128], sizes = [8, 128], strides = [1, 1]} : vector<8x512xf32> to vector<8x128xf32>
    %24 = arith.negf %23 : vector<8x128xf32>
    %25 = math.exp %24 : vector<8x128xf32>
    %cst_14 = arith.constant 1.000000e+00 : f32
    %26 = vector.broadcast %cst_14 : f32 to vector<8x128xf32>
    %27 = arith.addf %26, %25 : vector<8x128xf32>
    %28 = arith.divf %26, %27 : vector<8x128xf32>
    %29 = vector.extract_strided_slice %16 {offsets = [0, 256], sizes = [8, 128], strides = [1, 1]} : vector<8x512xf32> to vector<8x128xf32>
    %30 = math.tanh %29 : vector<8x128xf32>
    %31 = vector.extract_strided_slice %16 {offsets = [0, 384], sizes = [8, 128], strides = [1, 1]} : vector<8x512xf32> to vector<8x128xf32>
    %32 = arith.negf %31 : vector<8x128xf32>
    %33 = math.exp %32 : vector<8x128xf32>
    %cst_15 = arith.constant 1.000000e+00 : f32
    %34 = vector.broadcast %cst_15 : f32 to vector<8x128xf32>
    %35 = arith.addf %34, %33 : vector<8x128xf32>
    %36 = arith.divf %34, %35 : vector<8x128xf32>
    %37 = arith.mulf %28, %12 : vector<8x128xf32>
    %38 = arith.mulf %22, %30 : vector<8x128xf32>
    %39 = arith.addf %37, %38 : vector<8x128xf32>
    %40 = math.tanh %39 : vector<8x128xf32>
    %41 = arith.mulf %36, %40 : vector<8x128xf32>
    %42 = arith.truncf %41 : vector<8x128xf32> to vector<8x128xbf16>
    %43 = arith.truncf %12 : vector<8x128xf32> to vector<8x128xbf16>
    %44 = tpu.concatenate %42, %43 in 1 : vector<8x128xbf16>, vector<8x128xbf16> -> vector<8x256xbf16>
    %cst_16 = arith.constant dense<0.000000e+00> : vector<8x512xf32>
    %45 = tpu.matmul %44, %8, %cst_16 {dimension_numbers = #tpu.dot_dimension_numbers<[1], [0], [0], [1], [0, 0, 1, 1], [], []>} : vector<8x256xbf16>, vector<256x512xbf16>, vector<8x512xf32> -> vector<8x512xf32>
    %46 = arith.addf %45, %11 : vector<8x512xf32>
    %47 = vector.extract_strided_slice %46 {offsets = [0, 0], sizes = [8, 128], strides = [1, 1]} : vector<8x512xf32> to vector<8x128xf32>
    %48 = arith.negf %47 : vector<8x128xf32>
    %49 = math.exp %48 : vector<8x128xf32>
    %cst_17 = arith.constant 1.000000e+00 : f32
    %50 = vector.broadcast %cst_17 : f32 to vector<8x128xf32>
    %51 = arith.addf %50, %49 : vector<8x128xf32>
    %52 = arith.divf %50, %51 : vector<8x128xf32>
    %53 = vector.extract_strided_slice %46 {offsets = [0, 128], sizes = [8, 128], strides = [1, 1]} : vector<8x512xf32> to vector<8x128xf32>
    %54 = arith.negf %53 : vector<8x128xf32>
    %55 = math.exp %54 : vector<8x128xf32>
    %cst_18 = arith.constant 1.000000e+00 : f32
    %56 = vector.broadcast %cst_18 : f32 to vector<8x128xf32>
    %57 = arith.addf %56, %55 : vector<8x128xf32>
    %58 = arith.divf %56, %57 : vector<8x128xf32>
    %59 = vector.extract_strided_slice %46 {offsets = [0, 256], sizes = [8, 128], strides = [1, 1]} : vector<8x512xf32> to vector<8x128xf32>
    %60 = math.tanh %59 : vector<8x128xf32>
    %61 = vector.extract_strided_slice %46 {offsets = [0, 384], sizes = [8, 128], strides = [1, 1]} : vector<8x512xf32> to vector<8x128xf32>
    %62 = arith.negf %61 : vector<8x128xf32>
    %63 = math.exp %62 : vector<8x128xf32>
    %cst_19 = arith.constant 1.000000e+00 : f32
    %64 = vector.broadcast %cst_19 : f32 to vector<8x128xf32>
    %65 = arith.addf %64, %63 : vector<8x128xf32>
    %66 = arith.divf %64, %65 : vector<8x128xf32>
    %67 = arith.mulf %58, %12 : vector<8x128xf32>
    %68 = arith.mulf %52, %60 : vector<8x128xf32>
    %69 = arith.addf %67, %68 : vector<8x128xf32>
    %70 = math.tanh %69 : vector<8x128xf32>
    %71 = arith.mulf %66, %70 : vector<8x128xf32>
    %72 = vector.extract_strided_slice %6 {offsets = [8, 0], sizes = [8, 512], strides = [1, 1]} : vector<64x512xf32> to vector<8x512xf32>
    %73 = arith.truncf %41 : vector<8x128xf32> to vector<8x128xbf16>
    %cst_20 = arith.constant dense<0.000000e+00> : vector<8x512xf32>
    %74 = tpu.matmul %73, %7, %cst_20 {dimension_numbers = #tpu.dot_dimension_numbers<[1], [0], [0], [1], [0, 0, 1, 1], [], []>} : vector<8x128xbf16>, vector<128x512xbf16>, vector<8x512xf32> -> vector<8x512xf32>
    %75 = arith.addf %72, %74 : vector<8x512xf32>
    %76 = vector.extract_strided_slice %75 {offsets = [0, 0], sizes = [8, 128], strides = [1, 1]} : vector<8x512xf32> to vector<8x128xf32>
    %77 = arith.negf %76 : vector<8x128xf32>
    %78 = math.exp %77 : vector<8x128xf32>
    %cst_21 = arith.constant 1.000000e+00 : f32
    %79 = vector.broadcast %cst_21 : f32 to vector<8x128xf32>
    %80 = arith.addf %79, %78 : vector<8x128xf32>
    %81 = arith.divf %79, %80 : vector<8x128xf32>
    %82 = vector.extract_strided_slice %75 {offsets = [0, 128], sizes = [8, 128], strides = [1, 1]} : vector<8x512xf32> to vector<8x128xf32>
    %83 = arith.negf %82 : vector<8x128xf32>
    %84 = math.exp %83 : vector<8x128xf32>
    %cst_22 = arith.constant 1.000000e+00 : f32
    %85 = vector.broadcast %cst_22 : f32 to vector<8x128xf32>
    %86 = arith.addf %85, %84 : vector<8x128xf32>
    %87 = arith.divf %85, %86 : vector<8x128xf32>
    %88 = vector.extract_strided_slice %75 {offsets = [0, 256], sizes = [8, 128], strides = [1, 1]} : vector<8x512xf32> to vector<8x128xf32>
    %89 = math.tanh %88 : vector<8x128xf32>
    %90 = vector.extract_strided_slice %75 {offsets = [0, 384], sizes = [8, 128], strides = [1, 1]} : vector<8x512xf32> to vector<8x128xf32>
    %91 = arith.negf %90 : vector<8x128xf32>
    %92 = math.exp %91 : vector<8x128xf32>
    %cst_23 = arith.constant 1.000000e+00 : f32
    %93 = vector.broadcast %cst_23 : f32 to vector<8x128xf32>
    %94 = arith.addf %93, %92 : vector<8x128xf32>
    %95 = arith.divf %93, %94 : vector<8x128xf32>
    %96 = arith.mulf %87, %39 : vector<8x128xf32>
    %97 = arith.mulf %81, %89 : vector<8x128xf32>
    %98 = arith.addf %96, %97 : vector<8x128xf32>
    %99 = math.tanh %98 : vector<8x128xf32>
    %100 = arith.mulf %95, %99 : vector<8x128xf32>
    %101 = arith.truncf %100 : vector<8x128xf32> to vector<8x128xbf16>
    %102 = arith.truncf %71 : vector<8x128xf32> to vector<8x128xbf16>
    %103 = tpu.concatenate %101, %102 in 1 : vector<8x128xbf16>, vector<8x128xbf16> -> vector<8x256xbf16>
    %cst_24 = arith.constant dense<0.000000e+00> : vector<8x512xf32>
    %104 = tpu.matmul %103, %8, %cst_24 {dimension_numbers = #tpu.dot_dimension_numbers<[1], [0], [0], [1], [0, 0, 1, 1], [], []>} : vector<8x256xbf16>, vector<256x512xbf16>, vector<8x512xf32> -> vector<8x512xf32>
    %105 = arith.addf %104, %11 : vector<8x512xf32>
    %106 = vector.extract_strided_slice %105 {offsets = [0, 0], sizes = [8, 128], strides = [1, 1]} : vector<8x512xf32> to vector<8x128xf32>
    %107 = arith.negf %106 : vector<8x128xf32>
    %108 = math.exp %107 : vector<8x128xf32>
    %cst_25 = arith.constant 1.000000e+00 : f32
    %109 = vector.broadcast %cst_25 : f32 to vector<8x128xf32>
    %110 = arith.addf %109, %108 : vector<8x128xf32>
    %111 = arith.divf %109, %110 : vector<8x128xf32>
    %112 = vector.extract_strided_slice %105 {offsets = [0, 128], sizes = [8, 128], strides = [1, 1]} : vector<8x512xf32> to vector<8x128xf32>
    %113 = arith.negf %112 : vector<8x128xf32>
    %114 = math.exp %113 : vector<8x128xf32>
    %cst_26 = arith.constant 1.000000e+00 : f32
    %115 = vector.broadcast %cst_26 : f32 to vector<8x128xf32>
    %116 = arith.addf %115, %114 : vector<8x128xf32>
    %117 = arith.divf %115, %116 : vector<8x128xf32>
    %118 = vector.extract_strided_slice %105 {offsets = [0, 256], sizes = [8, 128], strides = [1, 1]} : vector<8x512xf32> to vector<8x128xf32>
    %119 = math.tanh %118 : vector<8x128xf32>
    %120 = vector.extract_strided_slice %105 {offsets = [0, 384], sizes = [8, 128], strides = [1, 1]} : vector<8x512xf32> to vector<8x128xf32>
    %121 = arith.negf %120 : vector<8x128xf32>
    %122 = math.exp %121 : vector<8x128xf32>
    %cst_27 = arith.constant 1.000000e+00 : f32
    %123 = vector.broadcast %cst_27 : f32 to vector<8x128xf32>
    %124 = arith.addf %123, %122 : vector<8x128xf32>
    %125 = arith.divf %123, %124 : vector<8x128xf32>
    %126 = arith.mulf %117, %69 : vector<8x128xf32>
    %127 = arith.mulf %111, %119 : vector<8x128xf32>
    %128 = arith.addf %126, %127 : vector<8x128xf32>
    %129 = math.tanh %128 : vector<8x128xf32>
    %130 = arith.mulf %125, %129 : vector<8x128xf32>
    %131 = vector.extract_strided_slice %6 {offsets = [16, 0], sizes = [8, 512], strides = [1, 1]} : vector<64x512xf32> to vector<8x512xf32>
    %132 = arith.truncf %100 : vector<8x128xf32> to vector<8x128xbf16>
    %cst_28 = arith.constant dense<0.000000e+00> : vector<8x512xf32>
    %133 = tpu.matmul %132, %7, %cst_28 {dimension_numbers = #tpu.dot_dimension_numbers<[1], [0], [0], [1], [0, 0, 1, 1], [], []>} : vector<8x128xbf16>, vector<128x512xbf16>, vector<8x512xf32> -> vector<8x512xf32>
    %134 = arith.addf %131, %133 : vector<8x512xf32>
    %135 = vector.extract_strided_slice %134 {offsets = [0, 0], sizes = [8, 128], strides = [1, 1]} : vector<8x512xf32> to vector<8x128xf32>
    %136 = arith.negf %135 : vector<8x128xf32>
    %137 = math.exp %136 : vector<8x128xf32>
    %cst_29 = arith.constant 1.000000e+00 : f32
    %138 = vector.broadcast %cst_29 : f32 to vector<8x128xf32>
    %139 = arith.addf %138, %137 : vector<8x128xf32>
    %140 = arith.divf %138, %139 : vector<8x128xf32>
    %141 = vector.extract_strided_slice %134 {offsets = [0, 128], sizes = [8, 128], strides = [1, 1]} : vector<8x512xf32> to vector<8x128xf32>
    %142 = arith.negf %141 : vector<8x128xf32>
    %143 = math.exp %142 : vector<8x128xf32>
    %cst_30 = arith.constant 1.000000e+00 : f32
    %144 = vector.broadcast %cst_30 : f32 to vector<8x128xf32>
    %145 = arith.addf %144, %143 : vector<8x128xf32>
    %146 = arith.divf %144, %145 : vector<8x128xf32>
    %147 = vector.extract_strided_slice %134 {offsets = [0, 256], sizes = [8, 128], strides = [1, 1]} : vector<8x512xf32> to vector<8x128xf32>
    %148 = math.tanh %147 : vector<8x128xf32>
    %149 = vector.extract_strided_slice %134 {offsets = [0, 384], sizes = [8, 128], strides = [1, 1]} : vector<8x512xf32> to vector<8x128xf32>
    %150 = arith.negf %149 : vector<8x128xf32>
    %151 = math.exp %150 : vector<8x128xf32>
    %cst_31 = arith.constant 1.000000e+00 : f32
    %152 = vector.broadcast %cst_31 : f32 to vector<8x128xf32>
    %153 = arith.addf %152, %151 : vector<8x128xf32>
    %154 = arith.divf %152, %153 : vector<8x128xf32>
    %155 = arith.mulf %146, %98 : vector<8x128xf32>
    %156 = arith.mulf %140, %148 : vector<8x128xf32>
    %157 = arith.addf %155, %156 : vector<8x128xf32>
    %158 = math.tanh %157 : vector<8x128xf32>
    %159 = arith.mulf %154, %158 : vector<8x128xf32>
    %160 = arith.truncf %159 : vector<8x128xf32> to vector<8x128xbf16>
    %161 = arith.truncf %130 : vector<8x128xf32> to vector<8x128xbf16>
    %162 = tpu.concatenate %160, %161 in 1 : vector<8x128xbf16>, vector<8x128xbf16> -> vector<8x256xbf16>
    %cst_32 = arith.constant dense<0.000000e+00> : vector<8x512xf32>
    %163 = tpu.matmul %162, %8, %cst_32 {dimension_numbers = #tpu.dot_dimension_numbers<[1], [0], [0], [1], [0, 0, 1, 1], [], []>} : vector<8x256xbf16>, vector<256x512xbf16>, vector<8x512xf32> -> vector<8x512xf32>
    %164 = arith.addf %163, %11 : vector<8x512xf32>
    %165 = vector.extract_strided_slice %164 {offsets = [0, 0], sizes = [8, 128], strides = [1, 1]} : vector<8x512xf32> to vector<8x128xf32>
    %166 = arith.negf %165 : vector<8x128xf32>
    %167 = math.exp %166 : vector<8x128xf32>
    %cst_33 = arith.constant 1.000000e+00 : f32
    %168 = vector.broadcast %cst_33 : f32 to vector<8x128xf32>
    %169 = arith.addf %168, %167 : vector<8x128xf32>
    %170 = arith.divf %168, %169 : vector<8x128xf32>
    %171 = vector.extract_strided_slice %164 {offsets = [0, 128], sizes = [8, 128], strides = [1, 1]} : vector<8x512xf32> to vector<8x128xf32>
    %172 = arith.negf %171 : vector<8x128xf32>
    %173 = math.exp %172 : vector<8x128xf32>
    %cst_34 = arith.constant 1.000000e+00 : f32
    %174 = vector.broadcast %cst_34 : f32 to vector<8x128xf32>
    %175 = arith.addf %174, %173 : vector<8x128xf32>
    %176 = arith.divf %174, %175 : vector<8x128xf32>
    %177 = vector.extract_strided_slice %164 {offsets = [0, 256], sizes = [8, 128], strides = [1, 1]} : vector<8x512xf32> to vector<8x128xf32>
    %178 = math.tanh %177 : vector<8x128xf32>
    %179 = vector.extract_strided_slice %164 {offsets = [0, 384], sizes = [8, 128], strides = [1, 1]} : vector<8x512xf32> to vector<8x128xf32>
    %180 = arith.negf %179 : vector<8x128xf32>
    %181 = math.exp %180 : vector<8x128xf32>
    %cst_35 = arith.constant 1.000000e+00 : f32
    %182 = vector.broadcast %cst_35 : f32 to vector<8x128xf32>
    %183 = arith.addf %182, %181 : vector<8x128xf32>
    %184 = arith.divf %182, %183 : vector<8x128xf32>
    %185 = arith.mulf %176, %128 : vector<8x128xf32>
    %186 = arith.mulf %170, %178 : vector<8x128xf32>
    %187 = arith.addf %185, %186 : vector<8x128xf32>
    %188 = math.tanh %187 : vector<8x128xf32>
    %189 = arith.mulf %184, %188 : vector<8x128xf32>
    %190 = vector.extract_strided_slice %6 {offsets = [24, 0], sizes = [8, 512], strides = [1, 1]} : vector<64x512xf32> to vector<8x512xf32>
    %191 = arith.truncf %159 : vector<8x128xf32> to vector<8x128xbf16>
    %cst_36 = arith.constant dense<0.000000e+00> : vector<8x512xf32>
    %192 = tpu.matmul %191, %7, %cst_36 {dimension_numbers = #tpu.dot_dimension_numbers<[1], [0], [0], [1], [0, 0, 1, 1], [], []>} : vector<8x128xbf16>, vector<128x512xbf16>, vector<8x512xf32> -> vector<8x512xf32>
    %193 = arith.addf %190, %192 : vector<8x512xf32>
    %194 = vector.extract_strided_slice %193 {offsets = [0, 0], sizes = [8, 128], strides = [1, 1]} : vector<8x512xf32> to vector<8x128xf32>
    %195 = arith.negf %194 : vector<8x128xf32>
    %196 = math.exp %195 : vector<8x128xf32>
    %cst_37 = arith.constant 1.000000e+00 : f32
    %197 = vector.broadcast %cst_37 : f32 to vector<8x128xf32>
    %198 = arith.addf %197, %196 : vector<8x128xf32>
    %199 = arith.divf %197, %198 : vector<8x128xf32>
    %200 = vector.extract_strided_slice %193 {offsets = [0, 128], sizes = [8, 128], strides = [1, 1]} : vector<8x512xf32> to vector<8x128xf32>
    %201 = arith.negf %200 : vector<8x128xf32>
    %202 = math.exp %201 : vector<8x128xf32>
    %cst_38 = arith.constant 1.000000e+00 : f32
    %203 = vector.broadcast %cst_38 : f32 to vector<8x128xf32>
    %204 = arith.addf %203, %202 : vector<8x128xf32>
    %205 = arith.divf %203, %204 : vector<8x128xf32>
    %206 = vector.extract_strided_slice %193 {offsets = [0, 256], sizes = [8, 128], strides = [1, 1]} : vector<8x512xf32> to vector<8x128xf32>
    %207 = math.tanh %206 : vector<8x128xf32>
    %208 = vector.extract_strided_slice %193 {offsets = [0, 384], sizes = [8, 128], strides = [1, 1]} : vector<8x512xf32> to vector<8x128xf32>
    %209 = arith.negf %208 : vector<8x128xf32>
    %210 = math.exp %209 : vector<8x128xf32>
    %cst_39 = arith.constant 1.000000e+00 : f32
    %211 = vector.broadcast %cst_39 : f32 to vector<8x128xf32>
    %212 = arith.addf %211, %210 : vector<8x128xf32>
    %213 = arith.divf %211, %212 : vector<8x128xf32>
    %214 = arith.mulf %205, %157 : vector<8x128xf32>
    %215 = arith.mulf %199, %207 : vector<8x128xf32>
    %216 = arith.addf %214, %215 : vector<8x128xf32>
    %217 = math.tanh %216 : vector<8x128xf32>
    %218 = arith.mulf %213, %217 : vector<8x128xf32>
    %219 = arith.truncf %218 : vector<8x128xf32> to vector<8x128xbf16>
    %220 = arith.truncf %189 : vector<8x128xf32> to vector<8x128xbf16>
    %221 = tpu.concatenate %219, %220 in 1 : vector<8x128xbf16>, vector<8x128xbf16> -> vector<8x256xbf16>
    %cst_40 = arith.constant dense<0.000000e+00> : vector<8x512xf32>
    %222 = tpu.matmul %221, %8, %cst_40 {dimension_numbers = #tpu.dot_dimension_numbers<[1], [0], [0], [1], [0, 0, 1, 1], [], []>} : vector<8x256xbf16>, vector<256x512xbf16>, vector<8x512xf32> -> vector<8x512xf32>
    %223 = arith.addf %222, %11 : vector<8x512xf32>
    %224 = vector.extract_strided_slice %223 {offsets = [0, 0], sizes = [8, 128], strides = [1, 1]} : vector<8x512xf32> to vector<8x128xf32>
    %225 = arith.negf %224 : vector<8x128xf32>
    %226 = math.exp %225 : vector<8x128xf32>
    %cst_41 = arith.constant 1.000000e+00 : f32
    %227 = vector.broadcast %cst_41 : f32 to vector<8x128xf32>
    %228 = arith.addf %227, %226 : vector<8x128xf32>
    %229 = arith.divf %227, %228 : vector<8x128xf32>
    %230 = vector.extract_strided_slice %223 {offsets = [0, 128], sizes = [8, 128], strides = [1, 1]} : vector<8x512xf32> to vector<8x128xf32>
    %231 = arith.negf %230 : vector<8x128xf32>
    %232 = math.exp %231 : vector<8x128xf32>
    %cst_42 = arith.constant 1.000000e+00 : f32
    %233 = vector.broadcast %cst_42 : f32 to vector<8x128xf32>
    %234 = arith.addf %233, %232 : vector<8x128xf32>
    %235 = arith.divf %233, %234 : vector<8x128xf32>
    %236 = vector.extract_strided_slice %223 {offsets = [0, 256], sizes = [8, 128], strides = [1, 1]} : vector<8x512xf32> to vector<8x128xf32>
    %237 = math.tanh %236 : vector<8x128xf32>
    %238 = vector.extract_strided_slice %223 {offsets = [0, 384], sizes = [8, 128], strides = [1, 1]} : vector<8x512xf32> to vector<8x128xf32>
    %239 = arith.negf %238 : vector<8x128xf32>
    %240 = math.exp %239 : vector<8x128xf32>
    %cst_43 = arith.constant 1.000000e+00 : f32
    %241 = vector.broadcast %cst_43 : f32 to vector<8x128xf32>
    %242 = arith.addf %241, %240 : vector<8x128xf32>
    %243 = arith.divf %241, %242 : vector<8x128xf32>
    %244 = arith.mulf %235, %187 : vector<8x128xf32>
    %245 = arith.mulf %229, %237 : vector<8x128xf32>
    %246 = arith.addf %244, %245 : vector<8x128xf32>
    %247 = math.tanh %246 : vector<8x128xf32>
    %248 = arith.mulf %243, %247 : vector<8x128xf32>
    %249 = vector.extract_strided_slice %6 {offsets = [32, 0], sizes = [8, 512], strides = [1, 1]} : vector<64x512xf32> to vector<8x512xf32>
    %250 = arith.truncf %218 : vector<8x128xf32> to vector<8x128xbf16>
    %cst_44 = arith.constant dense<0.000000e+00> : vector<8x512xf32>
    %251 = tpu.matmul %250, %7, %cst_44 {dimension_numbers = #tpu.dot_dimension_numbers<[1], [0], [0], [1], [0, 0, 1, 1], [], []>} : vector<8x128xbf16>, vector<128x512xbf16>, vector<8x512xf32> -> vector<8x512xf32>
    %252 = arith.addf %249, %251 : vector<8x512xf32>
    %253 = vector.extract_strided_slice %252 {offsets = [0, 0], sizes = [8, 128], strides = [1, 1]} : vector<8x512xf32> to vector<8x128xf32>
    %254 = arith.negf %253 : vector<8x128xf32>
    %255 = math.exp %254 : vector<8x128xf32>
    %cst_45 = arith.constant 1.000000e+00 : f32
    %256 = vector.broadcast %cst_45 : f32 to vector<8x128xf32>
    %257 = arith.addf %256, %255 : vector<8x128xf32>
    %258 = arith.divf %256, %257 : vector<8x128xf32>
    %259 = vector.extract_strided_slice %252 {offsets = [0, 128], sizes = [8, 128], strides = [1, 1]} : vector<8x512xf32> to vector<8x128xf32>
    %260 = arith.negf %259 : vector<8x128xf32>
    %261 = math.exp %260 : vector<8x128xf32>
    %cst_46 = arith.constant 1.000000e+00 : f32
    %262 = vector.broadcast %cst_46 : f32 to vector<8x128xf32>
    %263 = arith.addf %262, %261 : vector<8x128xf32>
    %264 = arith.divf %262, %263 : vector<8x128xf32>
    %265 = vector.extract_strided_slice %252 {offsets = [0, 256], sizes = [8, 128], strides = [1, 1]} : vector<8x512xf32> to vector<8x128xf32>
    %266 = math.tanh %265 : vector<8x128xf32>
    %267 = vector.extract_strided_slice %252 {offsets = [0, 384], sizes = [8, 128], strides = [1, 1]} : vector<8x512xf32> to vector<8x128xf32>
    %268 = arith.negf %267 : vector<8x128xf32>
    %269 = math.exp %268 : vector<8x128xf32>
    %cst_47 = arith.constant 1.000000e+00 : f32
    %270 = vector.broadcast %cst_47 : f32 to vector<8x128xf32>
    %271 = arith.addf %270, %269 : vector<8x128xf32>
    %272 = arith.divf %270, %271 : vector<8x128xf32>
    %273 = arith.mulf %264, %216 : vector<8x128xf32>
    %274 = arith.mulf %258, %266 : vector<8x128xf32>
    %275 = arith.addf %273, %274 : vector<8x128xf32>
    %276 = math.tanh %275 : vector<8x128xf32>
    %277 = arith.mulf %272, %276 : vector<8x128xf32>
    %278 = arith.truncf %277 : vector<8x128xf32> to vector<8x128xbf16>
    %279 = arith.truncf %248 : vector<8x128xf32> to vector<8x128xbf16>
    %280 = tpu.concatenate %278, %279 in 1 : vector<8x128xbf16>, vector<8x128xbf16> -> vector<8x256xbf16>
    %cst_48 = arith.constant dense<0.000000e+00> : vector<8x512xf32>
    %281 = tpu.matmul %280, %8, %cst_48 {dimension_numbers = #tpu.dot_dimension_numbers<[1], [0], [0], [1], [0, 0, 1, 1], [], []>} : vector<8x256xbf16>, vector<256x512xbf16>, vector<8x512xf32> -> vector<8x512xf32>
    %282 = arith.addf %281, %11 : vector<8x512xf32>
    %283 = vector.extract_strided_slice %282 {offsets = [0, 0], sizes = [8, 128], strides = [1, 1]} : vector<8x512xf32> to vector<8x128xf32>
    %284 = arith.negf %283 : vector<8x128xf32>
    %285 = math.exp %284 : vector<8x128xf32>
    %cst_49 = arith.constant 1.000000e+00 : f32
    %286 = vector.broadcast %cst_49 : f32 to vector<8x128xf32>
    %287 = arith.addf %286, %285 : vector<8x128xf32>
    %288 = arith.divf %286, %287 : vector<8x128xf32>
    %289 = vector.extract_strided_slice %282 {offsets = [0, 128], sizes = [8, 128], strides = [1, 1]} : vector<8x512xf32> to vector<8x128xf32>
    %290 = arith.negf %289 : vector<8x128xf32>
    %291 = math.exp %290 : vector<8x128xf32>
    %cst_50 = arith.constant 1.000000e+00 : f32
    %292 = vector.broadcast %cst_50 : f32 to vector<8x128xf32>
    %293 = arith.addf %292, %291 : vector<8x128xf32>
    %294 = arith.divf %292, %293 : vector<8x128xf32>
    %295 = vector.extract_strided_slice %282 {offsets = [0, 256], sizes = [8, 128], strides = [1, 1]} : vector<8x512xf32> to vector<8x128xf32>
    %296 = math.tanh %295 : vector<8x128xf32>
    %297 = vector.extract_strided_slice %282 {offsets = [0, 384], sizes = [8, 128], strides = [1, 1]} : vector<8x512xf32> to vector<8x128xf32>
    %298 = arith.negf %297 : vector<8x128xf32>
    %299 = math.exp %298 : vector<8x128xf32>
    %cst_51 = arith.constant 1.000000e+00 : f32
    %300 = vector.broadcast %cst_51 : f32 to vector<8x128xf32>
    %301 = arith.addf %300, %299 : vector<8x128xf32>
    %302 = arith.divf %300, %301 : vector<8x128xf32>
    %303 = arith.mulf %294, %246 : vector<8x128xf32>
    %304 = arith.mulf %288, %296 : vector<8x128xf32>
    %305 = arith.addf %303, %304 : vector<8x128xf32>
    %306 = math.tanh %305 : vector<8x128xf32>
    %307 = arith.mulf %302, %306 : vector<8x128xf32>
    %308 = vector.extract_strided_slice %6 {offsets = [40, 0], sizes = [8, 512], strides = [1, 1]} : vector<64x512xf32> to vector<8x512xf32>
    %309 = arith.truncf %277 : vector<8x128xf32> to vector<8x128xbf16>
    %cst_52 = arith.constant dense<0.000000e+00> : vector<8x512xf32>
    %310 = tpu.matmul %309, %7, %cst_52 {dimension_numbers = #tpu.dot_dimension_numbers<[1], [0], [0], [1], [0, 0, 1, 1], [], []>} : vector<8x128xbf16>, vector<128x512xbf16>, vector<8x512xf32> -> vector<8x512xf32>
    %311 = arith.addf %308, %310 : vector<8x512xf32>
    %312 = vector.extract_strided_slice %311 {offsets = [0, 0], sizes = [8, 128], strides = [1, 1]} : vector<8x512xf32> to vector<8x128xf32>
    %313 = arith.negf %312 : vector<8x128xf32>
    %314 = math.exp %313 : vector<8x128xf32>
    %cst_53 = arith.constant 1.000000e+00 : f32
    %315 = vector.broadcast %cst_53 : f32 to vector<8x128xf32>
    %316 = arith.addf %315, %314 : vector<8x128xf32>
    %317 = arith.divf %315, %316 : vector<8x128xf32>
    %318 = vector.extract_strided_slice %311 {offsets = [0, 128], sizes = [8, 128], strides = [1, 1]} : vector<8x512xf32> to vector<8x128xf32>
    %319 = arith.negf %318 : vector<8x128xf32>
    %320 = math.exp %319 : vector<8x128xf32>
    %cst_54 = arith.constant 1.000000e+00 : f32
    %321 = vector.broadcast %cst_54 : f32 to vector<8x128xf32>
    %322 = arith.addf %321, %320 : vector<8x128xf32>
    %323 = arith.divf %321, %322 : vector<8x128xf32>
    %324 = vector.extract_strided_slice %311 {offsets = [0, 256], sizes = [8, 128], strides = [1, 1]} : vector<8x512xf32> to vector<8x128xf32>
    %325 = math.tanh %324 : vector<8x128xf32>
    %326 = vector.extract_strided_slice %311 {offsets = [0, 384], sizes = [8, 128], strides = [1, 1]} : vector<8x512xf32> to vector<8x128xf32>
    %327 = arith.negf %326 : vector<8x128xf32>
    %328 = math.exp %327 : vector<8x128xf32>
    %cst_55 = arith.constant 1.000000e+00 : f32
    %329 = vector.broadcast %cst_55 : f32 to vector<8x128xf32>
    %330 = arith.addf %329, %328 : vector<8x128xf32>
    %331 = arith.divf %329, %330 : vector<8x128xf32>
    %332 = arith.mulf %323, %275 : vector<8x128xf32>
    %333 = arith.mulf %317, %325 : vector<8x128xf32>
    %334 = arith.addf %332, %333 : vector<8x128xf32>
    %335 = math.tanh %334 : vector<8x128xf32>
    %336 = arith.mulf %331, %335 : vector<8x128xf32>
    %337 = arith.truncf %336 : vector<8x128xf32> to vector<8x128xbf16>
    %338 = arith.truncf %307 : vector<8x128xf32> to vector<8x128xbf16>
    %339 = tpu.concatenate %337, %338 in 1 : vector<8x128xbf16>, vector<8x128xbf16> -> vector<8x256xbf16>
    %cst_56 = arith.constant dense<0.000000e+00> : vector<8x512xf32>
    %340 = tpu.matmul %339, %8, %cst_56 {dimension_numbers = #tpu.dot_dimension_numbers<[1], [0], [0], [1], [0, 0, 1, 1], [], []>} : vector<8x256xbf16>, vector<256x512xbf16>, vector<8x512xf32> -> vector<8x512xf32>
    %341 = arith.addf %340, %11 : vector<8x512xf32>
    %342 = vector.extract_strided_slice %341 {offsets = [0, 0], sizes = [8, 128], strides = [1, 1]} : vector<8x512xf32> to vector<8x128xf32>
    %343 = arith.negf %342 : vector<8x128xf32>
    %344 = math.exp %343 : vector<8x128xf32>
    %cst_57 = arith.constant 1.000000e+00 : f32
    %345 = vector.broadcast %cst_57 : f32 to vector<8x128xf32>
    %346 = arith.addf %345, %344 : vector<8x128xf32>
    %347 = arith.divf %345, %346 : vector<8x128xf32>
    %348 = vector.extract_strided_slice %341 {offsets = [0, 128], sizes = [8, 128], strides = [1, 1]} : vector<8x512xf32> to vector<8x128xf32>
    %349 = arith.negf %348 : vector<8x128xf32>
    %350 = math.exp %349 : vector<8x128xf32>
    %cst_58 = arith.constant 1.000000e+00 : f32
    %351 = vector.broadcast %cst_58 : f32 to vector<8x128xf32>
    %352 = arith.addf %351, %350 : vector<8x128xf32>
    %353 = arith.divf %351, %352 : vector<8x128xf32>
    %354 = vector.extract_strided_slice %341 {offsets = [0, 256], sizes = [8, 128], strides = [1, 1]} : vector<8x512xf32> to vector<8x128xf32>
    %355 = math.tanh %354 : vector<8x128xf32>
    %356 = vector.extract_strided_slice %341 {offsets = [0, 384], sizes = [8, 128], strides = [1, 1]} : vector<8x512xf32> to vector<8x128xf32>
    %357 = arith.negf %356 : vector<8x128xf32>
    %358 = math.exp %357 : vector<8x128xf32>
    %cst_59 = arith.constant 1.000000e+00 : f32
    %359 = vector.broadcast %cst_59 : f32 to vector<8x128xf32>
    %360 = arith.addf %359, %358 : vector<8x128xf32>
    %361 = arith.divf %359, %360 : vector<8x128xf32>
    %362 = arith.mulf %353, %305 : vector<8x128xf32>
    %363 = arith.mulf %347, %355 : vector<8x128xf32>
    %364 = arith.addf %362, %363 : vector<8x128xf32>
    %365 = math.tanh %364 : vector<8x128xf32>
    %366 = arith.mulf %361, %365 : vector<8x128xf32>
    %367 = vector.extract_strided_slice %6 {offsets = [48, 0], sizes = [8, 512], strides = [1, 1]} : vector<64x512xf32> to vector<8x512xf32>
    %368 = arith.truncf %336 : vector<8x128xf32> to vector<8x128xbf16>
    %cst_60 = arith.constant dense<0.000000e+00> : vector<8x512xf32>
    %369 = tpu.matmul %368, %7, %cst_60 {dimension_numbers = #tpu.dot_dimension_numbers<[1], [0], [0], [1], [0, 0, 1, 1], [], []>} : vector<8x128xbf16>, vector<128x512xbf16>, vector<8x512xf32> -> vector<8x512xf32>
    %370 = arith.addf %367, %369 : vector<8x512xf32>
    %371 = vector.extract_strided_slice %370 {offsets = [0, 0], sizes = [8, 128], strides = [1, 1]} : vector<8x512xf32> to vector<8x128xf32>
    %372 = arith.negf %371 : vector<8x128xf32>
    %373 = math.exp %372 : vector<8x128xf32>
    %cst_61 = arith.constant 1.000000e+00 : f32
    %374 = vector.broadcast %cst_61 : f32 to vector<8x128xf32>
    %375 = arith.addf %374, %373 : vector<8x128xf32>
    %376 = arith.divf %374, %375 : vector<8x128xf32>
    %377 = vector.extract_strided_slice %370 {offsets = [0, 128], sizes = [8, 128], strides = [1, 1]} : vector<8x512xf32> to vector<8x128xf32>
    %378 = arith.negf %377 : vector<8x128xf32>
    %379 = math.exp %378 : vector<8x128xf32>
    %cst_62 = arith.constant 1.000000e+00 : f32
    %380 = vector.broadcast %cst_62 : f32 to vector<8x128xf32>
    %381 = arith.addf %380, %379 : vector<8x128xf32>
    %382 = arith.divf %380, %381 : vector<8x128xf32>
    %383 = vector.extract_strided_slice %370 {offsets = [0, 256], sizes = [8, 128], strides = [1, 1]} : vector<8x512xf32> to vector<8x128xf32>
    %384 = math.tanh %383 : vector<8x128xf32>
    %385 = vector.extract_strided_slice %370 {offsets = [0, 384], sizes = [8, 128], strides = [1, 1]} : vector<8x512xf32> to vector<8x128xf32>
    %386 = arith.negf %385 : vector<8x128xf32>
    %387 = math.exp %386 : vector<8x128xf32>
    %cst_63 = arith.constant 1.000000e+00 : f32
    %388 = vector.broadcast %cst_63 : f32 to vector<8x128xf32>
    %389 = arith.addf %388, %387 : vector<8x128xf32>
    %390 = arith.divf %388, %389 : vector<8x128xf32>
    %391 = arith.mulf %382, %334 : vector<8x128xf32>
    %392 = arith.mulf %376, %384 : vector<8x128xf32>
    %393 = arith.addf %391, %392 : vector<8x128xf32>
    %394 = math.tanh %393 : vector<8x128xf32>
    %395 = arith.mulf %390, %394 : vector<8x128xf32>
    %396 = arith.truncf %395 : vector<8x128xf32> to vector<8x128xbf16>
    %397 = arith.truncf %366 : vector<8x128xf32> to vector<8x128xbf16>
    %398 = tpu.concatenate %396, %397 in 1 : vector<8x128xbf16>, vector<8x128xbf16> -> vector<8x256xbf16>
    %cst_64 = arith.constant dense<0.000000e+00> : vector<8x512xf32>
    %399 = tpu.matmul %398, %8, %cst_64 {dimension_numbers = #tpu.dot_dimension_numbers<[1], [0], [0], [1], [0, 0, 1, 1], [], []>} : vector<8x256xbf16>, vector<256x512xbf16>, vector<8x512xf32> -> vector<8x512xf32>
    %400 = arith.addf %399, %11 : vector<8x512xf32>
    %401 = vector.extract_strided_slice %400 {offsets = [0, 0], sizes = [8, 128], strides = [1, 1]} : vector<8x512xf32> to vector<8x128xf32>
    %402 = arith.negf %401 : vector<8x128xf32>
    %403 = math.exp %402 : vector<8x128xf32>
    %cst_65 = arith.constant 1.000000e+00 : f32
    %404 = vector.broadcast %cst_65 : f32 to vector<8x128xf32>
    %405 = arith.addf %404, %403 : vector<8x128xf32>
    %406 = arith.divf %404, %405 : vector<8x128xf32>
    %407 = vector.extract_strided_slice %400 {offsets = [0, 128], sizes = [8, 128], strides = [1, 1]} : vector<8x512xf32> to vector<8x128xf32>
    %408 = arith.negf %407 : vector<8x128xf32>
    %409 = math.exp %408 : vector<8x128xf32>
    %cst_66 = arith.constant 1.000000e+00 : f32
    %410 = vector.broadcast %cst_66 : f32 to vector<8x128xf32>
    %411 = arith.addf %410, %409 : vector<8x128xf32>
    %412 = arith.divf %410, %411 : vector<8x128xf32>
    %413 = vector.extract_strided_slice %400 {offsets = [0, 256], sizes = [8, 128], strides = [1, 1]} : vector<8x512xf32> to vector<8x128xf32>
    %414 = math.tanh %413 : vector<8x128xf32>
    %415 = vector.extract_strided_slice %400 {offsets = [0, 384], sizes = [8, 128], strides = [1, 1]} : vector<8x512xf32> to vector<8x128xf32>
    %416 = arith.negf %415 : vector<8x128xf32>
    %417 = math.exp %416 : vector<8x128xf32>
    %cst_67 = arith.constant 1.000000e+00 : f32
    %418 = vector.broadcast %cst_67 : f32 to vector<8x128xf32>
    %419 = arith.addf %418, %417 : vector<8x128xf32>
    %420 = arith.divf %418, %419 : vector<8x128xf32>
    %421 = arith.mulf %412, %364 : vector<8x128xf32>
    %422 = arith.mulf %406, %414 : vector<8x128xf32>
    %423 = arith.addf %421, %422 : vector<8x128xf32>
    %424 = math.tanh %423 : vector<8x128xf32>
    %425 = arith.mulf %420, %424 : vector<8x128xf32>
    %426 = vector.extract_strided_slice %6 {offsets = [56, 0], sizes = [8, 512], strides = [1, 1]} : vector<64x512xf32> to vector<8x512xf32>
    %427 = arith.truncf %395 : vector<8x128xf32> to vector<8x128xbf16>
    %cst_68 = arith.constant dense<0.000000e+00> : vector<8x512xf32>
    %428 = tpu.matmul %427, %7, %cst_68 {dimension_numbers = #tpu.dot_dimension_numbers<[1], [0], [0], [1], [0, 0, 1, 1], [], []>} : vector<8x128xbf16>, vector<128x512xbf16>, vector<8x512xf32> -> vector<8x512xf32>
    %429 = arith.addf %426, %428 : vector<8x512xf32>
    %430 = vector.extract_strided_slice %429 {offsets = [0, 0], sizes = [8, 128], strides = [1, 1]} : vector<8x512xf32> to vector<8x128xf32>
    %431 = arith.negf %430 : vector<8x128xf32>
    %432 = math.exp %431 : vector<8x128xf32>
    %cst_69 = arith.constant 1.000000e+00 : f32
    %433 = vector.broadcast %cst_69 : f32 to vector<8x128xf32>
    %434 = arith.addf %433, %432 : vector<8x128xf32>
    %435 = arith.divf %433, %434 : vector<8x128xf32>
    %436 = vector.extract_strided_slice %429 {offsets = [0, 128], sizes = [8, 128], strides = [1, 1]} : vector<8x512xf32> to vector<8x128xf32>
    %437 = arith.negf %436 : vector<8x128xf32>
    %438 = math.exp %437 : vector<8x128xf32>
    %cst_70 = arith.constant 1.000000e+00 : f32
    %439 = vector.broadcast %cst_70 : f32 to vector<8x128xf32>
    %440 = arith.addf %439, %438 : vector<8x128xf32>
    %441 = arith.divf %439, %440 : vector<8x128xf32>
    %442 = vector.extract_strided_slice %429 {offsets = [0, 256], sizes = [8, 128], strides = [1, 1]} : vector<8x512xf32> to vector<8x128xf32>
    %443 = math.tanh %442 : vector<8x128xf32>
    %444 = vector.extract_strided_slice %429 {offsets = [0, 384], sizes = [8, 128], strides = [1, 1]} : vector<8x512xf32> to vector<8x128xf32>
    %445 = arith.negf %444 : vector<8x128xf32>
    %446 = math.exp %445 : vector<8x128xf32>
    %cst_71 = arith.constant 1.000000e+00 : f32
    %447 = vector.broadcast %cst_71 : f32 to vector<8x128xf32>
    %448 = arith.addf %447, %446 : vector<8x128xf32>
    %449 = arith.divf %447, %448 : vector<8x128xf32>
    %450 = arith.mulf %441, %393 : vector<8x128xf32>
    %451 = arith.mulf %435, %443 : vector<8x128xf32>
    %452 = arith.addf %450, %451 : vector<8x128xf32>
    %453 = math.tanh %452 : vector<8x128xf32>
    %454 = arith.mulf %449, %453 : vector<8x128xf32>
    %455 = arith.truncf %454 : vector<8x128xf32> to vector<8x128xbf16>
    %456 = arith.truncf %425 : vector<8x128xf32> to vector<8x128xbf16>
    %457 = tpu.concatenate %455, %456 in 1 : vector<8x128xbf16>, vector<8x128xbf16> -> vector<8x256xbf16>
    %cst_72 = arith.constant dense<0.000000e+00> : vector<8x512xf32>
    %458 = tpu.matmul %457, %8, %cst_72 {dimension_numbers = #tpu.dot_dimension_numbers<[1], [0], [0], [1], [0, 0, 1, 1], [], []>} : vector<8x256xbf16>, vector<256x512xbf16>, vector<8x512xf32> -> vector<8x512xf32>
    %459 = arith.addf %458, %11 : vector<8x512xf32>
    %460 = vector.extract_strided_slice %459 {offsets = [0, 0], sizes = [8, 128], strides = [1, 1]} : vector<8x512xf32> to vector<8x128xf32>
    %461 = arith.negf %460 : vector<8x128xf32>
    %462 = math.exp %461 : vector<8x128xf32>
    %cst_73 = arith.constant 1.000000e+00 : f32
    %463 = vector.broadcast %cst_73 : f32 to vector<8x128xf32>
    %464 = arith.addf %463, %462 : vector<8x128xf32>
    %465 = arith.divf %463, %464 : vector<8x128xf32>
    %466 = vector.extract_strided_slice %459 {offsets = [0, 128], sizes = [8, 128], strides = [1, 1]} : vector<8x512xf32> to vector<8x128xf32>
    %467 = arith.negf %466 : vector<8x128xf32>
    %468 = math.exp %467 : vector<8x128xf32>
    %cst_74 = arith.constant 1.000000e+00 : f32
    %469 = vector.broadcast %cst_74 : f32 to vector<8x128xf32>
    %470 = arith.addf %469, %468 : vector<8x128xf32>
    %471 = arith.divf %469, %470 : vector<8x128xf32>
    %472 = vector.extract_strided_slice %459 {offsets = [0, 256], sizes = [8, 128], strides = [1, 1]} : vector<8x512xf32> to vector<8x128xf32>
    %473 = math.tanh %472 : vector<8x128xf32>
    %474 = vector.extract_strided_slice %459 {offsets = [0, 384], sizes = [8, 128], strides = [1, 1]} : vector<8x512xf32> to vector<8x128xf32>
    %475 = arith.negf %474 : vector<8x128xf32>
    %476 = math.exp %475 : vector<8x128xf32>
    %cst_75 = arith.constant 1.000000e+00 : f32
    %477 = vector.broadcast %cst_75 : f32 to vector<8x128xf32>
    %478 = arith.addf %477, %476 : vector<8x128xf32>
    %479 = arith.divf %477, %478 : vector<8x128xf32>
    %480 = arith.mulf %471, %423 : vector<8x128xf32>
    %481 = arith.mulf %465, %473 : vector<8x128xf32>
    %482 = arith.addf %480, %481 : vector<8x128xf32>
    %483 = math.tanh %482 : vector<8x128xf32>
    %484 = arith.mulf %479, %483 : vector<8x128xf32>
    %485 = arith.truncf %484 : vector<8x128xf32> to vector<8x128xbf16>
    %c0_76 = arith.constant 0 : index
    %c0_77 = arith.constant 0 : index
    %486 = vector.load %arg6[%c0_76, %c0_77] : memref<128x60xbf16, #tpu.memory_space<vmem>>, vector<128x60xbf16>
    %cst_78 = arith.constant dense<0.000000e+00> : vector<8x60xf32>
    %487 = tpu.matmul %485, %486, %cst_78 {dimension_numbers = #tpu.dot_dimension_numbers<[1], [0], [0], [1], [0, 0, 1, 1], [], []>} : vector<8x128xbf16>, vector<128x60xbf16>, vector<8x60xf32> -> vector<8x60xf32>
    %c0_79 = arith.constant 0 : index
    %c0_80 = arith.constant 0 : index
    %488 = vector.load %arg7[%c0_79, %c0_80] : memref<1x60xf32, #tpu.memory_space<vmem>>, vector<1x60xf32>
    %489 = vector.broadcast %488 : vector<1x60xf32> to vector<8x60xf32>
    %490 = arith.addf %487, %489 : vector<8x60xf32>
    %cst_81 = arith.constant dense<0xFF800000> : vector<8xf32>
    %491 = vector.multi_reduction <maximumf>, %490, %cst_81 [1] : vector<8x60xf32> to vector<8xf32>
    %492 = vector.shape_cast %491 : vector<8xf32> to vector<8x1xf32>
    %493 = vector.broadcast %492 : vector<8x1xf32> to vector<8x60xf32>
    %494 = arith.subf %490, %493 : vector<8x60xf32>
    %495 = math.exp %494 : vector<8x60xf32>
    %cst_82 = arith.constant dense<0.000000e+00> : vector<8xf32>
    %496 = vector.multi_reduction <add>, %495, %cst_82 [1] : vector<8x60xf32> to vector<8xf32>
    %497 = vector.shape_cast %496 : vector<8xf32> to vector<8x1xf32>
    %498 = tpu.reciprocal %497 : vector<8x1xf32> -> vector<8x1xf32>
    %499 = vector.broadcast %498 : vector<8x1xf32> to vector<8x60xf32>
    %500 = arith.mulf %495, %499 : vector<8x60xf32>
    %c0_83 = arith.constant 0 : index
    %c0_84 = arith.constant 0 : index
    %501 = vector.load %arg8[%c0_83, %c0_84] : memref<8x60xf32, #tpu.memory_space<vmem>>, vector<8x60xf32>
    tpu.vector_store %arg8[%c0_83, %c0_84], %500 {strides = array<i32>} : memref<8x60xf32, #tpu.memory_space<vmem>>, vector<8x60xf32>,
    return
  }
}

</mosaic_0001>

<bundles_post_ra>
// kernel: forward.1
= control target key start
LH: loop header
LB: loop body
LE: loop exit
PB: predicated region body
PF: predicated region fallthrough
CT: control target
= control target key end

     0   :  { %13 = vsyncpa [#allocation3], 0  ;;  %s3645_s27 = smov [#allocation2]   ;;  %s6001_s0 = inlined_call_operand.vmem [shape: f32[64,45], index: 0, kind: input, shape index: {}]   ;;  %s6002_s1 = inlined_call_operand.vmem [shape: bf16[45,512], index: 1, kind: input, shape index: {}]   ;;  %s6003_s2 = inlined_call_operand.vmem [shape: f32[1,512], index: 2, kind: input, shape index: {}]   ;;  %s6004_s3 = inlined_call_operand.hbm [shape: bf16[128,512], index: 3, kind: input, shape index: {}]   ;;  %s6005_s4 = inlined_call_operand.vmem [shape: bf16[256,512], index: 4, kind: input, shape index: {}]   ;;  %s6006_s5 = inlined_call_operand.vmem [shape: f32[1,512], index: 5, kind: input, shape index: {}]   ;;  %s6007_s6 = inlined_call_operand.vmem [shape: bf16[128,60], index: 6, kind: input, shape index: {}]   ;;  %s6008_s7 = inlined_call_operand.vmem [shape: f32[1,60], index: 7, kind: input, shape index: {}]   ;;  %s6009_s8 = inlined_call_operand.vmem [shape: f32[8,60], index: 8, kind: output, shape index: {}]  }
   0x1   :  { %s25_s28 = sshll.u32 %s3645_s27, 4  ;;  %s26_s28 = int_to_ptr.vmem [resolvable:$true] %s25_s28 }
   0x2   :  { %s3631_s29 = scalar_lea.vmem %s26_s28, 4096  ;;  %p3636_p1 = scmp.lt.s32.totalorder %s26_s28, %s26_s28 }
   0x3   :  { %p3632_p0 = scmp.ne.s32.totalorder %s26_s28, %s3631_s29  ;;  %p3637_p2 = scmp.lt.s32.totalorder %s3631_s29, %s3631_s29 }
   0x5   :  { %p3638_p3 = por %p3637_p2, %p3636_p1 }
   0x7   :  { %p3639_p4 = pnand %p3638_p3, %p3632_p0 }
   0x9   :  { %3642 = shalt.err (!%p3639_p4)
}
   0xa   :  { %s3646_s30 = smov 256   ;;  %s3647_s9 = smov 16  }
   0xb   :  { %31 = dma.hbm_to_vmem [thread:$0]  %s6004_s3, 4096, %s26_s28, [#allocation3], %s3646_s30, %s3646_s30, %s3647_s9  }
   0xc   :  { %3643 = dma.done.wait [#allocation3], 4096  }
   0xd   :  { %3644 = vsyncadd [#allocation3], 4294963200  ;;  %vm159_vm0 = vcmask 1045504   ;;  %v6010_v0 = vmov 0   ;;  %vm160_vm1 = vcmask 1046528   ;;  %v3649_v1 = vmov 65535  }
   0xe   :  { %207 = vmatprep.mubr.bf16.mxu0 %v6010_v0  ;;  %280 = vmatprep.mubr.bf16.mxu1 %v6010_v0  ;;  %v161_v2 = vsel %vm159_vm0, 4294967295, %v3649_v1  ;;  %v3001_v4 = vld [vmem:[%s6002_s1 + $0x44] ss:$16 sps:$4 sm:$0x7f]   ;;  %v3009_v13 = vld [vmem:[%s6002_s1 + $0x2c] ss:$16 sps:$4 sm:$0xff]  }
   0xf   :  { %v162_v3 = vsel %vm160_vm1, %v161_v2, 0  ;;  %v3003_v5 = vld [vmem:[%s6002_s1 + $0x4c] ss:$16 sps:$4 sm:$0x7f]   ;;  %v3007_v10 = vld [vmem:[%s6002_s1 + $0x24] ss:$16 sps:$4 sm:$0xff]  }
  0x10   :  { %v167_v6 = vand.u32 %v3001_v4, %v162_v3  ;;  %v3005_v7 = vld [vmem:[%s6002_s1 + $0x40] ss:$16 sps:$4 sm:$0x7f]   ;;  %v3006_v8 = vld [vmem:[%s6002_s1 + $0x48] ss:$16 sps:$4 sm:$0x7f]   ;;  %v173_v9 = vand.u32 %v3003_v5, %v162_v3 }
  0x11   :  { %v164_v11 = vand.u32 %v3005_v7, %v162_v3  ;;  %v170_v12 = vand.u32 %v3006_v8, %v162_v3  ;;  %v3011_v14 = vld [vmem:[%s6002_s1 + $0x20] ss:$16 sps:$4 sm:$0xff]   ;;  %v3012_v15 = vld [vmem:[%s6002_s1 + $0x28] ss:$16 sps:$4 sm:$0xff]   ;;  %v3013_v16 = vld [vmem:[%s6002_s1 + $0x4] ss:$16 sps:$4 sm:$0xff]  }
  0x12   :  { %185 = vmatprep.subr.bf16.mxu0 %v167_v6  ;;  %258 = vmatprep.subr.bf16.mxu1 %v173_v9  ;;  %v3015_v17 = vld [vmem:[%s6002_s1 + $0xc] ss:$16 sps:$4 sm:$0xff]   ;;  %v3017_v18 = vld [vmem:[%s6002_s1] ss:$16 sps:$4 sm:$0xff]   ;;  %v3018_v19 = vld [vmem:[%s6002_s1 + $0x8] ss:$16 sps:$4 sm:$0xff]  }
  0x13   :  { %186 = vmatpush1.bf16.msra.mxu0 %v164_v11  ;;  %259 = vmatpush1.bf16.msra.mxu1 %v170_v12  ;;  %v44_v20 = vld [vmem:[%s6001_s0] sm:$0xff]  ;;  %v45_v21 = vld [vmem:[%s6001_s0 + $0x8] sm:$0xff]  ;;  %vm146_vm2 = vcmask 367616   ;;  %v46_v31 = vld [vmem:[%s6001_s0 + $0x10] sm:$0xff]  ;;  %vm3651_vm3 = vmmov 0   ;;  %vm2774_vm4 = vcmask 490496  }
  0x14   :  { %187 = vmatprep.subr.bf16.mxu0 %v3007_v10  ;;  %260 = vmatprep.subr.bf16.mxu1 %v3009_v13  ;;  %v3744_v22 = vld [vmem:[#allocation2 + $0xe4] ss:$16 sps:$4 sm:$0xff]   ;;  %v3746_v23 = vld [vmem:[#allocation2 + $0xec] ss:$16 sps:$4 sm:$0xff]   ;;  %v52_v24 = vpack.c.bf16 %v45_v21, %v44_v20  ;;  %v3748_v25 = vld [vmem:[#allocation2 + $0xe0] ss:$16 sps:$4 sm:$0xff]  }
  0x15   :  { %v3750_v26 = vld [vmem:[#allocation2 + $0xe8] ss:$16 sps:$4 sm:$0xff]   ;;  %v3752_v27 = vld [vmem:[#allocation2 + $0xc4] ss:$16 sps:$4 sm:$0xff]   ;;  %v3756_v28 = vld [vmem:[#allocation2 + $0xcc] ss:$16 sps:$4 sm:$0xff]  }
  0x16   :  { %v3758_v29 = vld [vmem:[#allocation2 + $0xc0] ss:$16 sps:$4 sm:$0xff]   ;;  %v3762_v30 = vld [vmem:[#allocation2 + $0xc8] ss:$16 sps:$4 sm:$0xff]   ;;  %v3774_v33 = vld [vmem:[#allocation2 + $0xa4] ss:$16 sps:$4 sm:$0xff]  }
  0x17   :  { %188 = vmatpush1.bf16.msra.mxu0 %v3011_v14  ;;  %261 = vmatpush1.bf16.msra.mxu1 %v3012_v15  ;;  %v47_v32 = vld [vmem:[%s6001_s0 + $0x18] sm:$0xff]  ;;  %v3780_v36 = vld [vmem:[#allocation2 + $0xa0] ss:$16 sps:$4 sm:$0xff]   ;;  %v3788_v38 = vld [vmem:[#allocation2 + $0x84] ss:$16 sps:$4 sm:$0xff]  }
  0x18   :  { %189 = vmatprep.subr.bf16.mxu0 %v3013_v16  ;;  %262 = vmatprep.subr.bf16.mxu1 %v3015_v17  ;;  %v3776_v34 = vld [vmem:[#allocation2 + $0xac] ss:$16 sps:$4 sm:$0xff]   ;;  %v53_v35 = vpack.c.bf16 %v47_v32, %v46_v31  ;;  %v3784_v37 = vld [vmem:[#allocation2 + $0xa8] ss:$16 sps:$4 sm:$0xff]   ;;  %v3794_v40 = vld [vmem:[#allocation2 + $0x80] ss:$16 sps:$4 sm:$0xff]  }
  0x19   :  { %v3790_v39 = vld [vmem:[#allocation2 + $0x8c] ss:$16 sps:$4 sm:$0xff]   ;;  %v3796_v41 = vld [vmem:[#allocation2 + $0x88] ss:$16 sps:$4 sm:$0xff]   ;;  %v48_v42 = vld [vmem:[%s6001_s0 + $0x20] sm:$0xff] }
  0x1a   :  { %v49_v43 = vld [vmem:[%s6001_s0 + $0x28] sm:$0xff]  ;;  %v3806_v44 = vld [vmem:[#allocation2 + $0x64] ss:$16 sps:$4 sm:$0xff]   ;;  %v3814_v47 = vld [vmem:[#allocation2 + $0x60] ss:$16 sps:$4 sm:$0xff]  }
  0x1b   :  { %190 = vmatpush1.bf16.msra.mxu0 %v3017_v18  ;;  %263 = vmatpush1.bf16.msra.mxu1 %v3018_v19  ;;  %v3810_v45 = vld [vmem:[#allocation2 + $0x6c] ss:$16 sps:$4 sm:$0xff]   ;;  %v54_v46 = vpack.c.bf16 %v49_v43, %v48_v42  ;;  %v3818_v48 = vld [vmem:[#allocation2 + $0x68] ss:$16 sps:$4 sm:$0xff]   ;;  %v3822_v49 = vld [vmem:[#allocation2 + $0x44] ss:$16 sps:$4 sm:$0xff]  }
  0x1c   :  { %599 = vmatprep.subr.bf16.mxu0 %v3744_v22  ;;  %640 = vmatprep.subr.bf16.mxu1 %v3746_v23  ;;  %v3824_v50 = vld [vmem:[#allocation2 + $0x4c] ss:$16 sps:$4 sm:$0xff]   ;;  %v3826_v51 = vld [vmem:[#allocation2 + $0x40] ss:$16 sps:$4 sm:$0xff]   ;;  %v3828_v52 = vld [vmem:[#allocation2 + $0x48] ss:$16 sps:$4 sm:$0xff]  }
  0x1d   :  { %v50_v53 = vld [vmem:[%s6001_s0 + $0x30] sm:$0xff]  ;;  %v51_v54 = vld [vmem:[%s6001_s0 + $0x38] sm:$0xff] }
  0x1e   :  { %2804 = vmatmul.mubr.msk.bf16.vlgmr.msra.gmra.mxu0 %vm146_vm2, %v52_v24  ;;  %2808 = vmatmul.mubr.msk.bf16.vlgmr.msra.gmra.mxu1 %vm146_vm2, %v52_v24  ;;  %v3838_v55 = vld [vmem:[#allocation2 + $0x24] ss:$16 sps:$4 sm:$0xff]   ;;  %v3840_v56 = vld [vmem:[#allocation2 + $0x2c] ss:$16 sps:$4 sm:$0xff]   ;;  %v3848_v57 = vld [vmem:[#allocation2 + $0x20] ss:$16 sps:$4 sm:$0xff]   ;;  %v55_v59 = vpack.c.bf16 %v51_v54, %v50_v53 }
  0x1f   :  { %600 = vmatpush1.bf16.msra.mxu0 %v3748_v25  ;;  %641 = vmatpush1.bf16.msra.mxu1 %v3750_v26  ;;  %v3850_v58 = vld [vmem:[#allocation2 + $0x28] ss:$16 sps:$4 sm:$0xff]   ;;  %v3852_v60 = vld [vmem:[#allocation2 + $0x4] ss:$16 sps:$4 sm:$0xff]   ;;  %v3854_v61 = vld [vmem:[#allocation2 + $0xc] ss:$16 sps:$4 sm:$0xff]  }
  0x20   :  { %601 = vmatprep.subr.bf16.mxu0 %v3752_v27  ;;  %642 = vmatprep.subr.bf16.mxu1 %v3756_v28  ;;  %v3860_v62 = vld [vmem:[#allocation2] ss:$16 sps:$4 sm:$0xff]   ;;  %v3862_v63 = vld [vmem:[#allocation2 + $0x8] ss:$16 sps:$4 sm:$0xff]   ;;  %v3881_v1 = vld [vmem:[%s6005_s4 + $0xe4] ss:$16 sps:$4 sm:$0xff]  }
  0x21   :  { %217 = vmatprep.mubr.bf16.mxu0 %v6010_v0  ;;  %290 = vmatprep.mubr.bf16.mxu1 %v6010_v0  ;;  %v3886_v2 = vld [vmem:[%s6005_s4 + $0xec] ss:$16 sps:$4 sm:$0xff]   ;;  %v3891_v3 = vld [vmem:[%s6005_s4 + $0xe0] ss:$16 sps:$4 sm:$0xff]   ;;  %v3896_v4 = vld [vmem:[%s6005_s4 + $0xe8] ss:$16 sps:$4 sm:$0xff]  }
  0x22   :  { %v3905_v5 = vld [vmem:[%s6005_s4 + $0xc4] ss:$16 sps:$4 sm:$0xff]   ;;  %v3910_v6 = vld [vmem:[%s6005_s4 + $0xcc] ss:$16 sps:$4 sm:$0xff]   ;;  %v3915_v7 = vld [vmem:[%s6005_s4 + $0xc0] ss:$16 sps:$4 sm:$0xff]  }
  0x23   :  { %602 = vmatpush1.bf16.msra.mxu0 %v3758_v29  ;;  %643 = vmatpush1.bf16.msra.mxu1 %v3762_v30  ;;  %v3920_v8 = vld [vmem:[%s6005_s4 + $0xc8] ss:$16 sps:$4 sm:$0xff]   ;;  %v3929_v9 = vld [vmem:[%s6005_s4 + $0xa4] ss:$16 sps:$4 sm:$0xff]   ;;  %v3934_v10 = vld [vmem:[%s6005_s4 + $0xac] ss:$16 sps:$4 sm:$0xff]  }
  0x24   :  { %603 = vmatprep.subr.bf16.mxu0 %v3774_v33  ;;  %644 = vmatprep.subr.bf16.mxu1 %v3776_v34  ;;  %6353 = vst [vmem:[#allocation5_spill] sm:$0xff] %v3934_v10  ;;  %v3939_v11 = vld [vmem:[%s6005_s4 + $0xa0] ss:$16 sps:$4 sm:$0xff]   ;;  %v3944_v12 = vld [vmem:[%s6005_s4 + $0xa8] ss:$16 sps:$4 sm:$0xff]  }
  0x25   :  { %6354 = vst [vmem:[#allocation6_spill] sm:$0xff] %v3939_v11  ;;  %6355 = vst [vmem:[#allocation7_spill] sm:$0xff] %v3944_v12  ;;  %v3953_v13 = vld [vmem:[%s6005_s4 + $0x84] ss:$16 sps:$4 sm:$0xff]   ;;  %v3958_v14 = vld [vmem:[%s6005_s4 + $0x8c] ss:$16 sps:$4 sm:$0xff]  }
  0x26   :  { %2805 = vmatmul.mubr.msk.bf16.gmra.mxu0 %vm146_vm2, %v53_v35  ;;  %2809 = vmatmul.mubr.msk.bf16.gmra.mxu1 %vm146_vm2, %v53_v35  ;;  %6356 = vst [vmem:[#allocation8_spill] sm:$0xff] %v3953_v13  ;;  %6357 = vst [vmem:[#allocation9_spill] sm:$0xff] %v3958_v14  ;;  %v3963_v15 = vld [vmem:[%s6005_s4 + $0x80] ss:$16 sps:$4 sm:$0xff]   ;;  %v3968_v16 = vld [vmem:[%s6005_s4 + $0x88] ss:$16 sps:$4 sm:$0xff]  }
  0x27   :  { %604 = vmatpush1.bf16.msra.mxu0 %v3780_v36  ;;  %645 = vmatpush1.bf16.msra.mxu1 %v3784_v37  ;;  %6358 = vst [vmem:[#allocation10_spill] sm:$0xff] %v3963_v15  ;;  %6359 = vst [vmem:[#allocation11_spill] sm:$0xff] %v3968_v16  ;;  %v3977_v17 = vld [vmem:[%s6005_s4 + $0x64] ss:$16 sps:$4 sm:$0xff]   ;;  %v3982_v18 = vld [vmem:[%s6005_s4 + $0x6c] ss:$16 sps:$4 sm:$0xff]  }
  0x28   :  { %605 = vmatprep.subr.bf16.mxu0 %v3788_v38  ;;  %646 = vmatprep.subr.bf16.mxu1 %v3790_v39  ;;  %6360 = vst [vmem:[#allocation12_spill] sm:$0xff] %v3977_v17  ;;  %6361 = vst [vmem:[#allocation13_spill] sm:$0xff] %v3982_v18  ;;  %v3987_v19 = vld [vmem:[%s6005_s4 + $0x60] ss:$16 sps:$4 sm:$0xff]   ;;  %v3992_v20 = vld [vmem:[%s6005_s4 + $0x68] ss:$16 sps:$4 sm:$0xff]  }
  0x29   :  { %227 = vmatprep.mubr.bf16.mxu0 %v6010_v0  ;;  %300 = vmatprep.mubr.bf16.mxu1 %v6010_v0  ;;  %6362 = vst [vmem:[#allocation14_spill] sm:$0xff] %v3987_v19  ;;  %6363 = vst [vmem:[#allocation15_spill] sm:$0xff] %v3992_v20  ;;  %v4001_v21 = vld [vmem:[%s6005_s4 + $0x44] ss:$16 sps:$4 sm:$0xff]   ;;  %v4006_v24 = vld [vmem:[%s6005_s4 + $0x4c] ss:$16 sps:$4 sm:$0xff]  }
  0x2a   :  { %6364 = vst [vmem:[#allocation16_spill] sm:$0xff] %v4001_v21  ;;  %6365 = vst [vmem:[#allocation17_spill] sm:$0xff] %v4006_v24  ;;  %v4011_v31 = vld [vmem:[%s6005_s4 + $0x40] ss:$16 sps:$4 sm:$0xff]   ;;  %v4016_v32 = vld [vmem:[%s6005_s4 + $0x48] ss:$16 sps:$4 sm:$0xff]  }
  0x2b   :  { %606 = vmatpush1.bf16.msra.mxu0 %v3794_v40  ;;  %647 = vmatpush1.bf16.msra.mxu1 %v3796_v41  ;;  %6366 = vst [vmem:[#allocation18_spill] sm:$0xff] %v4011_v31  ;;  %6367 = vst [vmem:[#allocation19_spill] sm:$0xff] %v4016_v32  ;;  %v4025_v35 = vld [vmem:[%s6005_s4 + $0x24] ss:$16 sps:$4 sm:$0xff]   ;;  %v4030_v42 = vld [vmem:[%s6005_s4 + $0x2c] ss:$16 sps:$4 sm:$0xff]  }
  0x2c   :  { %607 = vmatprep.subr.bf16.mxu0 %v3806_v44  ;;  %648 = vmatprep.subr.bf16.mxu1 %v3810_v45  ;;  %6368 = vst [vmem:[#allocation20_spill] sm:$0xff] %v4025_v35  ;;  %6369 = vst [vmem:[#allocation21_spill] sm:$0xff] %v4030_v42  ;;  %v4035_v43 = vld [vmem:[%s6005_s4 + $0x20] ss:$16 sps:$4 sm:$0xff]   ;;  %v4049_v53 = vld [vmem:[%s6005_s4 + $0x4] ss:$16 sps:$4 sm:$0xff]  }
  0x2d   :  { %6370 = vst [vmem:[#allocation22_spill] sm:$0xff] %v4035_v43  ;;  %6372 = vst [vmem:[#allocation24_spill] sm:$0xff] %v4049_v53  ;;  %v4054_v54 = vld [vmem:[%s6005_s4 + $0xc] ss:$16 sps:$4 sm:$0xff]  }
  0x2e   :  { %2806 = vmatmul.mubr.msk.bf16.gmra.mxu0 %vm146_vm2, %v54_v46  ;;  %2810 = vmatmul.mubr.msk.bf16.gmra.mxu1 %vm146_vm2, %v54_v46  ;;  %v4040_v46 = vld [vmem:[%s6005_s4 + $0x28] ss:$16 sps:$4 sm:$0xff]   ;;  %6373 = vst [vmem:[#allocation25_spill] sm:$0xff] %v4054_v54 }
  0x2f   :  { %608 = vmatpush1.bf16.msra.mxu0 %v3814_v47  ;;  %649 = vmatpush1.bf16.msra.mxu1 %v3818_v48  ;;  %6371 = vst [vmem:[#allocation23_spill] sm:$0xff] %v4040_v46 }
  0x30   :  { %609 = vmatprep.subr.bf16.mxu0 %v3822_v49  ;;  %650 = vmatprep.subr.bf16.mxu1 %v3824_v50 }
  0x31   :  { %237 = vmatprep.mubr.bf16.mxu0 %v6010_v0  ;;  %310 = vmatprep.mubr.bf16.mxu1 %v6010_v0 }
  0x33   :  { %610 = vmatpush1.bf16.msra.mxu0 %v3826_v51  ;;  %651 = vmatpush1.bf16.msra.mxu1 %v3828_v52 }
  0x34   :  { %611 = vmatprep.subr.bf16.mxu0 %v3838_v55  ;;  %652 = vmatprep.subr.bf16.mxu1 %v3840_v56 }
  0x36   :  { %2807 = vmatmul.mubr.msk.bf16.gmra.mxu0 %vm146_vm2, %v55_v59  ;;  %2811 = vmatmul.mubr.msk.bf16.gmra.mxu1 %vm146_vm2, %v55_v59  ;;  %v4059_v59 = vld [vmem:[%s6005_s4] ss:$16 sps:$4 sm:$0xff]  }
  0x37   :  { %612 = vmatpush1.bf16.msra.mxu0 %v3848_v57  ;;  %653 = vmatpush1.bf16.msra.mxu1 %v3850_v58  ;;  %6374 = vst [vmem:[#allocation26_spill] sm:$0xff] %v4059_v59 }
  0x38   :  { %613 = vmatprep.subr.bf16.mxu0 %v3852_v60  ;;  %654 = vmatprep.subr.bf16.mxu1 %v3854_v61 }
  0x39   :  { %631 = vmatprep.mubr.bf16.mxu0 %v6010_v0  ;;  %672 = vmatprep.mubr.bf16.mxu1 %v6010_v0 }
  0x3b   :  { %614 = vmatpush1.bf16.msra.mxu0 %v3860_v62  ;;  %655 = vmatpush1.bf16.msra.mxu1 %v3862_v63 }
  0x3c   :  { %1030 = vmatprep.subr.bf16.mxu0 %v3881_v1  ;;  %1071 = vmatprep.subr.bf16.mxu1 %v3886_v2 }
  0x3e   :  { %632 = vmatmul.mubr.bf16.vlgmr.msra.gmra.mxu0 %v6010_v0  ;;  %673 = vmatmul.mubr.bf16.vlgmr.msra.gmra.mxu1 %v6010_v0 }
  0x3f   :  { %1062 = vmatprep.mubr.bf16.mxu0 %v6010_v0  ;;  %1103 = vmatprep.mubr.bf16.mxu1 %v6010_v0  ;;  %v4064_v0 = vld [vmem:[%s6005_s4 + $0x8] ss:$16 sps:$4 sm:$0xff]  }
  0x40   :  { %1031 = vmatpush1.bf16.msra.mxu0 %v3891_v3  ;;  %1072 = vmatpush1.bf16.msra.mxu1 %v3896_v4  ;;  %6375 = vst [vmem:[#allocation27_spill] sm:$0xff] %v4064_v0 }
  0x41   :  { %1032 = vmatprep.subr.bf16.mxu0 %v3905_v5  ;;  %1073 = vmatprep.subr.bf16.mxu1 %v3910_v6 }
  0x44   :  { %1033 = vmatpush1.bf16.msra.mxu0 %v3915_v7  ;;  %1074 = vmatpush1.bf16.msra.mxu1 %v3920_v8 }
  0x45   :  { %1034 = vmatprep.subr.bf16.mxu0 %v3929_v9  ;;  %1075 = vmatprep.subr.bf16.mxu1 %v3934_v10 }
  0x48   :  { %1035 = vmatpush1.bf16.msra.mxu0 %v3939_v11  ;;  %1076 = vmatpush1.bf16.msra.mxu1 %v3944_v12 }
  0x49   :  { %1036 = vmatprep.subr.bf16.mxu0 %v3953_v13  ;;  %1077 = vmatprep.subr.bf16.mxu1 %v3958_v14 }
  0x4c   :  { %1037 = vmatpush1.bf16.msra.mxu0 %v3963_v15  ;;  %1078 = vmatpush1.bf16.msra.mxu1 %v3968_v16 }
  0x4d   :  { %1038 = vmatprep.subr.bf16.mxu0 %v3977_v17  ;;  %1079 = vmatprep.subr.bf16.mxu1 %v3982_v18 }
  0x50   :  { %1039 = vmatpush1.bf16.msra.mxu0 %v3987_v19  ;;  %1080 = vmatpush1.bf16.msra.mxu1 %v3992_v20 }
  0x51   :  { %1040 = vmatprep.subr.bf16.mxu0 %v4001_v21  ;;  %1081 = vmatprep.subr.bf16.mxu1 %v4006_v24 }
  0x54   :  { %1041 = vmatpush1.bf16.msra.mxu0 %v4011_v31  ;;  %1082 = vmatpush1.bf16.msra.mxu1 %v4016_v32 }
  0x55   :  { %1042 = vmatprep.subr.bf16.mxu0 %v4025_v35  ;;  %1083 = vmatprep.subr.bf16.mxu1 %v4030_v42  ;;  %v4203_v42 = vld [vmem:[%s6005_s4 + $0x140] ss:$16 sps:$4 sm:$0xff]   ;;  %v4208_v35 = vld [vmem:[%s6005_s4 + $0x148] ss:$16 sps:$4 sm:$0xff]  }
  0x56   :  { %6398 = vst [vmem:[#allocation50_spill] sm:$0xff] %v4203_v42  ;;  %6399 = vst [vmem:[#allocation51_spill] sm:$0xff] %v4208_v35 }
  0x58   :  { %1043 = vmatpush1.bf16.msra.mxu0 %v4035_v43  ;;  %1084 = vmatpush1.bf16.msra.mxu1 %v4040_v46  ;;  %v4073_v46 = vld [vmem:[%s6005_s4 + $0x1e4] ss:$16 sps:$4 sm:$0xff]   ;;  %v4078_v43 = vld [vmem:[%s6005_s4 + $0x1ec] ss:$16 sps:$4 sm:$0xff]  }
  0x59   :  { %1044 = vmatprep.subr.bf16.mxu0 %v4049_v53  ;;  %1085 = vmatprep.subr.bf16.mxu1 %v4054_v54  ;;  %6376 = vst [vmem:[#allocation28_spill] sm:$0xff] %v4073_v46  ;;  %6377 = vst [vmem:[#allocation29_spill] sm:$0xff] %v4078_v43  ;;  %v4083_v53 = vld [vmem:[%s6005_s4 + $0x1e0] ss:$16 sps:$4 sm:$0xff]   ;;  %v4102_v54 = vld [vmem:[%s6005_s4 + $0x1cc] ss:$16 sps:$4 sm:$0xff]  }
  0x5a   :  { %6378 = vst [vmem:[#allocation30_spill] sm:$0xff] %v4083_v53  ;;  %6381 = vst [vmem:[#allocation33_spill] sm:$0xff] %v4102_v54 }
  0x5c   :  { %1045 = vmatpush1.bf16.msra.mxu0 %v4059_v59  ;;  %1086 = vmatpush1.bf16.msra.mxu1 %v4064_v0  ;;  %v4088_v59 = vld [vmem:[%s6005_s4 + $0x1e8] ss:$16 sps:$4 sm:$0xff]   ;;  %v4097_v0 = vld [vmem:[%s6005_s4 + $0x1c4] ss:$16 sps:$4 sm:$0xff]  }
  0x5d   :  { %6379 = vst [vmem:[#allocation31_spill] sm:$0xff] %v4088_v59  ;;  %1046 = vmatprep.subr.bf16.mxu0 %v4073_v46  ;;  %1087 = vmatprep.subr.bf16.mxu1 %v4078_v43  ;;  %6380 = vst [vmem:[#allocation32_spill] sm:$0xff] %v4097_v0  ;;  %v4107_v46 = vld [vmem:[%s6005_s4 + $0x1c0] ss:$16 sps:$4 sm:$0xff]   ;;  %v4126_v43 = vld [vmem:[%s6005_s4 + $0x1ac] ss:$16 sps:$4 sm:$0xff]  }
  0x5e   :  { %6382 = vst [vmem:[#allocation34_spill] sm:$0xff] %v4107_v46  ;;  %6385 = vst [vmem:[#allocation37_spill] sm:$0xff] %v4126_v43 }
  0x60   :  { %1047 = vmatpush2.bf16.msra.mxu0 %v4083_v53  ;;  %1088 = vmatpush2.bf16.msra.mxu1 %v4088_v59  ;;  %v4112_v53 = vld [vmem:[%s6005_s4 + $0x1c8] ss:$16 sps:$4 sm:$0xff]   ;;  %v4121_v59 = vld [vmem:[%s6005_s4 + $0x1a4] ss:$16 sps:$4 sm:$0xff]  }
  0x61   :  { %6383 = vst [vmem:[#allocation35_spill] sm:$0xff] %v4112_v53  ;;  %1048 = vmatprep.subr.bf16.mxu0 %v4097_v0  ;;  %1089 = vmatprep.subr.bf16.mxu1 %v4102_v54  ;;  %6384 = vst [vmem:[#allocation36_spill] sm:$0xff] %v4121_v59  ;;  %v4131_v0 = vld [vmem:[%s6005_s4 + $0x1a0] ss:$16 sps:$4 sm:$0xff]   ;;  %v4150_v54 = vld [vmem:[%s6005_s4 + $0x18c] ss:$16 sps:$4 sm:$0xff]  }
  0x62   :  { %6386 = vst [vmem:[#allocation38_spill] sm:$0xff] %v4131_v0  ;;  %6389 = vst [vmem:[#allocation41_spill] sm:$0xff] %v4150_v54 }
  0x64   :  { %1049 = vmatpush2.bf16.msra.mxu0 %v4107_v46  ;;  %1090 = vmatpush2.bf16.msra.mxu1 %v4112_v53  ;;  %v4136_v46 = vld [vmem:[%s6005_s4 + $0x1a8] ss:$16 sps:$4 sm:$0xff]   ;;  %v4145_v53 = vld [vmem:[%s6005_s4 + $0x184] ss:$16 sps:$4 sm:$0xff]  }
  0x65   :  { %6387 = vst [vmem:[#allocation39_spill] sm:$0xff] %v4136_v46  ;;  %1050 = vmatprep.subr.bf16.mxu0 %v4121_v59  ;;  %1091 = vmatprep.subr.bf16.mxu1 %v4126_v43  ;;  %6388 = vst [vmem:[#allocation40_spill] sm:$0xff] %v4145_v53  ;;  %v4155_v59 = vld [vmem:[%s6005_s4 + $0x180] ss:$16 sps:$4 sm:$0xff]   ;;  %v4174_v43 = vld [vmem:[%s6005_s4 + $0x16c] ss:$16 sps:$4 sm:$0xff]  }
  0x66   :  { %6390 = vst [vmem:[#allocation42_spill] sm:$0xff] %v4155_v59  ;;  %6393 = vst [vmem:[#allocation45_spill] sm:$0xff] %v4174_v43 }
  0x68   :  { %1051 = vmatpush2.bf16.msra.mxu0 %v4131_v0  ;;  %1092 = vmatpush2.bf16.msra.mxu1 %v4136_v46  ;;  %v4160_v0 = vld [vmem:[%s6005_s4 + $0x188] ss:$16 sps:$4 sm:$0xff]   ;;  %v4169_v46 = vld [vmem:[%s6005_s4 + $0x164] ss:$16 sps:$4 sm:$0xff]  }
  0x69   :  { %6391 = vst [vmem:[#allocation43_spill] sm:$0xff] %v4160_v0  ;;  %1052 = vmatprep.subr.bf16.mxu0 %v4145_v53  ;;  %1093 = vmatprep.subr.bf16.mxu1 %v4150_v54  ;;  %6392 = vst [vmem:[#allocation44_spill] sm:$0xff] %v4169_v46  ;;  %v4179_v53 = vld [vmem:[%s6005_s4 + $0x160] ss:$16 sps:$4 sm:$0xff]   ;;  %v4194_v54 = vld [vmem:[%s6005_s4 + $0x14c] ss:$16 sps:$4 sm:$0xff]  }
  0x6a   :  { %6394 = vst [vmem:[#allocation46_spill] sm:$0xff] %v4179_v53  ;;  %6397 = vst [vmem:[#allocation49_spill] sm:$0xff] %v4194_v54 }
  0x6c   :  { %1053 = vmatpush2.bf16.msra.mxu0 %v4155_v59  ;;  %1094 = vmatpush2.bf16.msra.mxu1 %v4160_v0  ;;  %v4184_v59 = vld [vmem:[%s6005_s4 + $0x168] ss:$16 sps:$4 sm:$0xff]   ;;  %v4189_v0 = vld [vmem:[%s6005_s4 + $0x144] ss:$16 sps:$4 sm:$0xff]  }
  0x6d   :  { %6395 = vst [vmem:[#allocation47_spill] sm:$0xff] %v4184_v59  ;;  %6396 = vst [vmem:[#allocation48_spill] sm:$0xff] %v4189_v0  ;;  %1054 = vmatprep.subr.bf16.mxu0 %v4169_v46  ;;  %1095 = vmatprep.subr.bf16.mxu1 %v4174_v43 }
  0x70   :  { %1055 = vmatpush2.bf16.msra.mxu0 %v4179_v53  ;;  %1096 = vmatpush2.bf16.msra.mxu1 %v4184_v59  ;;  %v4215_v53 = vld [vmem:[%s6005_s4 + $0x124] ss:$16 sps:$4 sm:$0xff]   ;;  %v4220_v59 = vld [vmem:[%s6005_s4 + $0x12c] ss:$16 sps:$4 sm:$0xff]  }
  0x71   :  { %1056 = vmatprep.subr.bf16.mxu0 %v4189_v0  ;;  %1097 = vmatprep.subr.bf16.mxu1 %v4194_v54  ;;  %6400 = vst [vmem:[#allocation52_spill] sm:$0xff] %v4215_v53  ;;  %6401 = vst [vmem:[#allocation53_spill] sm:$0xff] %v4220_v59  ;;  %v4227_v0 = vld [vmem:[%s6005_s4 + $0x120] ss:$16 sps:$4 sm:$0xff]   ;;  %v4232_v54 = vld [vmem:[%s6005_s4 + $0x128] ss:$16 sps:$4 sm:$0xff]  }
  0x72   :  { %6402 = vst [vmem:[#allocation54_spill] sm:$0xff] %v4227_v0  ;;  %6403 = vst [vmem:[#allocation55_spill] sm:$0xff] %v4232_v54 }
  0x74   :  { %1057 = vmatpush2.bf16.msra.mxu0 %v4203_v42  ;;  %1098 = vmatpush2.bf16.msra.mxu1 %v4208_v35  ;;  %v4239_v42 = vld [vmem:[%s6005_s4 + $0x104] ss:$16 sps:$4 sm:$0xff]   ;;  %v4244_v35 = vld [vmem:[%s6005_s4 + $0x10c] ss:$16 sps:$4 sm:$0xff]  }
  0x75   :  { %1058 = vmatprep.subr.bf16.mxu0 %v4215_v53  ;;  %1099 = vmatprep.subr.bf16.mxu1 %v4220_v59  ;;  %6404 = vst [vmem:[#allocation56_spill] sm:$0xff] %v4239_v42  ;;  %6405 = vst [vmem:[#allocation57_spill] sm:$0xff] %v4244_v35  ;;  %v4251_v53 = vld [vmem:[%s6005_s4 + $0x100] ss:$16 sps:$4 sm:$0xff]   ;;  %v4256_v59 = vld [vmem:[%s6005_s4 + $0x108] ss:$16 sps:$4 sm:$0xff]  }
  0x76   :  { %6406 = vst [vmem:[#allocation58_spill] sm:$0xff] %v4251_v53  ;;  %6407 = vst [vmem:[#allocation59_spill] sm:$0xff] %v4256_v59 }
  0x78   :  { %1059 = vmatpush2.bf16.msra.mxu0 %v4227_v0  ;;  %1100 = vmatpush2.bf16.msra.mxu1 %v4232_v54  ;;  %v70_v54 = vlaneseq }
  0x79   :  { %1060 = vmatprep.subr.bf16.mxu0 %v4239_v42  ;;  %1101 = vmatprep.subr.bf16.mxu1 %v4244_v35  ;;  %v68_v35 = vld [vmem:[%s6003_s2] sm:$0xf] }
  0x7a   :  { %v4264_v0 = vshrl.u32 %v70_v54, 7 }
  0x7c   :  { %1061 = vmatpush2.bf16.msra.mxu0 %v4251_v53  ;;  %1102 = vmatpush2.bf16.msra.mxu1 %v4256_v59  ;;  %6408 = vst [vmem:[#allocation60_spill] sm:$0xff] %v4264_v0  ;;  %v6104_v43 = vsub.s32 2, %v4264_v0  ;;  %v6113_v46 = vsub.s32 0, %v4264_v0  ;;  %v6409_v31 = vsub.s32 3, %v4264_v0 }
  0x7d   :  { %1136 = vmatprep.subr.bf16.mxu0 %v3744_v22  ;;  %1177 = vmatprep.subr.bf16.mxu1 %v3746_v23  ;;  %v6120_v23 = vsub.s32 1, %v4264_v0 }
  0x7e   :  { %v4278_v22 = vrot.slane %v68_v35, %v6104_v43  ;;  %v73_v32 = vrot.slane %v68_v35, %v6113_v46  ;;  %v4289_v24 = vrot.slane %v68_v35, %v6409_v31 }
  0x7f   :  { %v77_v19 = vrot.slane %v68_v35, %v6120_v23 }
  0xde   :  { %v4272_v53 = vpop.f32.mrf.mxu0  ;;  %v4274_v59 = vpop.f32.mrf.mxu1 }
  0xe0   :  { %v4281_v54 = vpop.f32.mrf.mxu0  ;;  %v4283_v42 = vpop.f32.mrf.mxu1 }
  0xe2   :  { %v213_v21 = vpop.f32.mrf.mxu0  ;;  %v286_v20 = vpop.f32.mrf.mxu1 }
  0xe3   :  { %v4293_v43 = vadd.f32 %v213_v21, %v73_v32  ;;  %v4296_v18 = vadd.f32 %v286_v20, %v4278_v22 }
  0xe4   :  { %v215_v17 = vpop.f32.mrf.mxu0  ;;  %v288_v16 = vpop.f32.mrf.mxu1 }
  0xe5   :  { %6410 = vst [vmem:[#allocation61_spill] sm:$0xff] %v4293_v43  ;;  %6411 = vst [vmem:[#allocation62_spill] sm:$0xff] %v4296_v18  ;;  %v4298_v15 = vadd.f32 %v215_v17, %v77_v19  ;;  %v4301_v46 = vadd.f32 %v288_v16, %v4289_v24 }
  0xe6   :  { %v219_v14 = vpop.f32.mrf.mxu0  ;;  %v292_v31 = vpop.f32.mrf.mxu1 }
  0xe7   :  { %6412 = vst [vmem:[#allocation63_spill] sm:$0xff] %v4298_v15  ;;  %6413 = vst [vmem:[#allocation64_spill] sm:$0xff] %v4301_v46  ;;  %v4303_v13 = vadd.f32 %v219_v14, %v73_v32  ;;  %v4306_v12 = vadd.f32 %v292_v31, %v4278_v22 }
  0xe8   :  { %v221_v35 = vpop.f32.mrf.mxu0  ;;  %v294_v21 = vpop.f32.mrf.mxu1 }
  0xe9   :  { %6414 = vst [vmem:[#allocation65_spill] sm:$0xff] %v4303_v13  ;;  %6415 = vst [vmem:[#allocation66_spill] sm:$0xff] %v4306_v12  ;;  %v4308_v23 = vadd.f32 %v221_v35, %v77_v19  ;;  %v4311_v20 = vadd.f32 %v294_v21, %v4289_v24 }
  0xea   :  { %v223_v18 = vpop.f32.mrf.mxu0  ;;  %v296_v17 = vpop.f32.mrf.mxu1 }
  0xeb   :  { %6416 = vst [vmem:[#allocation67_spill] sm:$0xff] %v4308_v23  ;;  %6417 = vst [vmem:[#allocation68_spill] sm:$0xff] %v4311_v20  ;;  %v4313_v15 = vadd.f32 %v223_v18, %v73_v32  ;;  %v4316_v16 = vadd.f32 %v296_v17, %v4278_v22 }
  0xec   :  { %v225_v46 = vpop.f32.mrf.mxu0  ;;  %v298_v14 = vpop.f32.mrf.mxu1 }
  0xed   :  { %6418 = vst [vmem:[#allocation69_spill] sm:$0xff] %v4313_v15  ;;  %6419 = vst [vmem:[#allocation70_spill] sm:$0xff] %v4316_v16  ;;  %v4318_v13 = vadd.f32 %v225_v46, %v77_v19  ;;  %v4321_v31 = vadd.f32 %v298_v14, %v4289_v24 }
  0xee   :  { %v229_v12 = vpop.f32.mrf.mxu0  ;;  %v302_v35 = vpop.f32.mrf.mxu1 }
  0xef   :  { %6420 = vst [vmem:[#allocation71_spill] sm:$0xff] %v4318_v13  ;;  %6421 = vst [vmem:[#allocation72_spill] sm:$0xff] %v4321_v31  ;;  %v4323_v23 = vadd.f32 %v229_v12, %v73_v32  ;;  %v4326_v21 = vadd.f32 %v302_v35, %v4278_v22 }
  0xf0   :  { %v231_v20 = vpop.f32.mrf.mxu0  ;;  %v304_v18 = vpop.f32.mrf.mxu1 }
  0xf1   :  { %6422 = vst [vmem:[#allocation73_spill] sm:$0xff] %v4323_v23  ;;  %6423 = vst [vmem:[#allocation74_spill] sm:$0xff] %v4326_v21  ;;  %v4328_v15 = vadd.f32 %v231_v20, %v77_v19  ;;  %v4331_v17 = vadd.f32 %v304_v18, %v4289_v24 }
  0xf2   :  { %v233_v16 = vpop.f32.mrf.mxu0  ;;  %v306_v46 = vpop.f32.mrf.mxu1 }
  0xf3   :  { %6424 = vst [vmem:[#allocation75_spill] sm:$0xff] %v4328_v15  ;;  %6425 = vst [vmem:[#allocation76_spill] sm:$0xff] %v4331_v17  ;;  %v4333_v13 = vadd.f32 %v233_v16, %v73_v32  ;;  %v4336_v14 = vadd.f32 %v306_v46, %v4278_v22 }
  0xf4   :  { %v235_v31 = vpop.f32.mrf.mxu0  ;;  %v308_v12 = vpop.f32.mrf.mxu1 }
  0xf5   :  { %6426 = vst [vmem:[#allocation77_spill] sm:$0xff] %v4333_v13  ;;  %6427 = vst [vmem:[#allocation78_spill] sm:$0xff] %v4336_v14  ;;  %v4338_v23 = vadd.f32 %v235_v31, %v77_v19  ;;  %v4341_v35 = vadd.f32 %v308_v12, %v4289_v24 }
  0xf6   :  { %v239_v21 = vpop.f32.mrf.mxu0  ;;  %v312_v20 = vpop.f32.mrf.mxu1 }
  0xf7   :  { %6428 = vst [vmem:[#allocation79_spill] sm:$0xff] %v4338_v23  ;;  %6429 = vst [vmem:[#allocation80_spill] sm:$0xff] %v4341_v35  ;;  %v4343_v15 = vadd.f32 %v239_v21, %v73_v32  ;;  %v4346_v18 = vadd.f32 %v312_v20, %v4278_v22 }
  0xf8   :  { %v241_v17 = vpop.f32.mrf.mxu0  ;;  %v314_v16 = vpop.f32.mrf.mxu1 }
  0xf9   :  { %6430 = vst [vmem:[#allocation81_spill] sm:$0xff] %v4343_v15  ;;  %6431 = vst [vmem:[#allocation82_spill] sm:$0xff] %v4346_v18  ;;  %v4348_v13 = vadd.f32 %v241_v17, %v77_v19  ;;  %v4351_v46 = vadd.f32 %v314_v16, %v4289_v24  ;;  %v210_v15 = vadd.f32 %v4272_v53, %v73_v32 }
  0xfa   :  { %v243_v14 = vpop.f32.mrf.mxu0  ;;  %v316_v31 = vpop.f32.mrf.mxu1  ;;  %v212_v16 = vadd.f32 %v4281_v54, %v77_v19  ;;  %v285_v53 = vadd.f32 %v4283_v42, %v4289_v24 }
  0xfb   :  { %6432 = vst [vmem:[#allocation83_spill] sm:$0xff] %v4348_v13  ;;  %6433 = vst [vmem:[#allocation84_spill] sm:$0xff] %v4351_v46  ;;  %v4353_v23 = vadd.f32 %v243_v14, %v73_v32  ;;  %v4356_v12 = vadd.f32 %v316_v31, %v4278_v22 }
  0xfc   :  { %v245_v35 = vpop.f32.mrf.mxu0  ;;  %v318_v21 = vpop.f32.mrf.mxu1 }
  0xfd   :  { %6434 = vst [vmem:[#allocation85_spill] sm:$0xff] %v4353_v23  ;;  %6435 = vst [vmem:[#allocation86_spill] sm:$0xff] %v4356_v12  ;;  %v4359_v20 = vadd.f32 %v245_v35, %v77_v19  ;;  %v4362_v18 = vadd.f32 %v318_v21, %v4289_v24  ;;  %v283_v21 = vadd.f32 %v4274_v59, %v4278_v22 }
  0xfe   :  { %v633_v17 = vpop.f32.mrf.mxu0  ;;  %v674_v13 = vpop.f32.mrf.mxu1 }
  0xff   :  { %6436 = vst [vmem:[#allocation87_spill] sm:$0xff] %v4359_v20  ;;  %6437 = vst [vmem:[#allocation88_spill] sm:$0xff] %v4362_v18  ;;  %v681_v46 = vadd.f32 %v633_v17, %v210_v15  ;;  %v683_v54 = vadd.f32 %v674_v13, %v283_v21  ;;  %v6472_v21 = vld [vmem:[#allocation38_spill] sm:$0xff]  ;;  %v6490_v18 = vld [vmem:[#allocation56_spill] sm:$0xff] }
 0x100   :  { %v635_v43 = vpop.f32.mrf.mxu0  ;;  %v676_v14 = vpop.f32.mrf.mxu1  ;;  %v6491_v20 = vld [vmem:[#allocation57_spill] sm:$0xff] }
 0x101   :  { %v2844_v23 = vmul.f32 -1.442695, %v681_v46  ;;  %v682_v0 = vadd.f32 %v635_v43, %v212_v16  ;;  %v684_v35 = vadd.f32 %v676_v14, %v285_v53  ;;  %v6470_v53 = vld [vmem:[#allocation36_spill] sm:$0xff] }
 0x102   :  { %v637_v31 = vpop.f32.mrf.mxu0  ;;  %v678_v12 = vpop.f32.mrf.mxu1 }
 0x103   :  { %3171 = vpow2.f32 %v2844_v23  ;;  %v2845_v11 = vmul.f32 -1.442695, %v682_v0  ;;  %v2846_v19 = vmul.f32 -1.442695, %v684_v35  ;;  %v6438_v31 = vmov 0   ;;  %v6471_v35 = vld [vmem:[#allocation37_spill] sm:$0xff] }
 0x104   :  { %v638_v10 = vpop.f32.mrf.mxu0  ;;  %v679_v32 = vpop.f32.mrf.mxu1 }
 0x105   :  { %3173 = vpow2.f32 %v2845_v11  ;;  %v6469_v32 = vld [vmem:[#allocation35_spill] sm:$0xff] }
 0x106   :  { %3175 = vpow2.f32 %v2846_v19  ;;  %v6473_v19 = vld [vmem:[#allocation39_spill] sm:$0xff] }
 0x110   :  { %v3172_v15 = vpop.eup %3171 }
 0x111   :  { %v688_v17 = vadd.f32 1.0, %v3172_v15  ;;  %v6474_v15 = vld [vmem:[#allocation40_spill] sm:$0xff] }
 0x112   :  { %v3174_v46 = vpop.eup %3173 }
 0x113   :  { %3177 = vrcp.f32 %v688_v17  ;;  %v694_v43 = vadd.f32 1.0, %v3174_v46  ;;  %v3176_v0 = vpop.eup %3175  ;;  %v6476_v17 = vld [vmem:[#allocation42_spill] sm:$0xff]  ;;  %v6477_v46 = vld [vmem:[#allocation43_spill] sm:$0xff] }
 0x114   :  { %3179 = vtanh.f32 %v683_v54  ;;  %v701_v12 = vadd.f32 1.0, %v3176_v0  ;;  %v6475_v54 = vld [vmem:[#allocation41_spill] sm:$0xff] }
 0x115   :  { %3181 = vrcp.f32 %v694_v43  ;;  %v6478_v43 = vld [vmem:[#allocation44_spill] sm:$0xff]  ;;  %v6479_v0 = vld [vmem:[#allocation45_spill] sm:$0xff] }
 0x116   :  { %3183 = vrcp.f32 %v701_v12  ;;  %v6483_v12 = vld [vmem:[#allocation49_spill] sm:$0xff] }
 0x120   :  { %v3178_v10 = vpop.eup %3177 }
 0x121   :  { %v3180_v11 = vpop.eup %3179 }
 0x122   :  { %v3182_v23 = vpop.eup %3181  ;;  %v705_v42 = vmul.f32 %v3180_v11, %v3178_v10  ;;  %v6480_v10 = vld [vmem:[#allocation46_spill] sm:$0xff]  ;;  %v6481_v11 = vld [vmem:[#allocation47_spill] sm:$0xff] }
 0x123   :  { %v704_v24 = vmul.f32 0.0, %v3182_v23  ;;  %v3184_v13 = vpop.eup %3183  ;;  %v6482_v23 = vld [vmem:[#allocation48_spill] sm:$0xff] }
 0x125   :  { %v4369_v16 = vadd.f32 %v705_v42, %v704_v24  ;;  %v6484_v24 = vld [vmem:[#allocation50_spill] sm:$0xff]  ;;  %v6485_v42 = vld [vmem:[#allocation51_spill] sm:$0xff] }
 0x127   :  { %3185 = vtanh.f32 %v4369_v16 }
 0x134   :  { %v3186_v59 = vpop.eup %3185 }
 0x135   :  { %v708_v22 = vmul.f32 %v3186_v59, %v3184_v13  ;;  %v6486_v13 = vld [vmem:[#allocation52_spill] sm:$0xff]  ;;  %v6487_v59 = vld [vmem:[#allocation53_spill] sm:$0xff] }
 0x137   :  { %v709_v14 = vpack.c.bf16 %v708_v22, %v708_v22  ;;  %v6488_v22 = vld [vmem:[#allocation54_spill] sm:$0xff] }
 0x139   :  { %1063 = vmatmul.mubr.bf16.vlgmr.msra.gmra.mxu0 %v709_v14  ;;  %1104 = vmatmul.mubr.bf16.vlgmr.msra.gmra.mxu1 %v709_v14 }
 0x13a   :  { %1137 = vmatpush1.bf16.msra.mxu0 %v3748_v25  ;;  %1178 = vmatpush1.bf16.msra.mxu1 %v3750_v26  ;;  %v6439_v25 = vld [vmem:[#allocation5_spill] sm:$0xff]  ;;  %v6440_v26 = vld [vmem:[#allocation6_spill] sm:$0xff] }
 0x13b   :  { %1138 = vmatprep.subr.bf16.mxu0 %v3752_v27  ;;  %1179 = vmatprep.subr.bf16.mxu1 %v3756_v28  ;;  %v6441_v27 = vld [vmem:[#allocation7_spill] sm:$0xff]  ;;  %v6442_v28 = vld [vmem:[#allocation8_spill] sm:$0xff] }
 0x13c   :  { %1168 = vmatprep.mubr.bf16.mxu0 %v6438_v31  ;;  %1209 = vmatprep.mubr.bf16.mxu1 %v6438_v31 }
 0x13e   :  { %1139 = vmatpush1.bf16.msra.mxu0 %v3758_v29  ;;  %1180 = vmatpush1.bf16.msra.mxu1 %v3762_v30  ;;  %v6443_v29 = vld [vmem:[#allocation9_spill] sm:$0xff]  ;;  %v6444_v30 = vld [vmem:[#allocation10_spill] sm:$0xff] }
 0x13f   :  { %1140 = vmatprep.subr.bf16.mxu0 %v3774_v33  ;;  %1181 = vmatprep.subr.bf16.mxu1 %v3776_v34  ;;  %v6445_v33 = vld [vmem:[#allocation11_spill] sm:$0xff]  ;;  %v6446_v34 = vld [vmem:[#allocation12_spill] sm:$0xff] }
 0x142   :  { %1141 = vmatpush1.bf16.msra.mxu0 %v3780_v36  ;;  %1182 = vmatpush1.bf16.msra.mxu1 %v3784_v37  ;;  %v6447_v36 = vld [vmem:[#allocation13_spill] sm:$0xff]  ;;  %v6448_v37 = vld [vmem:[#allocation14_spill] sm:$0xff] }
 0x143   :  { %1142 = vmatprep.subr.bf16.mxu0 %v3788_v38  ;;  %1183 = vmatprep.subr.bf16.mxu1 %v3790_v39  ;;  %v6449_v38 = vld [vmem:[#allocation15_spill] sm:$0xff]  ;;  %v6450_v39 = vld [vmem:[#allocation16_spill] sm:$0xff] }
 0x146   :  { %1143 = vmatpush1.bf16.msra.mxu0 %v3794_v40  ;;  %1184 = vmatpush1.bf16.msra.mxu1 %v3796_v41  ;;  %v6451_v40 = vld [vmem:[#allocation17_spill] sm:$0xff]  ;;  %v6452_v41 = vld [vmem:[#allocation18_spill] sm:$0xff] }
 0x147   :  { %1144 = vmatprep.subr.bf16.mxu0 %v3806_v44  ;;  %1185 = vmatprep.subr.bf16.mxu1 %v3810_v45  ;;  %v6453_v44 = vld [vmem:[#allocation19_spill] sm:$0xff]  ;;  %v6454_v45 = vld [vmem:[#allocation20_spill] sm:$0xff] }
 0x14a   :  { %1145 = vmatpush1.bf16.msra.mxu0 %v3814_v47  ;;  %1186 = vmatpush1.bf16.msra.mxu1 %v3818_v48  ;;  %v6455_v47 = vld [vmem:[#allocation21_spill] sm:$0xff]  ;;  %v6456_v48 = vld [vmem:[#allocation22_spill] sm:$0xff] }
 0x14b   :  { %1146 = vmatprep.subr.bf16.mxu0 %v3822_v49  ;;  %1187 = vmatprep.subr.bf16.mxu1 %v3824_v50  ;;  %v6457_v49 = vld [vmem:[#allocation23_spill] sm:$0xff]  ;;  %v6458_v50 = vld [vmem:[#allocation24_spill] sm:$0xff] }
 0x14e   :  { %1147 = vmatpush1.bf16.msra.mxu0 %v3826_v51  ;;  %1188 = vmatpush1.bf16.msra.mxu1 %v3828_v52  ;;  %v6459_v51 = vld [vmem:[#allocation25_spill] sm:$0xff]  ;;  %v6460_v52 = vld [vmem:[#allocation26_spill] sm:$0xff] }
 0x14f   :  { %1148 = vmatprep.subr.bf16.mxu0 %v3838_v55  ;;  %1189 = vmatprep.subr.bf16.mxu1 %v3840_v56  ;;  %v6461_v55 = vld [vmem:[#allocation27_spill] sm:$0xff]  ;;  %v6462_v56 = vld [vmem:[#allocation28_spill] sm:$0xff] }
 0x152   :  { %1149 = vmatpush1.bf16.msra.mxu0 %v3848_v57  ;;  %1190 = vmatpush1.bf16.msra.mxu1 %v3850_v58  ;;  %v6463_v57 = vld [vmem:[#allocation29_spill] sm:$0xff]  ;;  %v6464_v58 = vld [vmem:[#allocation30_spill] sm:$0xff] }
 0x153   :  { %1150 = vmatprep.subr.bf16.mxu0 %v3852_v60  ;;  %1191 = vmatprep.subr.bf16.mxu1 %v3854_v61  ;;  %v6465_v60 = vld [vmem:[#allocation31_spill] sm:$0xff]  ;;  %v6466_v61 = vld [vmem:[#allocation32_spill] sm:$0xff] }
 0x156   :  { %1151 = vmatpush1.bf16.msra.mxu0 %v3860_v62  ;;  %1192 = vmatpush1.bf16.msra.mxu1 %v3862_v63  ;;  %v6467_v62 = vld [vmem:[#allocation33_spill] sm:$0xff]  ;;  %v6468_v63 = vld [vmem:[#allocation34_spill] sm:$0xff] }
 0x157   :  { %1248 = vmatprep.subr.bf16.mxu0 %v3881_v1  ;;  %1289 = vmatprep.subr.bf16.mxu1 %v3886_v2 }
 0x159   :  { %1169 = vmatmul.mubr.bf16.vlgmr.msra.gmra.mxu0 %v709_v14  ;;  %1210 = vmatmul.mubr.bf16.vlgmr.msra.gmra.mxu1 %v709_v14  ;;  %v6489_v14 = vld [vmem:[#allocation55_spill] sm:$0xff] }
 0x15a   :  { %1249 = vmatpush1.bf16.msra.mxu0 %v3891_v3  ;;  %1290 = vmatpush1.bf16.msra.mxu1 %v3896_v4 }
 0x15b   :  { %1250 = vmatprep.subr.bf16.mxu0 %v3905_v5  ;;  %1291 = vmatprep.subr.bf16.mxu1 %v3910_v6 }
 0x15e   :  { %1251 = vmatpush1.bf16.msra.mxu0 %v3915_v7  ;;  %1292 = vmatpush1.bf16.msra.mxu1 %v3920_v8 }
 0x15f   :  { %1252 = vmatprep.subr.bf16.mxu0 %v3929_v9  ;;  %1293 = vmatprep.subr.bf16.mxu1 %v6439_v25 }
 0x162   :  { %1253 = vmatpush1.bf16.msra.mxu0 %v6440_v26  ;;  %1294 = vmatpush1.bf16.msra.mxu1 %v6441_v27 }
 0x163   :  { %1254 = vmatprep.subr.bf16.mxu0 %v6442_v28  ;;  %1295 = vmatprep.subr.bf16.mxu1 %v6443_v29 }
 0x166   :  { %1255 = vmatpush1.bf16.msra.mxu0 %v6444_v30  ;;  %1296 = vmatpush1.bf16.msra.mxu1 %v6445_v33 }
 0x167   :  { %1256 = vmatprep.subr.bf16.mxu0 %v6446_v34  ;;  %1297 = vmatprep.subr.bf16.mxu1 %v6447_v36 }
 0x16a   :  { %1257 = vmatpush1.bf16.msra.mxu0 %v6448_v37  ;;  %1298 = vmatpush1.bf16.msra.mxu1 %v6449_v38 }
 0x16b   :  { %1258 = vmatprep.subr.bf16.mxu0 %v6450_v39  ;;  %1299 = vmatprep.subr.bf16.mxu1 %v6451_v40 }
 0x16e   :  { %1259 = vmatpush1.bf16.msra.mxu0 %v6452_v41  ;;  %1300 = vmatpush1.bf16.msra.mxu1 %v6453_v44 }
 0x16f   :  { %1260 = vmatprep.subr.bf16.mxu0 %v6454_v45  ;;  %1301 = vmatprep.subr.bf16.mxu1 %v6455_v47 }
 0x172   :  { %1261 = vmatpush1.bf16.msra.mxu0 %v6456_v48  ;;  %1302 = vmatpush1.bf16.msra.mxu1 %v6457_v49 }
 0x173   :  { %1262 = vmatprep.subr.bf16.mxu0 %v6458_v50  ;;  %1303 = vmatprep.subr.bf16.mxu1 %v6459_v51 }
 0x176   :  { %1263 = vmatpush1.bf16.msra.mxu0 %v6460_v52  ;;  %1304 = vmatpush1.bf16.msra.mxu1 %v6461_v55 }
 0x177   :  { %1264 = vmatprep.subr.bf16.mxu0 %v6462_v56  ;;  %1305 = vmatprep.subr.bf16.mxu1 %v6463_v57 }
 0x17a   :  { %1265 = vmatpush2.bf16.msra.mxu0 %v6464_v58  ;;  %1306 = vmatpush2.bf16.msra.mxu1 %v6465_v60 }
 0x17b   :  { %1266 = vmatprep.subr.bf16.mxu0 %v6466_v61  ;;  %1307 = vmatprep.subr.bf16.mxu1 %v6467_v62 }
 0x17e   :  { %1267 = vmatpush2.bf16.msra.mxu0 %v6468_v63  ;;  %1308 = vmatpush2.bf16.msra.mxu1 %v6469_v32 }
 0x17f   :  { %1268 = vmatprep.subr.bf16.mxu0 %v6470_v53  ;;  %1309 = vmatprep.subr.bf16.mxu1 %v6471_v35 }
 0x182   :  { %1269 = vmatpush2.bf16.msra.mxu0 %v6472_v21  ;;  %1310 = vmatpush2.bf16.msra.mxu1 %v6473_v19 }
 0x183   :  { %1270 = vmatprep.subr.bf16.mxu0 %v6474_v15  ;;  %1311 = vmatprep.subr.bf16.mxu1 %v6475_v54 }
 0x186   :  { %1271 = vmatpush2.bf16.msra.mxu0 %v6476_v17  ;;  %1312 = vmatpush2.bf16.msra.mxu1 %v6477_v46 }
 0x187   :  { %1272 = vmatprep.subr.bf16.mxu0 %v6478_v43  ;;  %1313 = vmatprep.subr.bf16.mxu1 %v6479_v0 }
 0x18a   :  { %1273 = vmatpush2.bf16.msra.mxu0 %v6480_v10  ;;  %1314 = vmatpush2.bf16.msra.mxu1 %v6481_v11  ;;  %v6492_v11 = vld [vmem:[#allocation58_spill] sm:$0xff] }
 0x18b   :  { %1274 = vmatprep.subr.bf16.mxu0 %v6482_v23  ;;  %1315 = vmatprep.subr.bf16.mxu1 %v6483_v12  ;;  %v6493_v23 = vld [vmem:[#allocation59_spill] sm:$0xff] }
 0x18c   :  { %v4468_v12 = vld [vmem:[#allocation2 + $0xe4] ss:$16 sps:$4 sm:$0xff]  }
 0x18d   :  { %6494 = vst [vmem:[#allocation5_spill] sm:$0xff] %v4468_v12 }
 0x18e   :  { %1275 = vmatpush2.bf16.msra.mxu0 %v6484_v24  ;;  %1316 = vmatpush2.bf16.msra.mxu1 %v6485_v42  ;;  %v4471_v42 = vld [vmem:[#allocation2 + $0xec] ss:$16 sps:$4 sm:$0xff]  }
 0x18f   :  { %1276 = vmatprep.subr.bf16.mxu0 %v6486_v13  ;;  %1317 = vmatprep.subr.bf16.mxu1 %v6487_v59  ;;  %6495 = vst [vmem:[#allocation6_spill] sm:$0xff] %v4471_v42 }
 0x192   :  { %1277 = vmatpush2.bf16.msra.mxu0 %v6488_v22  ;;  %1318 = vmatpush2.bf16.msra.mxu1 %v6489_v14  ;;  %v417_v14 = vld [vmem:[%s6006_s5] sm:$0xf]  ;;  %v6496_v22 = vld [vmem:[#allocation60_spill] sm:$0xff] }
 0x193   :  { %1278 = vmatprep.subr.bf16.mxu0 %v6490_v18  ;;  %1319 = vmatprep.subr.bf16.mxu1 %v6491_v20  ;;  %v6497_v18 = vsub.s32 0, %v6496_v22  ;;  %v6501_v15 = vsub.s32 3, %v6496_v22 }
 0x195   :  { %v4479_v59 = vrot.slane %v417_v14, %v6497_v18 }
 0x196   :  { %1279 = vmatpush2.bf16.msra.mxu0 %v6492_v11  ;;  %1320 = vmatpush2.bf16.msra.mxu1 %v6493_v23  ;;  %v6499_v11 = vsub.s32 1, %v6496_v22 }
 0x197   :  { %1354 = vmatprep.subr.bf16.mxu0 %v4468_v12  ;;  %1395 = vmatprep.subr.bf16.mxu1 %v4471_v42  ;;  %6498 = vst [vmem:[#allocation7_spill] sm:$0xff] %v4479_v59 }
 0x198   :  { %v4483_v20 = vrot.slane %v417_v14, %v6499_v11  ;;  %v4489_v11 = vrot.slane %v417_v14, %v6501_v15 }
 0x19a   :  { %6500 = vst [vmem:[#allocation8_spill] sm:$0xff] %v4483_v20  ;;  %6502 = vst [vmem:[#allocation9_spill] sm:$0xff] %v4489_v11 }
 0x1f9   :  { %v1064_v23 = vpop.f32.mrf.mxu0  ;;  %v1105_v13 = vpop.f32.mrf.mxu1 }
 0x1fa   :  { %v1065_v12 = vadd.f32 %v1064_v23, %v4479_v59  ;;  %v6503_v23 = vsub.s32 2, %v6496_v22 }
 0x1fb   :  { %v1066_v24 = vpop.f32.mrf.mxu0  ;;  %v1107_v10 = vpop.f32.mrf.mxu1 }
 0x1fc   :  { %v2911_v0 = vmul.f32 -1.442695, %v1065_v12  ;;  %v1067_v42 = vadd.f32 %v1066_v24, %v4483_v20  ;;  %v1108_v19 = vadd.f32 %v1107_v10, %v4489_v11  ;;  %v4494_v59 = vrot.slane %v417_v14, %v6503_v23  ;;  %v6506_v11 = vld [vmem:[#allocation63_spill] sm:$0xff] }
 0x1fd   :  { %v1068_v43 = vpop.f32.mrf.mxu0  ;;  %v1109_v46 = vpop.f32.mrf.mxu1 }
 0x1fe   :  { %3187 = vpow2.f32 %v2911_v0  ;;  %v2912_v17 = vmul.f32 -1.442695, %v1067_v42  ;;  %6504 = vst [vmem:[#allocation10_spill] sm:$0xff] %v4494_v59  ;;  %v2913_v12 = vmul.f32 -1.442695, %v1108_v19  ;;  %v1106_v43 = vadd.f32 %v1105_v13, %v4494_v59  ;;  %v6505_v42 = vld [vmem:[#allocation61_spill] sm:$0xff] }
 0x1ff   :  { %v1069_v54 = vpop.f32.mrf.mxu0  ;;  %v1110_v18 = vpop.f32.mrf.mxu1 }
 0x200   :  { %3189 = vpow2.f32 %v2912_v17 }
 0x201   :  { %3191 = vpow2.f32 %v2913_v12 }
 0x20b   :  { %v3188_v21 = vpop.eup %3187 }
 0x20c   :  { %v1115_v46 = vadd.f32 1.0, %v3188_v21 }
 0x20d   :  { %v3190_v0 = vpop.eup %3189 }
 0x20e   :  { %3193 = vrcp.f32 %v1115_v46  ;;  %v1121_v54 = vadd.f32 1.0, %v3190_v0  ;;  %v3192_v24 = vpop.eup %3191 }
 0x20f   :  { %3195 = vtanh.f32 %v1106_v43  ;;  %v1128_v21 = vadd.f32 1.0, %v3192_v24 }
 0x210   :  { %3197 = vrcp.f32 %v1121_v54 }
 0x219   :  { %v1170_v17 = vpop.f32.mrf.mxu0  ;;  %v1211_v15 = vpop.f32.mrf.mxu1 }
 0x21a   :  { %v1218_v10 = vadd.f32 %v1170_v17, %v6505_v42  ;;  %v6507_v17 = vld [vmem:[#allocation64_spill] sm:$0xff] }
 0x21b   :  { %v3194_v18 = vpop.eup %3193  ;;  %v1172_v22 = vpop.f32.mrf.mxu0 }
 0x21c   :  { %v1213_v14 = vpop.f32.mrf.mxu1  ;;  %v3196_v23 = vpop.eup %3195  ;;  %v2914_v19 = vmul.f32 -1.442695, %v1218_v10  ;;  %v1219_v20 = vadd.f32 %v1172_v22, %v6506_v11  ;;  %v6508_v10 = vld [vmem:[#allocation62_spill] sm:$0xff] }
 0x21d   :  { %v3198_v13 = vpop.eup %3197  ;;  %v1174_v59 = vpop.f32.mrf.mxu0  ;;  %v1132_v0 = vmul.f32 %v3196_v23, %v3194_v18  ;;  %v1221_v42 = vadd.f32 %v1213_v14, %v6507_v17  ;;  %v1220_v11 = vadd.f32 %v1211_v15, %v6508_v10 }
 0x21e   :  { %v1215_v12 = vpop.f32.mrf.mxu1  ;;  %v1131_v46 = vmul.f32 0.0, %v3198_v13  ;;  %3199 = vpow2.f32 %v2914_v19  ;;  %v2915_v43 = vmul.f32 -1.442695, %v1219_v20 }
 0x21f   :  { %v1175_v54 = vpop.f32.mrf.mxu0  ;;  %v2916_v22 = vmul.f32 -1.442695, %v1221_v42 }
 0x220   :  { %v1216_v35 = vpop.f32.mrf.mxu1  ;;  %v4499_v53 = vadd.f32 %v1132_v0, %v1131_v46  ;;  %3201 = vpow2.f32 %v2915_v43 }
 0x221   :  { %3203 = vrcp.f32 %v1128_v21 }
 0x222   :  { %3205 = vtanh.f32 %v4499_v53 }
 0x223   :  { %3207 = vtanh.f32 %v1220_v11 }
 0x224   :  { %3209 = vpow2.f32 %v2916_v22  ;;  %v4512_v22 = vld [vmem:[#allocation2 + $0xe0] ss:$16 sps:$4 sm:$0xff]  }
 0x22b   :  { %v3200_v24 = vpop.eup %3199 }
 0x22c   :  { %v1225_v59 = vadd.f32 1.0, %v3200_v24  ;;  %v4515_v24 = vld [vmem:[#allocation2 + $0xe8] ss:$16 sps:$4 sm:$0xff]  }
 0x22d   :  { %v3202_v13 = vpop.eup %3201 }
 0x22e   :  { %v3204_v18 = vpop.eup %3203  ;;  %3211 = vrcp.f32 %v1225_v59  ;;  %v1231_v20 = vadd.f32 1.0, %v3202_v13  ;;  %v4521_v59 = vld [vmem:[#allocation2 + $0xcc] ss:$16 sps:$4 sm:$0xff]   ;;  %v4526_v13 = vld [vmem:[#allocation2 + $0xc0] ss:$16 sps:$4 sm:$0xff]  }
 0x22f   :  { %v3206_v35 = vpop.eup %3205 }
 0x230   :  { %3213 = vrcp.f32 %v1231_v20  ;;  %v1135_v23 = vmul.f32 %v3206_v35, %v3204_v18  ;;  %v3208_v21 = vpop.eup %3207  ;;  %v4529_v18 = vld [vmem:[#allocation2 + $0xc8] ss:$16 sps:$4 sm:$0xff]   ;;  %v4532_v20 = vld [vmem:[#allocation2 + $0xa4] ss:$16 sps:$4 sm:$0xff]   ;;  %v4535_v35 = vld [vmem:[#allocation2 + $0xac] ss:$16 sps:$4 sm:$0xff]  }
 0x231   :  { %v3210_v12 = vpop.eup %3209 }
 0x232   :  { %v1247_v19 = vpack.c.bf16 %v1135_v23, %v1135_v23  ;;  %v1238_v0 = vadd.f32 1.0, %v3210_v12  ;;  %v4538_v23 = vld [vmem:[#allocation2 + $0xa0] ss:$16 sps:$4 sm:$0xff]   ;;  %v4547_v12 = vld [vmem:[#allocation2 + $0x8c] ss:$16 sps:$4 sm:$0xff]  }
 0x234   :  { %1280 = vmatprep.mubr.bf16.mxu0 %v1247_v19  ;;  %1321 = vmatprep.mubr.bf16.mxu1 %v1247_v19  ;;  %3215 = vrcp.f32 %v1238_v0  ;;  %v4541_v19 = vld [vmem:[#allocation2 + $0xa8] ss:$16 sps:$4 sm:$0xff]   ;;  %v4559_v0 = vld [vmem:[#allocation2 + $0x6c] ss:$16 sps:$4 sm:$0xff]  }
 0x235   :  { %6510 = vst [vmem:[#allocation12_spill] sm:$0xff] %v4559_v0 }
 0x23b   :  { %v3212_v14 = vpop.eup %3211 }
 0x23c   :  { %v1242_v46 = vmul.f32 %v3212_v14, %v3208_v21  ;;  %v4544_v21 = vld [vmem:[#allocation2 + $0x84] ss:$16 sps:$4 sm:$0xff]   ;;  %v4550_v14 = vld [vmem:[#allocation2 + $0x80] ss:$16 sps:$4 sm:$0xff]  }
 0x23d   :  { %v3214_v15 = vpop.eup %3213 }
 0x23e   :  { %v1241_v43 = vmul.f32 %v3214_v15, %v4369_v16  ;;  %v4518_v16 = vld [vmem:[#allocation2 + $0xc4] ss:$16 sps:$4 sm:$0xff]  }
 0x23f   :  { %v4556_v15 = vld [vmem:[#allocation2 + $0x64] ss:$16 sps:$4 sm:$0xff]  }
 0x240   :  { %v4505_v54 = vadd.f32 %v1242_v46, %v1241_v43  ;;  %v4553_v46 = vld [vmem:[#allocation2 + $0x88] ss:$16 sps:$4 sm:$0xff]   ;;  %6509 = vst [vmem:[#allocation11_spill] sm:$0xff] %v4556_v15  ;;  %v4562_v43 = vld [vmem:[#allocation2 + $0x60] ss:$16 sps:$4 sm:$0xff]  }
 0x241   :  { %v3216_v17 = vpop.eup %3215  ;;  %6511 = vst [vmem:[#allocation13_spill] sm:$0xff] %v4562_v43 }
 0x242   :  { %3217 = vtanh.f32 %v4505_v54 }
 0x24f   :  { %v3218_v42 = vpop.eup %3217 }
 0x250   :  { %v1245_v10 = vmul.f32 %v3218_v42, %v3216_v17  ;;  %v4565_v17 = vld [vmem:[#allocation2 + $0x68] ss:$16 sps:$4 sm:$0xff]   ;;  %v4568_v42 = vld [vmem:[#allocation2 + $0x44] ss:$16 sps:$4 sm:$0xff]  }
 0x251   :  { %6512 = vst [vmem:[#allocation14_spill] sm:$0xff] %v4565_v17  ;;  %6513 = vst [vmem:[#allocation15_spill] sm:$0xff] %v4568_v42 }
 0x252   :  { %v4508_v11 = vpack.c.bf16 %v1245_v10, %v1245_v10  ;;  %v4571_v10 = vld [vmem:[#allocation2 + $0x4c] ss:$16 sps:$4 sm:$0xff]  }
 0x253   :  { %6514 = vst [vmem:[#allocation16_spill] sm:$0xff] %v4571_v10 }
 0x254   :  { %1281 = vmatmul.mubr.bf16.vlgmr.msra.gmra.mxu0 %v4508_v11  ;;  %1322 = vmatmul.mubr.bf16.vlgmr.msra.gmra.mxu1 %v4508_v11 }
 0x255   :  { %1355 = vmatpush1.bf16.msra.mxu0 %v4512_v22  ;;  %1396 = vmatpush1.bf16.msra.mxu1 %v4515_v24 }
 0x256   :  { %1356 = vmatprep.subr.bf16.mxu0 %v4518_v16  ;;  %1397 = vmatprep.subr.bf16.mxu1 %v4521_v59 }
 0x257   :  { %1386 = vmatprep.mubr.bf16.mxu0 %v6438_v31  ;;  %1427 = vmatprep.mubr.bf16.mxu1 %v6438_v31 }
 0x259   :  { %1357 = vmatpush1.bf16.msra.mxu0 %v4526_v13  ;;  %1398 = vmatpush1.bf16.msra.mxu1 %v4529_v18 }
 0x25a   :  { %1358 = vmatprep.subr.bf16.mxu0 %v4532_v20  ;;  %1399 = vmatprep.subr.bf16.mxu1 %v4535_v35 }
 0x25d   :  { %1359 = vmatpush1.bf16.msra.mxu0 %v4538_v23  ;;  %1400 = vmatpush1.bf16.msra.mxu1 %v4541_v19 }
 0x25e   :  { %1360 = vmatprep.subr.bf16.mxu0 %v4544_v21  ;;  %1401 = vmatprep.subr.bf16.mxu1 %v4547_v12 }
 0x261   :  { %1361 = vmatpush1.bf16.msra.mxu0 %v4550_v14  ;;  %1402 = vmatpush1.bf16.msra.mxu1 %v4553_v46 }
 0x262   :  { %1362 = vmatprep.subr.bf16.mxu0 %v4556_v15  ;;  %1403 = vmatprep.subr.bf16.mxu1 %v4559_v0  ;;  %v4574_v15 = vld [vmem:[#allocation2 + $0x40] ss:$16 sps:$4 sm:$0xff]   ;;  %v4577_v0 = vld [vmem:[#allocation2 + $0x48] ss:$16 sps:$4 sm:$0xff]  }
 0x263   :  { %6515 = vst [vmem:[#allocation17_spill] sm:$0xff] %v4574_v15  ;;  %6516 = vst [vmem:[#allocation18_spill] sm:$0xff] %v4577_v0 }
 0x265   :  { %1363 = vmatpush1.bf16.msra.mxu0 %v4562_v43  ;;  %1404 = vmatpush1.bf16.msra.mxu1 %v4565_v17  ;;  %v4580_v43 = vld [vmem:[#allocation2 + $0x24] ss:$16 sps:$4 sm:$0xff]   ;;  %v4583_v17 = vld [vmem:[#allocation2 + $0x2c] ss:$16 sps:$4 sm:$0xff]  }
 0x266   :  { %1364 = vmatprep.subr.bf16.mxu0 %v4568_v42  ;;  %1405 = vmatprep.subr.bf16.mxu1 %v4571_v10  ;;  %6517 = vst [vmem:[#allocation19_spill] sm:$0xff] %v4580_v43  ;;  %6518 = vst [vmem:[#allocation20_spill] sm:$0xff] %v4583_v17  ;;  %v4586_v42 = vld [vmem:[#allocation2 + $0x20] ss:$16 sps:$4 sm:$0xff]   ;;  %v4589_v10 = vld [vmem:[#allocation2 + $0x28] ss:$16 sps:$4 sm:$0xff]  }
 0x269   :  { %1365 = vmatpush1.bf16.msra.mxu0 %v4574_v15  ;;  %1406 = vmatpush1.bf16.msra.mxu1 %v4577_v0  ;;  %v4592_v15 = vld [vmem:[#allocation2 + $0x4] ss:$16 sps:$4 sm:$0xff]   ;;  %v4595_v0 = vld [vmem:[#allocation2 + $0xc] ss:$16 sps:$4 sm:$0xff]  }
 0x26a   :  { %1366 = vmatprep.subr.bf16.mxu0 %v4580_v43  ;;  %1407 = vmatprep.subr.bf16.mxu1 %v4583_v17  ;;  %v4598_v43 = vld [vmem:[#allocation2] ss:$16 sps:$4 sm:$0xff]   ;;  %v4601_v17 = vld [vmem:[#allocation2 + $0x8] ss:$16 sps:$4 sm:$0xff]  }
 0x26d   :  { %1367 = vmatpush1.bf16.msra.mxu0 %v4586_v42  ;;  %1408 = vmatpush1.bf16.msra.mxu1 %v4589_v10 }
 0x26e   :  { %1368 = vmatprep.subr.bf16.mxu0 %v4592_v15  ;;  %1409 = vmatprep.subr.bf16.mxu1 %v4595_v0 }
 0x271   :  { %1369 = vmatpush1.bf16.msra.mxu0 %v4598_v43  ;;  %1410 = vmatpush1.bf16.msra.mxu1 %v4601_v17 }
 0x272   :  { %1466 = vmatprep.subr.bf16.mxu0 %v3881_v1  ;;  %1507 = vmatprep.subr.bf16.mxu1 %v3886_v2  ;;  %v6519_v1 = vld [vmem:[#allocation36_spill] sm:$0xff]  ;;  %v6520_v2 = vld [vmem:[#allocation37_spill] sm:$0xff] }
 0x274   :  { %1387 = vmatmul.mubr.bf16.vlgmr.msra.gmra.mxu0 %v4508_v11  ;;  %1428 = vmatmul.mubr.bf16.vlgmr.msra.gmra.mxu1 %v4508_v11  ;;  %v6547_v11 = vld [vmem:[#allocation9_spill] sm:$0xff] }
 0x275   :  { %1467 = vmatpush1.bf16.msra.mxu0 %v3891_v3  ;;  %1508 = vmatpush1.bf16.msra.mxu1 %v3896_v4  ;;  %v6521_v3 = vld [vmem:[#allocation38_spill] sm:$0xff]  ;;  %v6522_v4 = vld [vmem:[#allocation39_spill] sm:$0xff] }
 0x276   :  { %1468 = vmatprep.subr.bf16.mxu0 %v3905_v5  ;;  %1509 = vmatprep.subr.bf16.mxu1 %v3910_v6  ;;  %v6523_v5 = vld [vmem:[#allocation40_spill] sm:$0xff]  ;;  %v6524_v6 = vld [vmem:[#allocation41_spill] sm:$0xff] }
 0x279   :  { %1469 = vmatpush1.bf16.msra.mxu0 %v3915_v7  ;;  %1510 = vmatpush1.bf16.msra.mxu1 %v3920_v8  ;;  %v6525_v7 = vld [vmem:[#allocation42_spill] sm:$0xff]  ;;  %v6526_v8 = vld [vmem:[#allocation43_spill] sm:$0xff] }
 0x27a   :  { %1470 = vmatprep.subr.bf16.mxu0 %v3929_v9  ;;  %1511 = vmatprep.subr.bf16.mxu1 %v6439_v25  ;;  %v6527_v9 = vld [vmem:[#allocation44_spill] sm:$0xff]  ;;  %v6528_v25 = vld [vmem:[#allocation45_spill] sm:$0xff] }
 0x27d   :  { %1471 = vmatpush1.bf16.msra.mxu0 %v6440_v26  ;;  %1512 = vmatpush1.bf16.msra.mxu1 %v6441_v27  ;;  %v6529_v26 = vld [vmem:[#allocation46_spill] sm:$0xff]  ;;  %v6530_v27 = vld [vmem:[#allocation47_spill] sm:$0xff] }
 0x27e   :  { %1472 = vmatprep.subr.bf16.mxu0 %v6442_v28  ;;  %1513 = vmatprep.subr.bf16.mxu1 %v6443_v29  ;;  %v6531_v28 = vld [vmem:[#allocation48_spill] sm:$0xff]  ;;  %v6532_v29 = vld [vmem:[#allocation49_spill] sm:$0xff] }
 0x281   :  { %1473 = vmatpush1.bf16.msra.mxu0 %v6444_v30  ;;  %1514 = vmatpush1.bf16.msra.mxu1 %v6445_v33  ;;  %v6533_v30 = vld [vmem:[#allocation50_spill] sm:$0xff]  ;;  %v6534_v33 = vld [vmem:[#allocation51_spill] sm:$0xff] }
 0x282   :  { %1474 = vmatprep.subr.bf16.mxu0 %v6446_v34  ;;  %1515 = vmatprep.subr.bf16.mxu1 %v6447_v36  ;;  %v6535_v34 = vld [vmem:[#allocation52_spill] sm:$0xff]  ;;  %v6536_v36 = vld [vmem:[#allocation53_spill] sm:$0xff] }
 0x285   :  { %1475 = vmatpush1.bf16.msra.mxu0 %v6448_v37  ;;  %1516 = vmatpush1.bf16.msra.mxu1 %v6449_v38  ;;  %v6537_v37 = vld [vmem:[#allocation54_spill] sm:$0xff]  ;;  %v6538_v38 = vld [vmem:[#allocation55_spill] sm:$0xff] }
 0x286   :  { %1476 = vmatprep.subr.bf16.mxu0 %v6450_v39  ;;  %1517 = vmatprep.subr.bf16.mxu1 %v6451_v40  ;;  %v6539_v39 = vld [vmem:[#allocation56_spill] sm:$0xff]  ;;  %v6540_v40 = vld [vmem:[#allocation57_spill] sm:$0xff] }
 0x289   :  { %1477 = vmatpush1.bf16.msra.mxu0 %v6452_v41  ;;  %1518 = vmatpush1.bf16.msra.mxu1 %v6453_v44  ;;  %v6541_v41 = vld [vmem:[#allocation58_spill] sm:$0xff]  ;;  %v6542_v44 = vld [vmem:[#allocation59_spill] sm:$0xff] }
 0x28a   :  { %1478 = vmatprep.subr.bf16.mxu0 %v6454_v45  ;;  %1519 = vmatprep.subr.bf16.mxu1 %v6455_v47  ;;  %v6543_v45 = vld [vmem:[#allocation5_spill] sm:$0xff]  ;;  %v6544_v47 = vld [vmem:[#allocation6_spill] sm:$0xff] }
 0x28d   :  { %1479 = vmatpush1.bf16.msra.mxu0 %v6456_v48  ;;  %1520 = vmatpush1.bf16.msra.mxu1 %v6457_v49 }
 0x28e   :  { %1480 = vmatprep.subr.bf16.mxu0 %v6458_v50  ;;  %1521 = vmatprep.subr.bf16.mxu1 %v6459_v51  ;;  %v6545_v50 = vld [vmem:[#allocation7_spill] sm:$0xff] }
 0x291   :  { %1481 = vmatpush1.bf16.msra.mxu0 %v6460_v52  ;;  %1522 = vmatpush1.bf16.msra.mxu1 %v6461_v55 }
 0x292   :  { %1482 = vmatprep.subr.bf16.mxu0 %v6462_v56  ;;  %1523 = vmatprep.subr.bf16.mxu1 %v6463_v57  ;;  %v6546_v57 = vld [vmem:[#allocation8_spill] sm:$0xff] }
 0x295   :  { %1483 = vmatpush2.bf16.msra.mxu0 %v6464_v58  ;;  %1524 = vmatpush2.bf16.msra.mxu1 %v6465_v60 }
 0x296   :  { %1484 = vmatprep.subr.bf16.mxu0 %v6466_v61  ;;  %1525 = vmatprep.subr.bf16.mxu1 %v6467_v62 }
 0x299   :  { %1485 = vmatpush2.bf16.msra.mxu0 %v6468_v63  ;;  %1526 = vmatpush2.bf16.msra.mxu1 %v6469_v32 }
 0x29a   :  { %1486 = vmatprep.subr.bf16.mxu0 %v6519_v1  ;;  %1527 = vmatprep.subr.bf16.mxu1 %v6520_v2 }
 0x29d   :  { %1487 = vmatpush2.bf16.msra.mxu0 %v6521_v3  ;;  %1528 = vmatpush2.bf16.msra.mxu1 %v6522_v4  ;;  %v6548_v4 = vld [vmem:[#allocation10_spill] sm:$0xff] }
 0x29e   :  { %1488 = vmatprep.subr.bf16.mxu0 %v6523_v5  ;;  %1529 = vmatprep.subr.bf16.mxu1 %v6524_v6 }
 0x2a1   :  { %1489 = vmatpush2.bf16.msra.mxu0 %v6525_v7  ;;  %1530 = vmatpush2.bf16.msra.mxu1 %v6526_v8 }
 0x2a2   :  { %1490 = vmatprep.subr.bf16.mxu0 %v6527_v9  ;;  %1531 = vmatprep.subr.bf16.mxu1 %v6528_v25 }
 0x2a5   :  { %1491 = vmatpush2.bf16.msra.mxu0 %v6529_v26  ;;  %1532 = vmatpush2.bf16.msra.mxu1 %v6530_v27  ;;  %v6549_v27 = vld [vmem:[#allocation65_spill] sm:$0xff] }
 0x2a6   :  { %1492 = vmatprep.subr.bf16.mxu0 %v6531_v28  ;;  %1533 = vmatprep.subr.bf16.mxu1 %v6532_v29 }
 0x2a9   :  { %1493 = vmatpush2.bf16.msra.mxu0 %v6533_v30  ;;  %1534 = vmatpush2.bf16.msra.mxu1 %v6534_v33 }
 0x2aa   :  { %1494 = vmatprep.subr.bf16.mxu0 %v6535_v34  ;;  %1535 = vmatprep.subr.bf16.mxu1 %v6536_v36 }
 0x2ad   :  { %1495 = vmatpush2.bf16.msra.mxu0 %v6537_v37  ;;  %1536 = vmatpush2.bf16.msra.mxu1 %v6538_v38  ;;  %v6550_v37 = vld [vmem:[#allocation67_spill] sm:$0xff] }
 0x2ae   :  { %1496 = vmatprep.subr.bf16.mxu0 %v6539_v39  ;;  %1537 = vmatprep.subr.bf16.mxu1 %v6540_v40 }
 0x2b1   :  { %1497 = vmatpush2.bf16.msra.mxu0 %v6541_v41  ;;  %1538 = vmatpush2.bf16.msra.mxu1 %v6542_v44 }
 0x2b2   :  { %1572 = vmatprep.subr.bf16.mxu0 %v6543_v45  ;;  %1613 = vmatprep.subr.bf16.mxu1 %v6544_v47 }
 0x314   :  { %v1282_v48 = vpop.f32.mrf.mxu0  ;;  %v1323_v49 = vpop.f32.mrf.mxu1 }
 0x315   :  { %v1283_v51 = vadd.f32 %v1282_v48, %v6545_v50  ;;  %v1324_v5 = vadd.f32 %v1323_v49, %v6548_v4 }
 0x316   :  { %v1284_v52 = vpop.f32.mrf.mxu0  ;;  %v1325_v55 = vpop.f32.mrf.mxu1 }
 0x317   :  { %v2917_v56 = vmul.f32 -1.442695, %v1283_v51  ;;  %v1285_v58 = vadd.f32 %v1284_v52, %v6546_v57  ;;  %v1326_v1 = vadd.f32 %v1325_v55, %v6547_v11 }
 0x318   :  { %v1286_v60 = vpop.f32.mrf.mxu0  ;;  %v1327_v61 = vpop.f32.mrf.mxu1 }
 0x319   :  { %3219 = vpow2.f32 %v2917_v56  ;;  %v2918_v62 = vmul.f32 -1.442695, %v1285_v58  ;;  %v2919_v2 = vmul.f32 -1.442695, %v1326_v1  ;;  %v6551_v58 = vld [vmem:[#allocation68_spill] sm:$0xff]  ;;  %v6552_v61 = vld [vmem:[#allocation66_spill] sm:$0xff] }
 0x31a   :  { %v1287_v63 = vpop.f32.mrf.mxu0  ;;  %v1328_v32 = vpop.f32.mrf.mxu1 }
 0x31b   :  { %3221 = vpow2.f32 %v2918_v62 }
 0x31c   :  { %3223 = vpow2.f32 %v2919_v2 }
 0x326   :  { %v3220_v3 = vpop.eup %3219 }
 0x327   :  { %v1333_v6 = vadd.f32 1.0, %v3220_v3 }
 0x328   :  { %v3222_v7 = vpop.eup %3221 }
 0x329   :  { %3225 = vrcp.f32 %v1333_v6  ;;  %v1339_v8 = vadd.f32 1.0, %v3222_v7  ;;  %v3224_v26 = vpop.eup %3223 }
 0x32a   :  { %3227 = vtanh.f32 %v1324_v5  ;;  %v1346_v40 = vadd.f32 1.0, %v3224_v26 }
 0x32b   :  { %3229 = vrcp.f32 %v1339_v8 }
 0x334   :  { %v1388_v9 = vpop.f32.mrf.mxu0  ;;  %v1429_v25 = vpop.f32.mrf.mxu1 }
 0x335   :  { %v1436_v28 = vadd.f32 %v1388_v9, %v6549_v27  ;;  %v1438_v62 = vadd.f32 %v1429_v25, %v6552_v61  ;;  %v4741_v61 = vld [vmem:[%s6005_s4 + $0xe8] ss:$16 sps:$4 sm:$0xff]  }
 0x336   :  { %v3226_v29 = vpop.eup %3225  ;;  %v1390_v30 = vpop.f32.mrf.mxu0 }
 0x337   :  { %v1431_v33 = vpop.f32.mrf.mxu1  ;;  %v3228_v34 = vpop.eup %3227  ;;  %v2920_v36 = vmul.f32 -1.442695, %v1436_v28  ;;  %v1437_v38 = vadd.f32 %v1390_v30, %v6550_v37 }
 0x338   :  { %v3230_v39 = vpop.eup %3229  ;;  %v1392_v41 = vpop.f32.mrf.mxu0  ;;  %v1350_v48 = vmul.f32 %v3228_v34, %v3226_v29  ;;  %v1439_v60 = vadd.f32 %v1431_v33, %v6551_v58  ;;  %v4729_v58 = vld [vmem:[%s6005_s4 + $0xec] ss:$16 sps:$4 sm:$0xff]  }
 0x339   :  { %v1433_v44 = vpop.f32.mrf.mxu1  ;;  %v1349_v49 = vmul.f32 %v3230_v39, %v4499_v53  ;;  %3231 = vpow2.f32 %v2920_v36  ;;  %v2921_v51 = vmul.f32 -1.442695, %v1437_v38  ;;  %v6554_v38 = vld [vmem:[#allocation12_spill] sm:$0xff]  ;;  %v6555_v39 = vld [vmem:[#allocation13_spill] sm:$0xff]  ;;  %v6557_v41 = vld [vmem:[#allocation15_spill] sm:$0xff] }
 0x33a   :  { %v1393_v52 = vpop.f32.mrf.mxu0  ;;  %v2922_v63 = vmul.f32 -1.442695, %v1439_v60  ;;  %v6558_v44 = vld [vmem:[#allocation16_spill] sm:$0xff]  ;;  %v4735_v60 = vld [vmem:[%s6005_s4 + $0xe0] ss:$16 sps:$4 sm:$0xff]  }
 0x33b   :  { %v1434_v55 = vpop.f32.mrf.mxu1  ;;  %3233 = vpow2.f32 %v2921_v51  ;;  %v4679_v56 = vadd.f32 %v1350_v48, %v1349_v49  ;;  %v6559_v48 = vld [vmem:[#allocation17_spill] sm:$0xff]  ;;  %v6560_v49 = vld [vmem:[#allocation18_spill] sm:$0xff]  ;;  %v6561_v51 = vld [vmem:[#allocation19_spill] sm:$0xff] }
 0x33c   :  { %3235 = vrcp.f32 %v1346_v40  ;;  %v6556_v40 = vld [vmem:[#allocation14_spill] sm:$0xff]  ;;  %v6562_v52 = vld [vmem:[#allocation20_spill] sm:$0xff]  ;;  %v4723_v55 = vld [vmem:[%s6005_s4 + $0xe4] ss:$16 sps:$4 sm:$0xff]  }
 0x33d   :  { %3237 = vtanh.f32 %v4679_v56 }
 0x33e   :  { %3239 = vtanh.f32 %v1438_v62  ;;  %v4747_v62 = vld [vmem:[%s6005_s4 + $0xc4] ss:$16 sps:$4 sm:$0xff]  }
 0x33f   :  { %3241 = vpow2.f32 %v2922_v63  ;;  %v4753_v63 = vld [vmem:[%s6005_s4 + $0xcc] ss:$16 sps:$4 sm:$0xff]  }
 0x346   :  { %v3232_v32 = vpop.eup %3231 }
 0x347   :  { %v1443_v1 = vadd.f32 1.0, %v3232_v32  ;;  %v4759_v32 = vld [vmem:[%s6005_s4 + $0xc0] ss:$16 sps:$4 sm:$0xff]  }
 0x348   :  { %v3234_v2 = vpop.eup %3233 }
 0x349   :  { %v3236_v53 = vpop.eup %3235  ;;  %3243 = vrcp.f32 %v1443_v1  ;;  %v1449_v3 = vadd.f32 1.0, %v3234_v2  ;;  %v4765_v1 = vld [vmem:[%s6005_s4 + $0xc8] ss:$16 sps:$4 sm:$0xff]   ;;  %v4771_v2 = vld [vmem:[%s6005_s4 + $0xa4] ss:$16 sps:$4 sm:$0xff]  }
 0x34a   :  { %v3238_v5 = vpop.eup %3237 }
 0x34b   :  { %3245 = vrcp.f32 %v1449_v3  ;;  %v1353_v6 = vmul.f32 %v3238_v5, %v3236_v53  ;;  %v3240_v8 = vpop.eup %3239  ;;  %v4777_v53 = vld [vmem:[%s6005_s4 + $0xac] ss:$16 sps:$4 sm:$0xff]   ;;  %v4783_v3 = vld [vmem:[%s6005_s4 + $0xa0] ss:$16 sps:$4 sm:$0xff]   ;;  %v4789_v5 = vld [vmem:[%s6005_s4 + $0xa8] ss:$16 sps:$4 sm:$0xff]  }
 0x34c   :  { %v3242_v9 = vpop.eup %3241  ;;  %6563 = vst [vmem:[#allocation21_spill] sm:$0xff] %v4783_v3  ;;  %6564 = vst [vmem:[#allocation22_spill] sm:$0xff] %v4789_v5 }
 0x34d   :  { %v1465_v7 = vpack.c.bf16 %v1353_v6, %v1353_v6  ;;  %v1456_v28 = vadd.f32 1.0, %v3242_v9  ;;  %v4795_v6 = vld [vmem:[%s6005_s4 + $0x84] ss:$16 sps:$4 sm:$0xff]   ;;  %v4813_v9 = vld [vmem:[%s6005_s4 + $0x88] ss:$16 sps:$4 sm:$0xff]  }
 0x34e   :  { %6565 = vst [vmem:[#allocation23_spill] sm:$0xff] %v4795_v6  ;;  %6568 = vst [vmem:[#allocation26_spill] sm:$0xff] %v4813_v9 }
 0x34f   :  { %1498 = vmatprep.mubr.bf16.mxu0 %v1465_v7  ;;  %1539 = vmatprep.mubr.bf16.mxu1 %v1465_v7  ;;  %3247 = vrcp.f32 %v1456_v28  ;;  %v4801_v7 = vld [vmem:[%s6005_s4 + $0x8c] ss:$16 sps:$4 sm:$0xff]   ;;  %v4837_v28 = vld [vmem:[%s6005_s4 + $0x68] ss:$16 sps:$4 sm:$0xff]  }
 0x350   :  { %6566 = vst [vmem:[#allocation24_spill] sm:$0xff] %v4801_v7  ;;  %6572 = vst [vmem:[#allocation30_spill] sm:$0xff] %v4837_v28 }
 0x356   :  { %v3244_v26 = vpop.eup %3243 }
 0x357   :  { %v1460_v27 = vmul.f32 %v3244_v26, %v3240_v8  ;;  %v4807_v8 = vld [vmem:[%s6005_s4 + $0x80] ss:$16 sps:$4 sm:$0xff]   ;;  %v4819_v26 = vld [vmem:[%s6005_s4 + $0x64] ss:$16 sps:$4 sm:$0xff]  }
 0x358   :  { %v3246_v25 = vpop.eup %3245  ;;  %6567 = vst [vmem:[#allocation25_spill] sm:$0xff] %v4807_v8  ;;  %6569 = vst [vmem:[#allocation27_spill] sm:$0xff] %v4819_v26 }
 0x359   :  { %v1459_v29 = vmul.f32 %v3246_v25, %v4505_v54  ;;  %v6553_v54 = vld [vmem:[#allocation11_spill] sm:$0xff] }
 0x35a   :  { %v4831_v25 = vld [vmem:[%s6005_s4 + $0x60] ss:$16 sps:$4 sm:$0xff]  }
 0x35b   :  { %v4685_v30 = vadd.f32 %v1460_v27, %v1459_v29  ;;  %v4825_v27 = vld [vmem:[%s6005_s4 + $0x6c] ss:$16 sps:$4 sm:$0xff]   ;;  %6571 = vst [vmem:[#allocation29_spill] sm:$0xff] %v4831_v25  ;;  %v4843_v29 = vld [vmem:[%s6005_s4 + $0x44] ss:$16 sps:$4 sm:$0xff]  }
 0x35c   :  { %v3248_v33 = vpop.eup %3247  ;;  %6570 = vst [vmem:[#allocation28_spill] sm:$0xff] %v4825_v27  ;;  %6573 = vst [vmem:[#allocation31_spill] sm:$0xff] %v4843_v29 }
 0x35d   :  { %3249 = vtanh.f32 %v4685_v30 }
 0x36a   :  { %v3250_v34 = vpop.eup %3249 }
 0x36b   :  { %v1463_v36 = vmul.f32 %v3250_v34, %v3248_v33  ;;  %v4849_v33 = vld [vmem:[%s6005_s4 + $0x4c] ss:$16 sps:$4 sm:$0xff]   ;;  %v4855_v34 = vld [vmem:[%s6005_s4 + $0x40] ss:$16 sps:$4 sm:$0xff]  }
 0x36c   :  { %6574 = vst [vmem:[#allocation32_spill] sm:$0xff] %v4849_v33  ;;  %6575 = vst [vmem:[#allocation33_spill] sm:$0xff] %v4855_v34 }
 0x36d   :  { %v1464_v37 = vpack.c.bf16 %v1463_v36, %v1463_v36  ;;  %v4861_v36 = vld [vmem:[%s6005_s4 + $0x48] ss:$16 sps:$4 sm:$0xff]  }
 0x36e   :  { %6576 = vst [vmem:[#allocation34_spill] sm:$0xff] %v4861_v36 }
 0x36f   :  { %1499 = vmatmul.mubr.bf16.vlgmr.msra.gmra.mxu0 %v1464_v37  ;;  %1540 = vmatmul.mubr.bf16.vlgmr.msra.gmra.mxu1 %v1464_v37 }
 0x370   :  { %1573 = vmatpush1.bf16.msra.mxu0 %v4512_v22  ;;  %1614 = vmatpush1.bf16.msra.mxu1 %v4515_v24 }
 0x371   :  { %1574 = vmatprep.subr.bf16.mxu0 %v4518_v16  ;;  %1615 = vmatprep.subr.bf16.mxu1 %v4521_v59 }
 0x372   :  { %1604 = vmatprep.mubr.bf16.mxu0 %v6438_v31  ;;  %1645 = vmatprep.mubr.bf16.mxu1 %v6438_v31 }
 0x374   :  { %1575 = vmatpush1.bf16.msra.mxu0 %v4526_v13  ;;  %1616 = vmatpush1.bf16.msra.mxu1 %v4529_v18 }
 0x375   :  { %1576 = vmatprep.subr.bf16.mxu0 %v4532_v20  ;;  %1617 = vmatprep.subr.bf16.mxu1 %v4535_v35 }
 0x378   :  { %1577 = vmatpush1.bf16.msra.mxu0 %v4538_v23  ;;  %1618 = vmatpush1.bf16.msra.mxu1 %v4541_v19 }
 0x379   :  { %1578 = vmatprep.subr.bf16.mxu0 %v4544_v21  ;;  %1619 = vmatprep.subr.bf16.mxu1 %v4547_v12 }
 0x37c   :  { %1579 = vmatpush1.bf16.msra.mxu0 %v4550_v14  ;;  %1620 = vmatpush1.bf16.msra.mxu1 %v4553_v46 }
 0x37d   :  { %1580 = vmatprep.subr.bf16.mxu0 %v6553_v54  ;;  %1621 = vmatprep.subr.bf16.mxu1 %v6554_v38 }
 0x380   :  { %1581 = vmatpush1.bf16.msra.mxu0 %v6555_v39  ;;  %1622 = vmatpush1.bf16.msra.mxu1 %v6556_v40 }
 0x381   :  { %1582 = vmatprep.subr.bf16.mxu0 %v6557_v41  ;;  %1623 = vmatprep.subr.bf16.mxu1 %v6558_v44 }
 0x384   :  { %1583 = vmatpush1.bf16.msra.mxu0 %v6559_v48  ;;  %1624 = vmatpush1.bf16.msra.mxu1 %v6560_v49 }
 0x385   :  { %1584 = vmatprep.subr.bf16.mxu0 %v6561_v51  ;;  %1625 = vmatprep.subr.bf16.mxu1 %v6562_v52 }
 0x388   :  { %1585 = vmatpush1.bf16.msra.mxu0 %v4586_v42  ;;  %1626 = vmatpush1.bf16.msra.mxu1 %v4589_v10 }
 0x389   :  { %1586 = vmatprep.subr.bf16.mxu0 %v4592_v15  ;;  %1627 = vmatprep.subr.bf16.mxu1 %v4595_v0 }
 0x38c   :  { %1587 = vmatpush1.bf16.msra.mxu0 %v4598_v43  ;;  %1628 = vmatpush1.bf16.msra.mxu1 %v4601_v17 }
 0x38d   :  { %1684 = vmatprep.subr.bf16.mxu0 %v4723_v55  ;;  %1725 = vmatprep.subr.bf16.mxu1 %v4729_v58 }
 0x38f   :  { %1605 = vmatmul.mubr.bf16.vlgmr.msra.gmra.mxu0 %v1464_v37  ;;  %1646 = vmatmul.mubr.bf16.vlgmr.msra.gmra.mxu1 %v1464_v37  ;;  %v4867_v37 = vld [vmem:[%s6005_s4 + $0x24] ss:$16 sps:$4 sm:$0xff]  }
 0x390   :  { %1685 = vmatpush1.bf16.msra.mxu0 %v4735_v60  ;;  %1726 = vmatpush1.bf16.msra.mxu1 %v4741_v61  ;;  %6577 = vst [vmem:[#allocation35_spill] sm:$0xff] %v4867_v37 }
 0x391   :  { %1686 = vmatprep.subr.bf16.mxu0 %v4747_v62  ;;  %1727 = vmatprep.subr.bf16.mxu1 %v4753_v63 }
 0x394   :  { %1687 = vmatpush1.bf16.msra.mxu0 %v4759_v32  ;;  %1728 = vmatpush1.bf16.msra.mxu1 %v4765_v1 }
 0x395   :  { %1688 = vmatprep.subr.bf16.mxu0 %v4771_v2  ;;  %1729 = vmatprep.subr.bf16.mxu1 %v4777_v53 }
 0x398   :  { %1689 = vmatpush1.bf16.msra.mxu0 %v4783_v3  ;;  %1730 = vmatpush1.bf16.msra.mxu1 %v4789_v5 }
 0x399   :  { %1690 = vmatprep.subr.bf16.mxu0 %v4795_v6  ;;  %1731 = vmatprep.subr.bf16.mxu1 %v4801_v7 }
 0x39c   :  { %1691 = vmatpush1.bf16.msra.mxu0 %v4807_v8  ;;  %1732 = vmatpush1.bf16.msra.mxu1 %v4813_v9 }
 0x39d   :  { %1692 = vmatprep.subr.bf16.mxu0 %v4819_v26  ;;  %1733 = vmatprep.subr.bf16.mxu1 %v4825_v27 }
 0x3a0   :  { %1693 = vmatpush1.bf16.msra.mxu0 %v4831_v25  ;;  %1734 = vmatpush1.bf16.msra.mxu1 %v4837_v28 }
 0x3a1   :  { %1694 = vmatprep.subr.bf16.mxu0 %v4843_v29  ;;  %1735 = vmatprep.subr.bf16.mxu1 %v4849_v33  ;;  %v4873_v33 = vld [vmem:[%s6005_s4 + $0x2c] ss:$16 sps:$4 sm:$0xff]  }
 0x3a2   :  { %6578 = vst [vmem:[#allocation60_spill] sm:$0xff] %v4873_v33 }
 0x3a4   :  { %1695 = vmatpush1.bf16.msra.mxu0 %v4855_v34  ;;  %1736 = vmatpush1.bf16.msra.mxu1 %v4861_v36  ;;  %v4879_v34 = vld [vmem:[%s6005_s4 + $0x20] ss:$16 sps:$4 sm:$0xff]   ;;  %v4885_v36 = vld [vmem:[%s6005_s4 + $0x28] ss:$16 sps:$4 sm:$0xff]  }
 0x3a5   :  { %1696 = vmatprep.subr.bf16.mxu0 %v4867_v37  ;;  %1737 = vmatprep.subr.bf16.mxu1 %v4873_v33  ;;  %6579 = vst [vmem:[#allocation61_spill] sm:$0xff] %v4879_v34  ;;  %6580 = vst [vmem:[#allocation63_spill] sm:$0xff] %v4885_v36  ;;  %v4891_v37 = vld [vmem:[%s6005_s4 + $0x4] ss:$16 sps:$4 sm:$0xff]   ;;  %v4897_v33 = vld [vmem:[%s6005_s4 + $0xc] ss:$16 sps:$4 sm:$0xff]  }
 0x3a6   :  { %6581 = vst [vmem:[#allocation64_spill] sm:$0xff] %v4891_v37  ;;  %6582 = vst [vmem:[#allocation62_spill] sm:$0xff] %v4897_v33 }
 0x3a8   :  { %1697 = vmatpush1.bf16.msra.mxu0 %v4879_v34  ;;  %1738 = vmatpush1.bf16.msra.mxu1 %v4885_v36  ;;  %v4903_v34 = vld [vmem:[%s6005_s4] ss:$16 sps:$4 sm:$0xff]   ;;  %v4909_v36 = vld [vmem:[%s6005_s4 + $0x8] ss:$16 sps:$4 sm:$0xff]  }
 0x3a9   :  { %1698 = vmatprep.subr.bf16.mxu0 %v4891_v37  ;;  %1739 = vmatprep.subr.bf16.mxu1 %v4897_v33  ;;  %6583 = vst [vmem:[#allocation36_spill] sm:$0xff] %v4903_v34  ;;  %6584 = vst [vmem:[#allocation37_spill] sm:$0xff] %v4909_v36  ;;  %v4915_v37 = vld [vmem:[%s6005_s4 + $0x1e4] ss:$16 sps:$4 sm:$0xff]   ;;  %v4921_v33 = vld [vmem:[%s6005_s4 + $0x1ec] ss:$16 sps:$4 sm:$0xff]  }
 0x3aa   :  { %6585 = vst [vmem:[#allocation38_spill] sm:$0xff] %v4915_v37  ;;  %6586 = vst [vmem:[#allocation39_spill] sm:$0xff] %v4921_v33 }
 0x3ac   :  { %1699 = vmatpush1.bf16.msra.mxu0 %v4903_v34  ;;  %1740 = vmatpush1.bf16.msra.mxu1 %v4909_v36  ;;  %v4927_v34 = vld [vmem:[%s6005_s4 + $0x1e0] ss:$16 sps:$4 sm:$0xff]   ;;  %v4933_v36 = vld [vmem:[%s6005_s4 + $0x1e8] ss:$16 sps:$4 sm:$0xff]  }
 0x3ad   :  { %1700 = vmatprep.subr.bf16.mxu0 %v4915_v37  ;;  %1741 = vmatprep.subr.bf16.mxu1 %v4921_v33  ;;  %6587 = vst [vmem:[#allocation40_spill] sm:$0xff] %v4927_v34  ;;  %6588 = vst [vmem:[#allocation41_spill] sm:$0xff] %v4933_v36  ;;  %v4939_v37 = vld [vmem:[%s6005_s4 + $0x1c4] ss:$16 sps:$4 sm:$0xff]   ;;  %v4945_v33 = vld [vmem:[%s6005_s4 + $0x1cc] ss:$16 sps:$4 sm:$0xff]  }
 0x3ae   :  { %6589 = vst [vmem:[#allocation42_spill] sm:$0xff] %v4939_v37  ;;  %6590 = vst [vmem:[#allocation43_spill] sm:$0xff] %v4945_v33 }
 0x3b0   :  { %1701 = vmatpush2.bf16.msra.mxu0 %v4927_v34  ;;  %1742 = vmatpush2.bf16.msra.mxu1 %v4933_v36  ;;  %v4951_v34 = vld [vmem:[%s6005_s4 + $0x1c0] ss:$16 sps:$4 sm:$0xff]   ;;  %v4957_v36 = vld [vmem:[%s6005_s4 + $0x1c8] ss:$16 sps:$4 sm:$0xff]  }
 0x3b1   :  { %1702 = vmatprep.subr.bf16.mxu0 %v4939_v37  ;;  %1743 = vmatprep.subr.bf16.mxu1 %v4945_v33  ;;  %6591 = vst [vmem:[#allocation44_spill] sm:$0xff] %v4951_v34  ;;  %6592 = vst [vmem:[#allocation45_spill] sm:$0xff] %v4957_v36  ;;  %v4963_v37 = vld [vmem:[%s6005_s4 + $0x1a4] ss:$16 sps:$4 sm:$0xff]   ;;  %v4969_v33 = vld [vmem:[%s6005_s4 + $0x1ac] ss:$16 sps:$4 sm:$0xff]  }
 0x3b2   :  { %6593 = vst [vmem:[#allocation46_spill] sm:$0xff] %v4963_v37  ;;  %6594 = vst [vmem:[#allocation47_spill] sm:$0xff] %v4969_v33 }
 0x3b4   :  { %1703 = vmatpush2.bf16.msra.mxu0 %v4951_v34  ;;  %1744 = vmatpush2.bf16.msra.mxu1 %v4957_v36  ;;  %v4975_v34 = vld [vmem:[%s6005_s4 + $0x1a0] ss:$16 sps:$4 sm:$0xff]   ;;  %v4981_v36 = vld [vmem:[%s6005_s4 + $0x1a8] ss:$16 sps:$4 sm:$0xff]  }
 0x3b5   :  { %1704 = vmatprep.subr.bf16.mxu0 %v4963_v37  ;;  %1745 = vmatprep.subr.bf16.mxu1 %v4969_v33  ;;  %6595 = vst [vmem:[#allocation48_spill] sm:$0xff] %v4975_v34  ;;  %6596 = vst [vmem:[#allocation49_spill] sm:$0xff] %v4981_v36  ;;  %v4987_v37 = vld [vmem:[%s6005_s4 + $0x184] ss:$16 sps:$4 sm:$0xff]   ;;  %v4993_v33 = vld [vmem:[%s6005_s4 + $0x18c] ss:$16 sps:$4 sm:$0xff]  }
 0x3b6   :  { %6597 = vst [vmem:[#allocation50_spill] sm:$0xff] %v4987_v37  ;;  %6598 = vst [vmem:[#allocation51_spill] sm:$0xff] %v4993_v33 }
 0x3b8   :  { %1705 = vmatpush2.bf16.msra.mxu0 %v4975_v34  ;;  %1746 = vmatpush2.bf16.msra.mxu1 %v4981_v36  ;;  %v4999_v34 = vld [vmem:[%s6005_s4 + $0x180] ss:$16 sps:$4 sm:$0xff]   ;;  %v5005_v36 = vld [vmem:[%s6005_s4 + $0x188] ss:$16 sps:$4 sm:$0xff]  }
 0x3b9   :  { %1706 = vmatprep.subr.bf16.mxu0 %v4987_v37  ;;  %1747 = vmatprep.subr.bf16.mxu1 %v4993_v33  ;;  %6599 = vst [vmem:[#allocation52_spill] sm:$0xff] %v4999_v34  ;;  %6600 = vst [vmem:[#allocation53_spill] sm:$0xff] %v5005_v36  ;;  %v5011_v37 = vld [vmem:[%s6005_s4 + $0x164] ss:$16 sps:$4 sm:$0xff]   ;;  %v5017_v33 = vld [vmem:[%s6005_s4 + $0x16c] ss:$16 sps:$4 sm:$0xff]  }
 0x3ba   :  { %6601 = vst [vmem:[#allocation54_spill] sm:$0xff] %v5011_v37  ;;  %6602 = vst [vmem:[#allocation55_spill] sm:$0xff] %v5017_v33 }
 0x3bc   :  { %1707 = vmatpush2.bf16.msra.mxu0 %v4999_v34  ;;  %1748 = vmatpush2.bf16.msra.mxu1 %v5005_v36  ;;  %v5023_v34 = vld [vmem:[%s6005_s4 + $0x160] ss:$16 sps:$4 sm:$0xff]   ;;  %v5029_v36 = vld [vmem:[%s6005_s4 + $0x168] ss:$16 sps:$4 sm:$0xff]  }
 0x3bd   :  { %1708 = vmatprep.subr.bf16.mxu0 %v5011_v37  ;;  %1749 = vmatprep.subr.bf16.mxu1 %v5017_v33  ;;  %6603 = vst [vmem:[#allocation56_spill] sm:$0xff] %v5023_v34  ;;  %6604 = vst [vmem:[#allocation57_spill] sm:$0xff] %v5029_v36  ;;  %v5035_v37 = vld [vmem:[%s6005_s4 + $0x144] ss:$16 sps:$4 sm:$0xff]   ;;  %v5041_v33 = vld [vmem:[%s6005_s4 + $0x14c] ss:$16 sps:$4 sm:$0xff]  }
 0x3be   :  { %6605 = vst [vmem:[#allocation58_spill] sm:$0xff] %v5035_v37  ;;  %6606 = vst [vmem:[#allocation59_spill] sm:$0xff] %v5041_v33 }
 0x3c0   :  { %1709 = vmatpush2.bf16.msra.mxu0 %v5023_v34  ;;  %1750 = vmatpush2.bf16.msra.mxu1 %v5029_v36  ;;  %v5047_v34 = vld [vmem:[%s6005_s4 + $0x140] ss:$16 sps:$4 sm:$0xff]   ;;  %v5053_v36 = vld [vmem:[%s6005_s4 + $0x148] ss:$16 sps:$4 sm:$0xff]  }
 0x3c1   :  { %1710 = vmatprep.subr.bf16.mxu0 %v5035_v37  ;;  %1751 = vmatprep.subr.bf16.mxu1 %v5041_v33  ;;  %6607 = vst [vmem:[#allocation5_spill] sm:$0xff] %v5047_v34  ;;  %6608 = vst [vmem:[#allocation6_spill] sm:$0xff] %v5053_v36  ;;  %v5059_v37 = vld [vmem:[%s6005_s4 + $0x124] ss:$16 sps:$4 sm:$0xff]   ;;  %v5065_v33 = vld [vmem:[%s6005_s4 + $0x12c] ss:$16 sps:$4 sm:$0xff]  }
 0x3c2   :  { %6609 = vst [vmem:[#allocation65_spill] sm:$0xff] %v5059_v37  ;;  %6610 = vst [vmem:[#allocation67_spill] sm:$0xff] %v5065_v33 }
 0x3c4   :  { %1711 = vmatpush2.bf16.msra.mxu0 %v5047_v34  ;;  %1752 = vmatpush2.bf16.msra.mxu1 %v5053_v36  ;;  %v5071_v34 = vld [vmem:[%s6005_s4 + $0x120] ss:$16 sps:$4 sm:$0xff]   ;;  %v5077_v36 = vld [vmem:[%s6005_s4 + $0x128] ss:$16 sps:$4 sm:$0xff]  }
 0x3c5   :  { %1712 = vmatprep.subr.bf16.mxu0 %v5059_v37  ;;  %1753 = vmatprep.subr.bf16.mxu1 %v5065_v33  ;;  %6611 = vst [vmem:[#allocation68_spill] sm:$0xff] %v5071_v34  ;;  %6612 = vst [vmem:[#allocation66_spill] sm:$0xff] %v5077_v36  ;;  %v5083_v37 = vld [vmem:[%s6005_s4 + $0x104] ss:$16 sps:$4 sm:$0xff]   ;;  %v5089_v33 = vld [vmem:[%s6005_s4 + $0x10c] ss:$16 sps:$4 sm:$0xff]  }
 0x3c6   :  { %6613 = vst [vmem:[#allocation11_spill] sm:$0xff] %v5083_v37  ;;  %6614 = vst [vmem:[#allocation12_spill] sm:$0xff] %v5089_v33 }
 0x3c8   :  { %1713 = vmatpush2.bf16.msra.mxu0 %v5071_v34  ;;  %1754 = vmatpush2.bf16.msra.mxu1 %v5077_v36  ;;  %v5095_v34 = vld [vmem:[%s6005_s4 + $0x100] ss:$16 sps:$4 sm:$0xff]   ;;  %v5101_v36 = vld [vmem:[%s6005_s4 + $0x108] ss:$16 sps:$4 sm:$0xff]  }
 0x3c9   :  { %1714 = vmatprep.subr.bf16.mxu0 %v5083_v37  ;;  %1755 = vmatprep.subr.bf16.mxu1 %v5089_v33  ;;  %6615 = vst [vmem:[#allocation13_spill] sm:$0xff] %v5095_v34  ;;  %6616 = vst [vmem:[#allocation14_spill] sm:$0xff] %v5101_v36 }
 0x3cc   :  { %1715 = vmatpush2.bf16.msra.mxu0 %v5095_v34  ;;  %1756 = vmatpush2.bf16.msra.mxu1 %v5101_v36 }
 0x3cd   :  { %1790 = vmatprep.subr.bf16.mxu0 %v6543_v45  ;;  %1831 = vmatprep.subr.bf16.mxu1 %v6544_v47 }
 0x42f   :  { %v1500_v37 = vpop.f32.mrf.mxu0  ;;  %v1541_v33 = vpop.f32.mrf.mxu1 }
 0x430   :  { %v1501_v29 = vadd.f32 %v1500_v37, %v6545_v50  ;;  %v1542_v5 = vadd.f32 %v1541_v33, %v6548_v4 }
 0x431   :  { %v1502_v28 = vpop.f32.mrf.mxu0  ;;  %v1543_v25 = vpop.f32.mrf.mxu1 }
 0x432   :  { %v2923_v27 = vmul.f32 -1.442695, %v1501_v29  ;;  %v1503_v34 = vadd.f32 %v1502_v28, %v6546_v57  ;;  %v1544_v45 = vadd.f32 %v1543_v25, %v6547_v11  ;;  %v6617_v28 = vld [vmem:[#allocation69_spill] sm:$0xff]  ;;  %v6618_v11 = vld [vmem:[#allocation71_spill] sm:$0xff] }
 0x433   :  { %v1504_v26 = vpop.f32.mrf.mxu0  ;;  %v1545_v9 = vpop.f32.mrf.mxu1 }
 0x434   :  { %3251 = vpow2.f32 %v2923_v27  ;;  %v2924_v8 = vmul.f32 -1.442695, %v1503_v34  ;;  %v2925_v36 = vmul.f32 -1.442695, %v1544_v45 }
 0x435   :  { %v1505_v7 = vpop.f32.mrf.mxu0  ;;  %v1546_v6 = vpop.f32.mrf.mxu1 }
 0x436   :  { %3253 = vpow2.f32 %v2924_v8 }
 0x437   :  { %3255 = vpow2.f32 %v2925_v36 }
 0x441   :  { %v3252_v47 = vpop.eup %3251 }
 0x442   :  { %v1551_v3 = vadd.f32 1.0, %v3252_v47 }
 0x443   :  { %v3254_v37 = vpop.eup %3253 }
 0x444   :  { %3257 = vrcp.f32 %v1551_v3  ;;  %v1557_v29 = vadd.f32 1.0, %v3254_v37  ;;  %v3256_v27 = vpop.eup %3255 }
 0x445   :  { %3259 = vtanh.f32 %v1542_v5  ;;  %v1564_v47 = vadd.f32 1.0, %v3256_v27 }
 0x446   :  { %3261 = vrcp.f32 %v1557_v29 }
 0x44f   :  { %v1606_v26 = vpop.f32.mrf.mxu0  ;;  %v1647_v9 = vpop.f32.mrf.mxu1 }
 0x450   :  { %v1654_v7 = vadd.f32 %v1606_v26, %v6617_v28  ;;  %v6619_v28 = vld [vmem:[#allocation72_spill] sm:$0xff] }
 0x451   :  { %v3258_v6 = vpop.eup %3257  ;;  %v1608_v8 = vpop.f32.mrf.mxu0 }
 0x452   :  { %v1649_v34 = vpop.f32.mrf.mxu1  ;;  %v3260_v25 = vpop.eup %3259  ;;  %v2926_v45 = vmul.f32 -1.442695, %v1654_v7  ;;  %v1655_v57 = vadd.f32 %v1608_v8, %v6618_v11  ;;  %v6620_v11 = vld [vmem:[#allocation70_spill] sm:$0xff] }
 0x453   :  { %v3262_v33 = vpop.eup %3261  ;;  %v1610_v4 = vpop.f32.mrf.mxu0  ;;  %v1568_v3 = vmul.f32 %v3260_v25, %v3258_v6  ;;  %v1657_v7 = vadd.f32 %v1649_v34, %v6619_v28  ;;  %v1656_v8 = vadd.f32 %v1647_v9, %v6620_v11 }
 0x454   :  { %v1651_v36 = vpop.f32.mrf.mxu1  ;;  %v1567_v5 = vmul.f32 %v3262_v33, %v4679_v56  ;;  %3263 = vpow2.f32 %v2926_v45  ;;  %v2927_v37 = vmul.f32 -1.442695, %v1655_v57 }
 0x455   :  { %v1611_v29 = vpop.f32.mrf.mxu0  ;;  %v2928_v27 = vmul.f32 -1.442695, %v1657_v7 }
 0x456   :  { %v1652_v50 = vpop.f32.mrf.mxu1  ;;  %3265 = vpow2.f32 %v2927_v37  ;;  %v5113_v26 = vadd.f32 %v1568_v3, %v1567_v5 }
 0x457   :  { %3267 = vrcp.f32 %v1564_v47 }
 0x458   :  { %3269 = vtanh.f32 %v5113_v26 }
 0x459   :  { %3271 = vtanh.f32 %v1656_v8 }
 0x45a   :  { %3273 = vpow2.f32 %v2928_v27  ;;  %v6652_v27 = vld [vmem:[#allocation47_spill] sm:$0xff] }
 0x461   :  { %v3264_v4 = vpop.eup %3263 }
 0x462   :  { %v1661_v36 = vadd.f32 1.0, %v3264_v4  ;;  %v6653_v4 = vld [vmem:[#allocation48_spill] sm:$0xff] }
 0x463   :  { %v3266_v6 = vpop.eup %3265 }
 0x464   :  { %v3268_v56 = vpop.eup %3267  ;;  %3275 = vrcp.f32 %v1661_v36  ;;  %v1667_v57 = vadd.f32 1.0, %v3266_v6  ;;  %v6654_v36 = vld [vmem:[#allocation49_spill] sm:$0xff]  ;;  %v6655_v6 = vld [vmem:[#allocation50_spill] sm:$0xff] }
 0x465   :  { %v3270_v50 = vpop.eup %3269 }
 0x466   :  { %3277 = vrcp.f32 %v1667_v57  ;;  %v1571_v25 = vmul.f32 %v3270_v50, %v3268_v56  ;;  %v3272_v33 = vpop.eup %3271  ;;  %v6656_v56 = vld [vmem:[#allocation51_spill] sm:$0xff]  ;;  %v6657_v57 = vld [vmem:[#allocation52_spill] sm:$0xff]  ;;  %v6658_v50 = vld [vmem:[#allocation53_spill] sm:$0xff] }
 0x467   :  { %v3274_v47 = vpop.eup %3273 }
 0x468   :  { %v1683_v45 = vpack.c.bf16 %v1571_v25, %v1571_v25  ;;  %v1674_v5 = vadd.f32 1.0, %v3274_v47  ;;  %v6659_v25 = vld [vmem:[#allocation54_spill] sm:$0xff]  ;;  %v6662_v47 = vld [vmem:[#allocation57_spill] sm:$0xff] }
 0x46a   :  { %1716 = vmatprep.mubr.bf16.mxu0 %v1683_v45  ;;  %1757 = vmatprep.mubr.bf16.mxu1 %v1683_v45  ;;  %3279 = vrcp.f32 %v1674_v5  ;;  %v6660_v45 = vld [vmem:[#allocation55_spill] sm:$0xff]  ;;  %v6666_v5 = vld [vmem:[#allocation6_spill] sm:$0xff] }
 0x471   :  { %v3276_v34 = vpop.eup %3275 }
 0x472   :  { %v1678_v3 = vmul.f32 %v3276_v34, %v3272_v33  ;;  %v6661_v33 = vld [vmem:[#allocation56_spill] sm:$0xff]  ;;  %v6663_v34 = vld [vmem:[#allocation58_spill] sm:$0xff] }
 0x473   :  { %v3278_v9 = vpop.eup %3277 }
 0x474   :  { %v1677_v37 = vmul.f32 %v3278_v9, %v4685_v30  ;;  %v6641_v30 = vld [vmem:[#allocation36_spill] sm:$0xff]  ;;  %v6665_v9 = vld [vmem:[#allocation5_spill] sm:$0xff] }
 0x476   :  { %v5119_v29 = vadd.f32 %v1678_v3, %v1677_v37  ;;  %v6664_v3 = vld [vmem:[#allocation59_spill] sm:$0xff]  ;;  %v6667_v37 = vld [vmem:[#allocation65_spill] sm:$0xff] }
 0x477   :  { %v3280_v28 = vpop.eup %3279 }
 0x478   :  { %3281 = vtanh.f32 %v5119_v29 }
 0x485   :  { %v3282_v7 = vpop.eup %3281 }
 0x486   :  { %v1681_v11 = vmul.f32 %v3282_v7, %v3280_v28  ;;  %v6668_v28 = vld [vmem:[#allocation67_spill] sm:$0xff]  ;;  %v6669_v7 = vld [vmem:[#allocation68_spill] sm:$0xff] }
 0x488   :  { %v1682_v8 = vpack.c.bf16 %v1681_v11, %v1681_v11  ;;  %v6670_v11 = vld [vmem:[#allocation66_spill] sm:$0xff] }
 0x48a   :  { %1717 = vmatmul.mubr.bf16.vlgmr.msra.gmra.mxu0 %v1682_v8  ;;  %1758 = vmatmul.mubr.bf16.vlgmr.msra.gmra.mxu1 %v1682_v8 }
 0x48b   :  { %1791 = vmatpush1.bf16.msra.mxu0 %v4512_v22  ;;  %1832 = vmatpush1.bf16.msra.mxu1 %v4515_v24  ;;  %v6621_v22 = vld [vmem:[#allocation21_spill] sm:$0xff]  ;;  %v6622_v24 = vld [vmem:[#allocation22_spill] sm:$0xff] }
 0x48c   :  { %1792 = vmatprep.subr.bf16.mxu0 %v4518_v16  ;;  %1833 = vmatprep.subr.bf16.mxu1 %v4521_v59  ;;  %v6623_v16 = vld [vmem:[#allocation23_spill] sm:$0xff]  ;;  %v6624_v59 = vld [vmem:[#allocation24_spill] sm:$0xff] }
 0x48d   :  { %1822 = vmatprep.mubr.bf16.mxu0 %v6438_v31  ;;  %1863 = vmatprep.mubr.bf16.mxu1 %v6438_v31 }
 0x48f   :  { %1793 = vmatpush1.bf16.msra.mxu0 %v4526_v13  ;;  %1834 = vmatpush1.bf16.msra.mxu1 %v4529_v18  ;;  %v6625_v13 = vld [vmem:[#allocation25_spill] sm:$0xff]  ;;  %v6626_v18 = vld [vmem:[#allocation26_spill] sm:$0xff] }
 0x490   :  { %1794 = vmatprep.subr.bf16.mxu0 %v4532_v20  ;;  %1835 = vmatprep.subr.bf16.mxu1 %v4535_v35  ;;  %v6627_v20 = vld [vmem:[#allocation27_spill] sm:$0xff]  ;;  %v6628_v35 = vld [vmem:[#allocation28_spill] sm:$0xff] }
 0x493   :  { %1795 = vmatpush1.bf16.msra.mxu0 %v4538_v23  ;;  %1836 = vmatpush1.bf16.msra.mxu1 %v4541_v19  ;;  %v6629_v23 = vld [vmem:[#allocation29_spill] sm:$0xff]  ;;  %v6630_v19 = vld [vmem:[#allocation30_spill] sm:$0xff] }
 0x494   :  { %1796 = vmatprep.subr.bf16.mxu0 %v4544_v21  ;;  %1837 = vmatprep.subr.bf16.mxu1 %v4547_v12  ;;  %v6631_v21 = vld [vmem:[#allocation31_spill] sm:$0xff]  ;;  %v6632_v12 = vld [vmem:[#allocation32_spill] sm:$0xff] }
 0x497   :  { %1797 = vmatpush1.bf16.msra.mxu0 %v4550_v14  ;;  %1838 = vmatpush1.bf16.msra.mxu1 %v4553_v46  ;;  %v6633_v14 = vld [vmem:[#allocation33_spill] sm:$0xff]  ;;  %v6634_v46 = vld [vmem:[#allocation34_spill] sm:$0xff] }
 0x498   :  { %1798 = vmatprep.subr.bf16.mxu0 %v6553_v54  ;;  %1839 = vmatprep.subr.bf16.mxu1 %v6554_v38  ;;  %v6642_v54 = vld [vmem:[#allocation37_spill] sm:$0xff]  ;;  %v6643_v38 = vld [vmem:[#allocation38_spill] sm:$0xff] }
 0x49b   :  { %1799 = vmatpush1.bf16.msra.mxu0 %v6555_v39  ;;  %1840 = vmatpush1.bf16.msra.mxu1 %v6556_v40  ;;  %v6644_v39 = vld [vmem:[#allocation39_spill] sm:$0xff]  ;;  %v6645_v40 = vld [vmem:[#allocation40_spill] sm:$0xff] }
 0x49c   :  { %1800 = vmatprep.subr.bf16.mxu0 %v6557_v41  ;;  %1841 = vmatprep.subr.bf16.mxu1 %v6558_v44  ;;  %v6646_v41 = vld [vmem:[#allocation41_spill] sm:$0xff]  ;;  %v6647_v44 = vld [vmem:[#allocation42_spill] sm:$0xff] }
 0x49f   :  { %1801 = vmatpush1.bf16.msra.mxu0 %v6559_v48  ;;  %1842 = vmatpush1.bf16.msra.mxu1 %v6560_v49  ;;  %v6648_v48 = vld [vmem:[#allocation43_spill] sm:$0xff]  ;;  %v6649_v49 = vld [vmem:[#allocation44_spill] sm:$0xff] }
 0x4a0   :  { %1802 = vmatprep.subr.bf16.mxu0 %v6561_v51  ;;  %1843 = vmatprep.subr.bf16.mxu1 %v6562_v52  ;;  %v6650_v51 = vld [vmem:[#allocation45_spill] sm:$0xff]  ;;  %v6651_v52 = vld [vmem:[#allocation46_spill] sm:$0xff] }
 0x4a3   :  { %1803 = vmatpush1.bf16.msra.mxu0 %v4586_v42  ;;  %1844 = vmatpush1.bf16.msra.mxu1 %v4589_v10  ;;  %v6639_v42 = vld [vmem:[#allocation64_spill] sm:$0xff]  ;;  %v6640_v10 = vld [vmem:[#allocation62_spill] sm:$0xff] }
 0x4a4   :  { %1804 = vmatprep.subr.bf16.mxu0 %v4592_v15  ;;  %1845 = vmatprep.subr.bf16.mxu1 %v4595_v0  ;;  %v6635_v15 = vld [vmem:[#allocation35_spill] sm:$0xff]  ;;  %v6636_v0 = vld [vmem:[#allocation60_spill] sm:$0xff] }
 0x4a7   :  { %1805 = vmatpush1.bf16.msra.mxu0 %v4598_v43  ;;  %1846 = vmatpush1.bf16.msra.mxu1 %v4601_v17  ;;  %v6637_v43 = vld [vmem:[#allocation61_spill] sm:$0xff]  ;;  %v6638_v17 = vld [vmem:[#allocation63_spill] sm:$0xff] }
 0x4a8   :  { %1902 = vmatprep.subr.bf16.mxu0 %v4723_v55  ;;  %1943 = vmatprep.subr.bf16.mxu1 %v4729_v58 }
 0x4aa   :  { %1823 = vmatmul.mubr.bf16.vlgmr.msra.gmra.mxu0 %v1682_v8  ;;  %1864 = vmatmul.mubr.bf16.vlgmr.msra.gmra.mxu1 %v1682_v8  ;;  %v6671_v8 = vld [vmem:[#allocation11_spill] sm:$0xff] }
 0x4ab   :  { %1903 = vmatpush1.bf16.msra.mxu0 %v4735_v60  ;;  %1944 = vmatpush1.bf16.msra.mxu1 %v4741_v61 }
 0x4ac   :  { %1904 = vmatprep.subr.bf16.mxu0 %v4747_v62  ;;  %1945 = vmatprep.subr.bf16.mxu1 %v4753_v63 }
 0x4af   :  { %1905 = vmatpush1.bf16.msra.mxu0 %v4759_v32  ;;  %1946 = vmatpush1.bf16.msra.mxu1 %v4765_v1 }
 0x4b0   :  { %1906 = vmatprep.subr.bf16.mxu0 %v4771_v2  ;;  %1947 = vmatprep.subr.bf16.mxu1 %v4777_v53 }
 0x4b3   :  { %1907 = vmatpush1.bf16.msra.mxu0 %v6621_v22  ;;  %1948 = vmatpush1.bf16.msra.mxu1 %v6622_v24 }
 0x4b4   :  { %1908 = vmatprep.subr.bf16.mxu0 %v6623_v16  ;;  %1949 = vmatprep.subr.bf16.mxu1 %v6624_v59 }
 0x4b7   :  { %1909 = vmatpush1.bf16.msra.mxu0 %v6625_v13  ;;  %1950 = vmatpush1.bf16.msra.mxu1 %v6626_v18 }
 0x4b8   :  { %1910 = vmatprep.subr.bf16.mxu0 %v6627_v20  ;;  %1951 = vmatprep.subr.bf16.mxu1 %v6628_v35 }
 0x4bb   :  { %1911 = vmatpush1.bf16.msra.mxu0 %v6629_v23  ;;  %1952 = vmatpush1.bf16.msra.mxu1 %v6630_v19 }
 0x4bc   :  { %1912 = vmatprep.subr.bf16.mxu0 %v6631_v21  ;;  %1953 = vmatprep.subr.bf16.mxu1 %v6632_v12 }
 0x4bf   :  { %1913 = vmatpush1.bf16.msra.mxu0 %v6633_v14  ;;  %1954 = vmatpush1.bf16.msra.mxu1 %v6634_v46 }
 0x4c0   :  { %1914 = vmatprep.subr.bf16.mxu0 %v6635_v15  ;;  %1955 = vmatprep.subr.bf16.mxu1 %v6636_v0 }
 0x4c3   :  { %1915 = vmatpush1.bf16.msra.mxu0 %v6637_v43  ;;  %1956 = vmatpush1.bf16.msra.mxu1 %v6638_v17 }
 0x4c4   :  { %1916 = vmatprep.subr.bf16.mxu0 %v6639_v42  ;;  %1957 = vmatprep.subr.bf16.mxu1 %v6640_v10 }
 0x4c7   :  { %1917 = vmatpush1.bf16.msra.mxu0 %v6641_v30  ;;  %1958 = vmatpush1.bf16.msra.mxu1 %v6642_v54 }
 0x4c8   :  { %1918 = vmatprep.subr.bf16.mxu0 %v6643_v38  ;;  %1959 = vmatprep.subr.bf16.mxu1 %v6644_v39 }
 0x4cb   :  { %1919 = vmatpush2.bf16.msra.mxu0 %v6645_v40  ;;  %1960 = vmatpush2.bf16.msra.mxu1 %v6646_v41 }
 0x4cc   :  { %1920 = vmatprep.subr.bf16.mxu0 %v6647_v44  ;;  %1961 = vmatprep.subr.bf16.mxu1 %v6648_v48 }
 0x4cf   :  { %1921 = vmatpush2.bf16.msra.mxu0 %v6649_v49  ;;  %1962 = vmatpush2.bf16.msra.mxu1 %v6650_v51 }
 0x4d0   :  { %1922 = vmatprep.subr.bf16.mxu0 %v6651_v52  ;;  %1963 = vmatprep.subr.bf16.mxu1 %v6652_v27 }
 0x4d3   :  { %1923 = vmatpush2.bf16.msra.mxu0 %v6653_v4  ;;  %1964 = vmatpush2.bf16.msra.mxu1 %v6654_v36  ;;  %v6680_v4 = vld [vmem:[#allocation10_spill] sm:$0xff] }
 0x4d4   :  { %1924 = vmatprep.subr.bf16.mxu0 %v6655_v6  ;;  %1965 = vmatprep.subr.bf16.mxu1 %v6656_v56 }
 0x4d7   :  { %1925 = vmatpush2.bf16.msra.mxu0 %v6657_v57  ;;  %1966 = vmatpush2.bf16.msra.mxu1 %v6658_v50 }
 0x4d8   :  { %1926 = vmatprep.subr.bf16.mxu0 %v6659_v25  ;;  %1967 = vmatprep.subr.bf16.mxu1 %v6660_v45 }
 0x4db   :  { %1927 = vmatpush2.bf16.msra.mxu0 %v6661_v33  ;;  %1968 = vmatpush2.bf16.msra.mxu1 %v6662_v47  ;;  %v6672_v33 = vld [vmem:[#allocation12_spill] sm:$0xff]  ;;  %v6673_v47 = vld [vmem:[#allocation13_spill] sm:$0xff] }
 0x4dc   :  { %1928 = vmatprep.subr.bf16.mxu0 %v6663_v34  ;;  %1969 = vmatprep.subr.bf16.mxu1 %v6664_v3  ;;  %v6674_v34 = vld [vmem:[#allocation14_spill] sm:$0xff]  ;;  %v5218_v3 = vld [vmem:[#allocation2 + $0xe4] ss:$16 sps:$4 sm:$0xff]  }
 0x4dd   :  { %6675 = vst [vmem:[#allocation15_spill] sm:$0xff] %v5218_v3 }
 0x4df   :  { %1929 = vmatpush2.bf16.msra.mxu0 %v6665_v9  ;;  %1970 = vmatpush2.bf16.msra.mxu1 %v6666_v5  ;;  %v5221_v5 = vld [vmem:[#allocation2 + $0xec] ss:$16 sps:$4 sm:$0xff]  }
 0x4e0   :  { %1930 = vmatprep.subr.bf16.mxu0 %v6667_v37  ;;  %1971 = vmatprep.subr.bf16.mxu1 %v6668_v28  ;;  %6676 = vst [vmem:[#allocation16_spill] sm:$0xff] %v5221_v5  ;;  %v6677_v37 = vld [vmem:[#allocation7_spill] sm:$0xff] }
 0x4e3   :  { %1931 = vmatpush2.bf16.msra.mxu0 %v6669_v7  ;;  %1972 = vmatpush2.bf16.msra.mxu1 %v6670_v11 }
 0x4e4   :  { %1932 = vmatprep.subr.bf16.mxu0 %v6671_v8  ;;  %1973 = vmatprep.subr.bf16.mxu1 %v6672_v33  ;;  %v6678_v33 = vld [vmem:[#allocation8_spill] sm:$0xff] }
 0x4e7   :  { %1933 = vmatpush2.bf16.msra.mxu0 %v6673_v47  ;;  %1974 = vmatpush2.bf16.msra.mxu1 %v6674_v34 }
 0x4e8   :  { %2008 = vmatprep.subr.bf16.mxu0 %v5218_v3  ;;  %2049 = vmatprep.subr.bf16.mxu1 %v5221_v5  ;;  %v6679_v3 = vld [vmem:[#allocation9_spill] sm:$0xff] }
 0x54a   :  { %v1718_v28 = vpop.f32.mrf.mxu0  ;;  %v1759_v7 = vpop.f32.mrf.mxu1 }
 0x54b   :  { %v1719_v11 = vadd.f32 %v1718_v28, %v6677_v37  ;;  %v1760_v27 = vadd.f32 %v1759_v7, %v6680_v4 }
 0x54c   :  { %v1720_v9 = vpop.f32.mrf.mxu0  ;;  %v1761_v8 = vpop.f32.mrf.mxu1 }
 0x54d   :  { %v2929_v45 = vmul.f32 -1.442695, %v1719_v11  ;;  %v1721_v25 = vadd.f32 %v1720_v9, %v6678_v33  ;;  %v1762_v6 = vadd.f32 %v1761_v8, %v6679_v3  ;;  %v6682_v3 = vld [vmem:[#allocation75_spill] sm:$0xff] }
 0x54e   :  { %v1722_v47 = vpop.f32.mrf.mxu0  ;;  %v1763_v50 = vpop.f32.mrf.mxu1 }
 0x54f   :  { %3283 = vpow2.f32 %v2929_v45  ;;  %v2930_v34 = vmul.f32 -1.442695, %v1721_v25  ;;  %v2931_v36 = vmul.f32 -1.442695, %v1762_v6  ;;  %v6681_v25 = vld [vmem:[#allocation73_spill] sm:$0xff] }
 0x550   :  { %v1723_v57 = vpop.f32.mrf.mxu0  ;;  %v1764_v56 = vpop.f32.mrf.mxu1 }
 0x551   :  { %3285 = vpow2.f32 %v2930_v34 }
 0x552   :  { %3287 = vpow2.f32 %v2931_v36 }
 0x55c   :  { %v3284_v5 = vpop.eup %3283 }
 0x55d   :  { %v1769_v52 = vadd.f32 1.0, %v3284_v5 }
 0x55e   :  { %v3286_v28 = vpop.eup %3285 }
 0x55f   :  { %3289 = vrcp.f32 %v1769_v52  ;;  %v1775_v11 = vadd.f32 1.0, %v3286_v28  ;;  %v3288_v45 = vpop.eup %3287 }
 0x560   :  { %3291 = vtanh.f32 %v1760_v27  ;;  %v1782_v5 = vadd.f32 1.0, %v3288_v45 }
 0x561   :  { %3293 = vrcp.f32 %v1775_v11 }
 0x56a   :  { %v1824_v47 = vpop.f32.mrf.mxu0  ;;  %v1865_v50 = vpop.f32.mrf.mxu1 }
 0x56b   :  { %v1872_v57 = vadd.f32 %v1824_v47, %v6681_v25  ;;  %v6683_v25 = vld [vmem:[#allocation76_spill] sm:$0xff] }
 0x56c   :  { %v3290_v56 = vpop.eup %3289  ;;  %v1826_v34 = vpop.f32.mrf.mxu0 }
 0x56d   :  { %v1867_v9 = vpop.f32.mrf.mxu1  ;;  %v3292_v8 = vpop.eup %3291  ;;  %v2932_v6 = vmul.f32 -1.442695, %v1872_v57  ;;  %v1873_v33 = vadd.f32 %v1826_v34, %v6682_v3  ;;  %v6684_v3 = vld [vmem:[#allocation74_spill] sm:$0xff] }
 0x56e   :  { %v3294_v7 = vpop.eup %3293  ;;  %v1828_v4 = vpop.f32.mrf.mxu0  ;;  %v1786_v52 = vmul.f32 %v3292_v8, %v3290_v56  ;;  %v1875_v57 = vadd.f32 %v1867_v9, %v6683_v25  ;;  %v1874_v34 = vadd.f32 %v1865_v50, %v6684_v3 }
 0x56f   :  { %v1869_v36 = vpop.f32.mrf.mxu1  ;;  %v1785_v27 = vmul.f32 %v3294_v7, %v5113_v26  ;;  %3295 = vpow2.f32 %v2932_v6  ;;  %v2933_v28 = vmul.f32 -1.442695, %v1873_v33 }
 0x570   :  { %v1829_v11 = vpop.f32.mrf.mxu0  ;;  %v2934_v45 = vmul.f32 -1.442695, %v1875_v57 }
 0x571   :  { %v1870_v37 = vpop.f32.mrf.mxu1  ;;  %3297 = vpow2.f32 %v2933_v28  ;;  %v5231_v47 = vadd.f32 %v1786_v52, %v1785_v27 }
 0x572   :  { %3299 = vrcp.f32 %v1782_v5 }
 0x573   :  { %3301 = vtanh.f32 %v5231_v47 }
 0x574   :  { %3303 = vtanh.f32 %v1874_v34 }
 0x575   :  { %3305 = vpow2.f32 %v2934_v45  ;;  %v5244_v45 = vld [vmem:[#allocation2 + $0xe0] ss:$16 sps:$4 sm:$0xff]  }
 0x57c   :  { %v3296_v4 = vpop.eup %3295 }
 0x57d   :  { %v1879_v36 = vadd.f32 1.0, %v3296_v4  ;;  %v5247_v4 = vld [vmem:[#allocation2 + $0xe8] ss:$16 sps:$4 sm:$0xff]  }
 0x57e   :  { %v3298_v56 = vpop.eup %3297 }
 0x57f   :  { %v3300_v26 = vpop.eup %3299  ;;  %3307 = vrcp.f32 %v1879_v36  ;;  %v1885_v33 = vadd.f32 1.0, %v3298_v56  ;;  %v5253_v36 = vld [vmem:[#allocation2 + $0xcc] ss:$16 sps:$4 sm:$0xff]   ;;  %v5258_v56 = vld [vmem:[#allocation2 + $0xc0] ss:$16 sps:$4 sm:$0xff]  }
 0x580   :  { %v3302_v37 = vpop.eup %3301 }
 0x581   :  { %3309 = vrcp.f32 %v1885_v33  ;;  %v1789_v8 = vmul.f32 %v3302_v37, %v3300_v26  ;;  %v3304_v7 = vpop.eup %3303  ;;  %v5261_v26 = vld [vmem:[#allocation2 + $0xc8] ss:$16 sps:$4 sm:$0xff]   ;;  %v5264_v33 = vld [vmem:[#allocation2 + $0xa4] ss:$16 sps:$4 sm:$0xff]   ;;  %v5267_v37 = vld [vmem:[#allocation2 + $0xac] ss:$16 sps:$4 sm:$0xff]  }
 0x582   :  { %v3306_v5 = vpop.eup %3305 }
 0x583   :  { %v1901_v6 = vpack.c.bf16 %v1789_v8, %v1789_v8  ;;  %v1892_v27 = vadd.f32 1.0, %v3306_v5  ;;  %v5270_v8 = vld [vmem:[#allocation2 + $0xa0] ss:$16 sps:$4 sm:$0xff]   ;;  %v5279_v5 = vld [vmem:[#allocation2 + $0x8c] ss:$16 sps:$4 sm:$0xff]  }
 0x585   :  { %1934 = vmatprep.mubr.bf16.mxu0 %v1901_v6  ;;  %1975 = vmatprep.mubr.bf16.mxu1 %v1901_v6  ;;  %3311 = vrcp.f32 %v1892_v27  ;;  %v5273_v6 = vld [vmem:[#allocation2 + $0xa8] ss:$16 sps:$4 sm:$0xff]   ;;  %v5291_v27 = vld [vmem:[#allocation2 + $0x6c] ss:$16 sps:$4 sm:$0xff]  }
 0x586   :  { %6686 = vst [vmem:[#allocation18_spill] sm:$0xff] %v5291_v27 }
 0x58c   :  { %v3308_v9 = vpop.eup %3307 }
 0x58d   :  { %v1896_v52 = vmul.f32 %v3308_v9, %v3304_v7  ;;  %v5276_v7 = vld [vmem:[#allocation2 + $0x84] ss:$16 sps:$4 sm:$0xff]   ;;  %v5282_v9 = vld [vmem:[#allocation2 + $0x80] ss:$16 sps:$4 sm:$0xff]  }
 0x58e   :  { %v3310_v50 = vpop.eup %3309 }
 0x58f   :  { %v1895_v28 = vmul.f32 %v3310_v50, %v5119_v29  ;;  %v5250_v29 = vld [vmem:[#allocation2 + $0xc4] ss:$16 sps:$4 sm:$0xff]  }
 0x590   :  { %v5288_v50 = vld [vmem:[#allocation2 + $0x64] ss:$16 sps:$4 sm:$0xff]  }
 0x591   :  { %v5237_v11 = vadd.f32 %v1896_v52, %v1895_v28  ;;  %v5285_v52 = vld [vmem:[#allocation2 + $0x88] ss:$16 sps:$4 sm:$0xff]   ;;  %6685 = vst [vmem:[#allocation17_spill] sm:$0xff] %v5288_v50  ;;  %v5294_v28 = vld [vmem:[#allocation2 + $0x60] ss:$16 sps:$4 sm:$0xff]  }
 0x592   :  { %v3312_v25 = vpop.eup %3311  ;;  %6687 = vst [vmem:[#allocation19_spill] sm:$0xff] %v5294_v28 }
 0x593   :  { %3313 = vtanh.f32 %v5237_v11 }
 0x5a0   :  { %v3314_v57 = vpop.eup %3313 }
 0x5a1   :  { %v1899_v3 = vmul.f32 %v3314_v57, %v3312_v25  ;;  %v5297_v25 = vld [vmem:[#allocation2 + $0x68] ss:$16 sps:$4 sm:$0xff]   ;;  %v5300_v57 = vld [vmem:[#allocation2 + $0x44] ss:$16 sps:$4 sm:$0xff]  }
 0x5a2   :  { %6688 = vst [vmem:[#allocation20_spill] sm:$0xff] %v5297_v25  ;;  %6689 = vst [vmem:[#allocation69_spill] sm:$0xff] %v5300_v57 }
 0x5a3   :  { %v5240_v34 = vpack.c.bf16 %v1899_v3, %v1899_v3  ;;  %v5303_v3 = vld [vmem:[#allocation2 + $0x4c] ss:$16 sps:$4 sm:$0xff]  }
 0x5a4   :  { %6690 = vst [vmem:[#allocation71_spill] sm:$0xff] %v5303_v3 }
 0x5a5   :  { %1935 = vmatmul.mubr.bf16.vlgmr.msra.gmra.mxu0 %v5240_v34  ;;  %1976 = vmatmul.mubr.bf16.vlgmr.msra.gmra.mxu1 %v5240_v34 }
 0x5a6   :  { %2009 = vmatpush1.bf16.msra.mxu0 %v5244_v45  ;;  %2050 = vmatpush1.bf16.msra.mxu1 %v5247_v4 }
 0x5a7   :  { %2010 = vmatprep.subr.bf16.mxu0 %v5250_v29  ;;  %2051 = vmatprep.subr.bf16.mxu1 %v5253_v36 }
 0x5a8   :  { %2040 = vmatprep.mubr.bf16.mxu0 %v6438_v31  ;;  %2081 = vmatprep.mubr.bf16.mxu1 %v6438_v31 }
 0x5aa   :  { %2011 = vmatpush1.bf16.msra.mxu0 %v5258_v56  ;;  %2052 = vmatpush1.bf16.msra.mxu1 %v5261_v26 }
 0x5ab   :  { %2012 = vmatprep.subr.bf16.mxu0 %v5264_v33  ;;  %2053 = vmatprep.subr.bf16.mxu1 %v5267_v37 }
 0x5ae   :  { %2013 = vmatpush1.bf16.msra.mxu0 %v5270_v8  ;;  %2054 = vmatpush1.bf16.msra.mxu1 %v5273_v6 }
 0x5af   :  { %2014 = vmatprep.subr.bf16.mxu0 %v5276_v7  ;;  %2055 = vmatprep.subr.bf16.mxu1 %v5279_v5 }
 0x5b2   :  { %2015 = vmatpush1.bf16.msra.mxu0 %v5282_v9  ;;  %2056 = vmatpush1.bf16.msra.mxu1 %v5285_v52 }
 0x5b3   :  { %2016 = vmatprep.subr.bf16.mxu0 %v5288_v50  ;;  %2057 = vmatprep.subr.bf16.mxu1 %v5291_v27  ;;  %v5306_v50 = vld [vmem:[#allocation2 + $0x40] ss:$16 sps:$4 sm:$0xff]   ;;  %v5309_v27 = vld [vmem:[#allocation2 + $0x48] ss:$16 sps:$4 sm:$0xff]  }
 0x5b4   :  { %6691 = vst [vmem:[#allocation72_spill] sm:$0xff] %v5306_v50  ;;  %6692 = vst [vmem:[#allocation70_spill] sm:$0xff] %v5309_v27 }
 0x5b6   :  { %2017 = vmatpush1.bf16.msra.mxu0 %v5294_v28  ;;  %2058 = vmatpush1.bf16.msra.mxu1 %v5297_v25  ;;  %v5312_v28 = vld [vmem:[#allocation2 + $0x24] ss:$16 sps:$4 sm:$0xff]   ;;  %v5315_v25 = vld [vmem:[#allocation2 + $0x2c] ss:$16 sps:$4 sm:$0xff]  }
 0x5b7   :  { %2018 = vmatprep.subr.bf16.mxu0 %v5300_v57  ;;  %2059 = vmatprep.subr.bf16.mxu1 %v5303_v3  ;;  %6693 = vst [vmem:[#allocation21_spill] sm:$0xff] %v5312_v28  ;;  %6694 = vst [vmem:[#allocation22_spill] sm:$0xff] %v5315_v25  ;;  %v5318_v57 = vld [vmem:[#allocation2 + $0x20] ss:$16 sps:$4 sm:$0xff]   ;;  %v5321_v3 = vld [vmem:[#allocation2 + $0x28] ss:$16 sps:$4 sm:$0xff]  }
 0x5ba   :  { %2019 = vmatpush1.bf16.msra.mxu0 %v5306_v50  ;;  %2060 = vmatpush1.bf16.msra.mxu1 %v5309_v27  ;;  %v5324_v50 = vld [vmem:[#allocation2 + $0x4] ss:$16 sps:$4 sm:$0xff]   ;;  %v5327_v27 = vld [vmem:[#allocation2 + $0xc] ss:$16 sps:$4 sm:$0xff]  }
 0x5bb   :  { %2020 = vmatprep.subr.bf16.mxu0 %v5312_v28  ;;  %2061 = vmatprep.subr.bf16.mxu1 %v5315_v25  ;;  %v5330_v28 = vld [vmem:[#allocation2] ss:$16 sps:$4 sm:$0xff]   ;;  %v5333_v25 = vld [vmem:[#allocation2 + $0x8] ss:$16 sps:$4 sm:$0xff]  }
 0x5be   :  { %2021 = vmatpush1.bf16.msra.mxu0 %v5318_v57  ;;  %2062 = vmatpush1.bf16.msra.mxu1 %v5321_v3 }
 0x5bf   :  { %2022 = vmatprep.subr.bf16.mxu0 %v5324_v50  ;;  %2063 = vmatprep.subr.bf16.mxu1 %v5327_v27 }
 0x5c2   :  { %2023 = vmatpush1.bf16.msra.mxu0 %v5330_v28  ;;  %2064 = vmatpush1.bf16.msra.mxu1 %v5333_v25 }
 0x5c3   :  { %2120 = vmatprep.subr.bf16.mxu0 %v4723_v55  ;;  %2161 = vmatprep.subr.bf16.mxu1 %v4729_v58  ;;  %v6695_v55 = vld [vmem:[#allocation46_spill] sm:$0xff]  ;;  %v6696_v58 = vld [vmem:[#allocation47_spill] sm:$0xff] }
 0x5c5   :  { %2041 = vmatmul.mubr.bf16.vlgmr.msra.gmra.mxu0 %v5240_v34  ;;  %2082 = vmatmul.mubr.bf16.vlgmr.msra.gmra.mxu1 %v5240_v34  ;;  %v6723_v34 = vld [vmem:[#allocation9_spill] sm:$0xff] }
 0x5c6   :  { %2121 = vmatpush1.bf16.msra.mxu0 %v4735_v60  ;;  %2162 = vmatpush1.bf16.msra.mxu1 %v4741_v61  ;;  %v6697_v60 = vld [vmem:[#allocation48_spill] sm:$0xff]  ;;  %v6698_v61 = vld [vmem:[#allocation49_spill] sm:$0xff] }
 0x5c7   :  { %2122 = vmatprep.subr.bf16.mxu0 %v4747_v62  ;;  %2163 = vmatprep.subr.bf16.mxu1 %v4753_v63  ;;  %v6699_v62 = vld [vmem:[#allocation50_spill] sm:$0xff]  ;;  %v6700_v63 = vld [vmem:[#allocation51_spill] sm:$0xff] }
 0x5ca   :  { %2123 = vmatpush1.bf16.msra.mxu0 %v4759_v32  ;;  %2164 = vmatpush1.bf16.msra.mxu1 %v4765_v1  ;;  %v6701_v32 = vld [vmem:[#allocation52_spill] sm:$0xff]  ;;  %v6702_v1 = vld [vmem:[#allocation53_spill] sm:$0xff] }
 0x5cb   :  { %2124 = vmatprep.subr.bf16.mxu0 %v4771_v2  ;;  %2165 = vmatprep.subr.bf16.mxu1 %v4777_v53  ;;  %v6703_v2 = vld [vmem:[#allocation54_spill] sm:$0xff]  ;;  %v6704_v53 = vld [vmem:[#allocation55_spill] sm:$0xff] }
 0x5ce   :  { %2125 = vmatpush1.bf16.msra.mxu0 %v6621_v22  ;;  %2166 = vmatpush1.bf16.msra.mxu1 %v6622_v24  ;;  %v6705_v22 = vld [vmem:[#allocation56_spill] sm:$0xff]  ;;  %v6706_v24 = vld [vmem:[#allocation57_spill] sm:$0xff] }
 0x5cf   :  { %2126 = vmatprep.subr.bf16.mxu0 %v6623_v16  ;;  %2167 = vmatprep.subr.bf16.mxu1 %v6624_v59  ;;  %v6707_v16 = vld [vmem:[#allocation58_spill] sm:$0xff]  ;;  %v6708_v59 = vld [vmem:[#allocation59_spill] sm:$0xff] }
 0x5d2   :  { %2127 = vmatpush1.bf16.msra.mxu0 %v6625_v13  ;;  %2168 = vmatpush1.bf16.msra.mxu1 %v6626_v18  ;;  %v6709_v13 = vld [vmem:[#allocation5_spill] sm:$0xff]  ;;  %v6710_v18 = vld [vmem:[#allocation6_spill] sm:$0xff] }
 0x5d3   :  { %2128 = vmatprep.subr.bf16.mxu0 %v6627_v20  ;;  %2169 = vmatprep.subr.bf16.mxu1 %v6628_v35  ;;  %v6711_v20 = vld [vmem:[#allocation65_spill] sm:$0xff]  ;;  %v6712_v35 = vld [vmem:[#allocation67_spill] sm:$0xff] }
 0x5d6   :  { %2129 = vmatpush1.bf16.msra.mxu0 %v6629_v23  ;;  %2170 = vmatpush1.bf16.msra.mxu1 %v6630_v19  ;;  %v6713_v23 = vld [vmem:[#allocation68_spill] sm:$0xff]  ;;  %v6714_v19 = vld [vmem:[#allocation66_spill] sm:$0xff] }
 0x5d7   :  { %2130 = vmatprep.subr.bf16.mxu0 %v6631_v21  ;;  %2171 = vmatprep.subr.bf16.mxu1 %v6632_v12  ;;  %v6715_v21 = vld [vmem:[#allocation11_spill] sm:$0xff]  ;;  %v6716_v12 = vld [vmem:[#allocation12_spill] sm:$0xff] }
 0x5da   :  { %2131 = vmatpush1.bf16.msra.mxu0 %v6633_v14  ;;  %2172 = vmatpush1.bf16.msra.mxu1 %v6634_v46  ;;  %v6717_v14 = vld [vmem:[#allocation13_spill] sm:$0xff]  ;;  %v6718_v46 = vld [vmem:[#allocation14_spill] sm:$0xff] }
 0x5db   :  { %2132 = vmatprep.subr.bf16.mxu0 %v6635_v15  ;;  %2173 = vmatprep.subr.bf16.mxu1 %v6636_v0  ;;  %v6719_v15 = vld [vmem:[#allocation15_spill] sm:$0xff]  ;;  %v6720_v0 = vld [vmem:[#allocation16_spill] sm:$0xff] }
 0x5de   :  { %2133 = vmatpush1.bf16.msra.mxu0 %v6637_v43  ;;  %2174 = vmatpush1.bf16.msra.mxu1 %v6638_v17 }
 0x5df   :  { %2134 = vmatprep.subr.bf16.mxu0 %v6639_v42  ;;  %2175 = vmatprep.subr.bf16.mxu1 %v6640_v10  ;;  %v6721_v42 = vld [vmem:[#allocation7_spill] sm:$0xff] }
 0x5e2   :  { %2135 = vmatpush1.bf16.msra.mxu0 %v6641_v30  ;;  %2176 = vmatpush1.bf16.msra.mxu1 %v6642_v54 }
 0x5e3   :  { %2136 = vmatprep.subr.bf16.mxu0 %v6643_v38  ;;  %2177 = vmatprep.subr.bf16.mxu1 %v6644_v39  ;;  %v6722_v39 = vld [vmem:[#allocation8_spill] sm:$0xff] }
 0x5e6   :  { %2137 = vmatpush2.bf16.msra.mxu0 %v6645_v40  ;;  %2178 = vmatpush2.bf16.msra.mxu1 %v6646_v41 }
 0x5e7   :  { %2138 = vmatprep.subr.bf16.mxu0 %v6647_v44  ;;  %2179 = vmatprep.subr.bf16.mxu1 %v6648_v48 }
 0x5ea   :  { %2139 = vmatpush2.bf16.msra.mxu0 %v6649_v49  ;;  %2180 = vmatpush2.bf16.msra.mxu1 %v6650_v51 }
 0x5eb   :  { %2140 = vmatprep.subr.bf16.mxu0 %v6695_v55  ;;  %2181 = vmatprep.subr.bf16.mxu1 %v6696_v58 }
 0x5ee   :  { %2141 = vmatpush2.bf16.msra.mxu0 %v6697_v60  ;;  %2182 = vmatpush2.bf16.msra.mxu1 %v6698_v61  ;;  %v6724_v61 = vld [vmem:[#allocation10_spill] sm:$0xff] }
 0x5ef   :  { %2142 = vmatprep.subr.bf16.mxu0 %v6699_v62  ;;  %2183 = vmatprep.subr.bf16.mxu1 %v6700_v63 }
 0x5f2   :  { %2143 = vmatpush2.bf16.msra.mxu0 %v6701_v32  ;;  %2184 = vmatpush2.bf16.msra.mxu1 %v6702_v1 }
 0x5f3   :  { %2144 = vmatprep.subr.bf16.mxu0 %v6703_v2  ;;  %2185 = vmatprep.subr.bf16.mxu1 %v6704_v53 }
 0x5f6   :  { %2145 = vmatpush2.bf16.msra.mxu0 %v6705_v22  ;;  %2186 = vmatpush2.bf16.msra.mxu1 %v6706_v24  ;;  %v6725_v24 = vld [vmem:[#allocation77_spill] sm:$0xff] }
 0x5f7   :  { %2146 = vmatprep.subr.bf16.mxu0 %v6707_v16  ;;  %2187 = vmatprep.subr.bf16.mxu1 %v6708_v59 }
 0x5fa   :  { %2147 = vmatpush2.bf16.msra.mxu0 %v6709_v13  ;;  %2188 = vmatpush2.bf16.msra.mxu1 %v6710_v18 }
 0x5fb   :  { %2148 = vmatprep.subr.bf16.mxu0 %v6711_v20  ;;  %2189 = vmatprep.subr.bf16.mxu1 %v6712_v35 }
 0x5fe   :  { %2149 = vmatpush2.bf16.msra.mxu0 %v6713_v23  ;;  %2190 = vmatpush2.bf16.msra.mxu1 %v6714_v19  ;;  %v6726_v23 = vld [vmem:[#allocation79_spill] sm:$0xff] }
 0x5ff   :  { %2150 = vmatprep.subr.bf16.mxu0 %v6715_v21  ;;  %2191 = vmatprep.subr.bf16.mxu1 %v6716_v12 }
 0x602   :  { %2151 = vmatpush2.bf16.msra.mxu0 %v6717_v14  ;;  %2192 = vmatpush2.bf16.msra.mxu1 %v6718_v46 }
 0x603   :  { %2226 = vmatprep.subr.bf16.mxu0 %v6719_v15  ;;  %2267 = vmatprep.subr.bf16.mxu1 %v6720_v0 }
 0x665   :  { %v1936_v43 = vpop.f32.mrf.mxu0  ;;  %v1977_v17 = vpop.f32.mrf.mxu1 }
 0x666   :  { %v1937_v10 = vadd.f32 %v1936_v43, %v6721_v42  ;;  %v1978_v62 = vadd.f32 %v1977_v17, %v6724_v61 }
 0x667   :  { %v1938_v30 = vpop.f32.mrf.mxu0  ;;  %v1979_v54 = vpop.f32.mrf.mxu1 }
 0x668   :  { %v2935_v38 = vmul.f32 -1.442695, %v1937_v10  ;;  %v1939_v40 = vadd.f32 %v1938_v30, %v6722_v39  ;;  %v1980_v55 = vadd.f32 %v1979_v54, %v6723_v34 }
 0x669   :  { %v1940_v41 = vpop.f32.mrf.mxu0  ;;  %v1981_v44 = vpop.f32.mrf.mxu1 }
 0x66a   :  { %3315 = vpow2.f32 %v2935_v38  ;;  %v2936_v48 = vmul.f32 -1.442695, %v1939_v40  ;;  %v2937_v58 = vmul.f32 -1.442695, %v1980_v55  ;;  %v6727_v40 = vld [vmem:[#allocation80_spill] sm:$0xff]  ;;  %v6728_v44 = vld [vmem:[#allocation78_spill] sm:$0xff] }
 0x66b   :  { %v1941_v49 = vpop.f32.mrf.mxu0  ;;  %v1982_v51 = vpop.f32.mrf.mxu1 }
 0x66c   :  { %3317 = vpow2.f32 %v2936_v48 }
 0x66d   :  { %3319 = vpow2.f32 %v2937_v58 }
 0x677   :  { %v3316_v60 = vpop.eup %3315 }
 0x678   :  { %v1987_v63 = vadd.f32 1.0, %v3316_v60 }
 0x679   :  { %v3318_v32 = vpop.eup %3317 }
 0x67a   :  { %3321 = vrcp.f32 %v1987_v63  ;;  %v1993_v1 = vadd.f32 1.0, %v3318_v32  ;;  %v3320_v22 = vpop.eup %3319 }
 0x67b   :  { %3323 = vtanh.f32 %v1978_v62  ;;  %v2000_v12 = vadd.f32 1.0, %v3320_v22 }
 0x67c   :  { %3325 = vrcp.f32 %v1993_v1 }
 0x685   :  { %v2042_v2 = vpop.f32.mrf.mxu0  ;;  %v2083_v53 = vpop.f32.mrf.mxu1 }
 0x686   :  { %v2090_v16 = vadd.f32 %v2042_v2, %v6725_v24  ;;  %v2092_v48 = vadd.f32 %v2083_v53, %v6728_v44  ;;  %v5473_v44 = vld [vmem:[%s6005_s4 + $0xe8] ss:$16 sps:$4 sm:$0xff]  }
 0x687   :  { %v3322_v59 = vpop.eup %3321  ;;  %v2044_v13 = vpop.f32.mrf.mxu0 }
 0x688   :  { %v2085_v18 = vpop.f32.mrf.mxu1  ;;  %v3324_v20 = vpop.eup %3323  ;;  %v2938_v35 = vmul.f32 -1.442695, %v2090_v16  ;;  %v2091_v19 = vadd.f32 %v2044_v13, %v6726_v23 }
 0x689   :  { %v3326_v21 = vpop.eup %3325  ;;  %v2046_v14 = vpop.f32.mrf.mxu0  ;;  %v2004_v43 = vmul.f32 %v3324_v20, %v3322_v59  ;;  %v2093_v41 = vadd.f32 %v2085_v18, %v6727_v40  ;;  %v5461_v40 = vld [vmem:[%s6005_s4 + $0xec] ss:$16 sps:$4 sm:$0xff]  }
 0x68a   :  { %v2087_v46 = vpop.f32.mrf.mxu1  ;;  %v2003_v17 = vmul.f32 %v3326_v21, %v5231_v47  ;;  %3327 = vpow2.f32 %v2938_v35  ;;  %v2939_v10 = vmul.f32 -1.442695, %v2091_v19  ;;  %v6730_v19 = vld [vmem:[#allocation18_spill] sm:$0xff]  ;;  %v6731_v21 = vld [vmem:[#allocation19_spill] sm:$0xff]  ;;  %v6733_v14 = vld [vmem:[#allocation69_spill] sm:$0xff] }
 0x68b   :  { %v2047_v30 = vpop.f32.mrf.mxu0  ;;  %v2940_v49 = vmul.f32 -1.442695, %v2093_v41  ;;  %v6734_v46 = vld [vmem:[#allocation71_spill] sm:$0xff] }
 0x68c   :  { %v2088_v54 = vpop.f32.mrf.mxu1  ;;  %3329 = vpow2.f32 %v2939_v10  ;;  %v5411_v38 = vadd.f32 %v2004_v43, %v2003_v17  ;;  %v6735_v43 = vld [vmem:[#allocation72_spill] sm:$0xff]  ;;  %v6736_v17 = vld [vmem:[#allocation70_spill] sm:$0xff]  ;;  %v6737_v10 = vld [vmem:[#allocation21_spill] sm:$0xff] }
 0x68d   :  { %3331 = vrcp.f32 %v2000_v12  ;;  %v6732_v12 = vld [vmem:[#allocation20_spill] sm:$0xff]  ;;  %v6738_v30 = vld [vmem:[#allocation22_spill] sm:$0xff]  ;;  %v5455_v54 = vld [vmem:[%s6005_s4 + $0xe4] ss:$16 sps:$4 sm:$0xff]  }
 0x68e   :  { %3333 = vtanh.f32 %v5411_v38  ;;  %v5467_v41 = vld [vmem:[%s6005_s4 + $0xe0] ss:$16 sps:$4 sm:$0xff]  }
 0x68f   :  { %3335 = vtanh.f32 %v2092_v48  ;;  %v5479_v48 = vld [vmem:[%s6005_s4 + $0xc4] ss:$16 sps:$4 sm:$0xff]  }
 0x690   :  { %3337 = vpow2.f32 %v2940_v49  ;;  %v5485_v49 = vld [vmem:[%s6005_s4 + $0xcc] ss:$16 sps:$4 sm:$0xff]  }
 0x697   :  { %v3328_v51 = vpop.eup %3327 }
 0x698   :  { %v2097_v55 = vadd.f32 1.0, %v3328_v51  ;;  %v5491_v51 = vld [vmem:[%s6005_s4 + $0xc0] ss:$16 sps:$4 sm:$0xff]  }
 0x699   :  { %v3330_v58 = vpop.eup %3329 }
 0x69a   :  { %v3332_v47 = vpop.eup %3331  ;;  %3339 = vrcp.f32 %v2097_v55  ;;  %v2103_v60 = vadd.f32 1.0, %v3330_v58  ;;  %v5497_v55 = vld [vmem:[%s6005_s4 + $0xc8] ss:$16 sps:$4 sm:$0xff]   ;;  %v5503_v58 = vld [vmem:[%s6005_s4 + $0xa4] ss:$16 sps:$4 sm:$0xff]  }
 0x69b   :  { %v3334_v62 = vpop.eup %3333 }
 0x69c   :  { %3341 = vrcp.f32 %v2103_v60  ;;  %v2007_v63 = vmul.f32 %v3334_v62, %v3332_v47  ;;  %v3336_v1 = vpop.eup %3335  ;;  %v5509_v47 = vld [vmem:[%s6005_s4 + $0xac] ss:$16 sps:$4 sm:$0xff]   ;;  %v5515_v60 = vld [vmem:[%s6005_s4 + $0xa0] ss:$16 sps:$4 sm:$0xff]   ;;  %v5521_v62 = vld [vmem:[%s6005_s4 + $0xa8] ss:$16 sps:$4 sm:$0xff]  }
 0x69d   :  { %v3338_v2 = vpop.eup %3337  ;;  %6739 = vst [vmem:[#allocation23_spill] sm:$0xff] %v5515_v60  ;;  %6740 = vst [vmem:[#allocation24_spill] sm:$0xff] %v5521_v62 }
 0x69e   :  { %v2119_v32 = vpack.c.bf16 %v2007_v63, %v2007_v63  ;;  %v2110_v16 = vadd.f32 1.0, %v3338_v2  ;;  %v5527_v63 = vld [vmem:[%s6005_s4 + $0x84] ss:$16 sps:$4 sm:$0xff]   ;;  %v5545_v2 = vld [vmem:[%s6005_s4 + $0x88] ss:$16 sps:$4 sm:$0xff]  }
 0x69f   :  { %6741 = vst [vmem:[#allocation25_spill] sm:$0xff] %v5527_v63  ;;  %6744 = vst [vmem:[#allocation28_spill] sm:$0xff] %v5545_v2 }
 0x6a0   :  { %2152 = vmatprep.mubr.bf16.mxu0 %v2119_v32  ;;  %2193 = vmatprep.mubr.bf16.mxu1 %v2119_v32  ;;  %3343 = vrcp.f32 %v2110_v16  ;;  %v5533_v32 = vld [vmem:[%s6005_s4 + $0x8c] ss:$16 sps:$4 sm:$0xff]   ;;  %v5569_v16 = vld [vmem:[%s6005_s4 + $0x68] ss:$16 sps:$4 sm:$0xff]  }
 0x6a1   :  { %6742 = vst [vmem:[#allocation26_spill] sm:$0xff] %v5533_v32  ;;  %6748 = vst [vmem:[#allocation32_spill] sm:$0xff] %v5569_v16 }
 0x6a7   :  { %v3340_v22 = vpop.eup %3339 }
 0x6a8   :  { %v2114_v24 = vmul.f32 %v3340_v22, %v3336_v1  ;;  %v5539_v1 = vld [vmem:[%s6005_s4 + $0x80] ss:$16 sps:$4 sm:$0xff]   ;;  %v5551_v22 = vld [vmem:[%s6005_s4 + $0x64] ss:$16 sps:$4 sm:$0xff]  }
 0x6a9   :  { %v3342_v53 = vpop.eup %3341  ;;  %6743 = vst [vmem:[#allocation27_spill] sm:$0xff] %v5539_v1  ;;  %6745 = vst [vmem:[#allocation29_spill] sm:$0xff] %v5551_v22 }
 0x6aa   :  { %v2113_v59 = vmul.f32 %v3342_v53, %v5237_v11  ;;  %v6729_v11 = vld [vmem:[#allocation17_spill] sm:$0xff] }
 0x6ab   :  { %v5563_v53 = vld [vmem:[%s6005_s4 + $0x60] ss:$16 sps:$4 sm:$0xff]  }
 0x6ac   :  { %v5417_v13 = vadd.f32 %v2114_v24, %v2113_v59  ;;  %v5557_v24 = vld [vmem:[%s6005_s4 + $0x6c] ss:$16 sps:$4 sm:$0xff]   ;;  %6747 = vst [vmem:[#allocation31_spill] sm:$0xff] %v5563_v53  ;;  %v5575_v59 = vld [vmem:[%s6005_s4 + $0x44] ss:$16 sps:$4 sm:$0xff]  }
 0x6ad   :  { %v3344_v18 = vpop.eup %3343  ;;  %6746 = vst [vmem:[#allocation30_spill] sm:$0xff] %v5557_v24  ;;  %6749 = vst [vmem:[#allocation33_spill] sm:$0xff] %v5575_v59 }
 0x6ae   :  { %3345 = vtanh.f32 %v5417_v13 }
 0x6bb   :  { %v3346_v20 = vpop.eup %3345 }
 0x6bc   :  { %v2117_v35 = vmul.f32 %v3346_v20, %v3344_v18  ;;  %v5581_v18 = vld [vmem:[%s6005_s4 + $0x4c] ss:$16 sps:$4 sm:$0xff]   ;;  %v5587_v20 = vld [vmem:[%s6005_s4 + $0x40] ss:$16 sps:$4 sm:$0xff]  }
 0x6bd   :  { %6750 = vst [vmem:[#allocation34_spill] sm:$0xff] %v5581_v18  ;;  %6751 = vst [vmem:[#allocation35_spill] sm:$0xff] %v5587_v20 }
 0x6be   :  { %v2118_v23 = vpack.c.bf16 %v2117_v35, %v2117_v35  ;;  %v5593_v35 = vld [vmem:[%s6005_s4 + $0x48] ss:$16 sps:$4 sm:$0xff]  }
 0x6bf   :  { %6752 = vst [vmem:[#allocation60_spill] sm:$0xff] %v5593_v35 }
 0x6c0   :  { %2153 = vmatmul.mubr.bf16.vlgmr.msra.gmra.mxu0 %v2118_v23  ;;  %2194 = vmatmul.mubr.bf16.vlgmr.msra.gmra.mxu1 %v2118_v23 }
 0x6c1   :  { %2227 = vmatpush1.bf16.msra.mxu0 %v5244_v45  ;;  %2268 = vmatpush1.bf16.msra.mxu1 %v5247_v4 }
 0x6c2   :  { %2228 = vmatprep.subr.bf16.mxu0 %v5250_v29  ;;  %2269 = vmatprep.subr.bf16.mxu1 %v5253_v36 }
 0x6c3   :  { %2258 = vmatprep.mubr.bf16.mxu0 %v6438_v31  ;;  %2299 = vmatprep.mubr.bf16.mxu1 %v6438_v31 }
 0x6c5   :  { %2229 = vmatpush1.bf16.msra.mxu0 %v5258_v56  ;;  %2270 = vmatpush1.bf16.msra.mxu1 %v5261_v26 }
 0x6c6   :  { %2230 = vmatprep.subr.bf16.mxu0 %v5264_v33  ;;  %2271 = vmatprep.subr.bf16.mxu1 %v5267_v37 }
 0x6c9   :  { %2231 = vmatpush1.bf16.msra.mxu0 %v5270_v8  ;;  %2272 = vmatpush1.bf16.msra.mxu1 %v5273_v6 }
 0x6ca   :  { %2232 = vmatprep.subr.bf16.mxu0 %v5276_v7  ;;  %2273 = vmatprep.subr.bf16.mxu1 %v5279_v5 }
 0x6cd   :  { %2233 = vmatpush1.bf16.msra.mxu0 %v5282_v9  ;;  %2274 = vmatpush1.bf16.msra.mxu1 %v5285_v52 }
 0x6ce   :  { %2234 = vmatprep.subr.bf16.mxu0 %v6729_v11  ;;  %2275 = vmatprep.subr.bf16.mxu1 %v6730_v19 }
 0x6d1   :  { %2235 = vmatpush1.bf16.msra.mxu0 %v6731_v21  ;;  %2276 = vmatpush1.bf16.msra.mxu1 %v6732_v12 }
 0x6d2   :  { %2236 = vmatprep.subr.bf16.mxu0 %v6733_v14  ;;  %2277 = vmatprep.subr.bf16.mxu1 %v6734_v46 }
 0x6d5   :  { %2237 = vmatpush1.bf16.msra.mxu0 %v6735_v43  ;;  %2278 = vmatpush1.bf16.msra.mxu1 %v6736_v17 }
 0x6d6   :  { %2238 = vmatprep.subr.bf16.mxu0 %v6737_v10  ;;  %2279 = vmatprep.subr.bf16.mxu1 %v6738_v30 }
 0x6d9   :  { %2239 = vmatpush1.bf16.msra.mxu0 %v5318_v57  ;;  %2280 = vmatpush1.bf16.msra.mxu1 %v5321_v3 }
 0x6da   :  { %2240 = vmatprep.subr.bf16.mxu0 %v5324_v50  ;;  %2281 = vmatprep.subr.bf16.mxu1 %v5327_v27 }
 0x6dd   :  { %2241 = vmatpush1.bf16.msra.mxu0 %v5330_v28  ;;  %2282 = vmatpush1.bf16.msra.mxu1 %v5333_v25 }
 0x6de   :  { %2338 = vmatprep.subr.bf16.mxu0 %v5455_v54  ;;  %2379 = vmatprep.subr.bf16.mxu1 %v5461_v40 }
 0x6e0   :  { %2259 = vmatmul.mubr.bf16.vlgmr.msra.gmra.mxu0 %v2118_v23  ;;  %2300 = vmatmul.mubr.bf16.vlgmr.msra.gmra.mxu1 %v2118_v23  ;;  %v5599_v23 = vld [vmem:[%s6005_s4 + $0x24] ss:$16 sps:$4 sm:$0xff]  }
 0x6e1   :  { %2339 = vmatpush1.bf16.msra.mxu0 %v5467_v41  ;;  %2380 = vmatpush1.bf16.msra.mxu1 %v5473_v44  ;;  %6753 = vst [vmem:[#allocation61_spill] sm:$0xff] %v5599_v23 }
 0x6e2   :  { %2340 = vmatprep.subr.bf16.mxu0 %v5479_v48  ;;  %2381 = vmatprep.subr.bf16.mxu1 %v5485_v49 }
 0x6e5   :  { %2341 = vmatpush1.bf16.msra.mxu0 %v5491_v51  ;;  %2382 = vmatpush1.bf16.msra.mxu1 %v5497_v55 }
 0x6e6   :  { %2342 = vmatprep.subr.bf16.mxu0 %v5503_v58  ;;  %2383 = vmatprep.subr.bf16.mxu1 %v5509_v47 }
 0x6e9   :  { %2343 = vmatpush1.bf16.msra.mxu0 %v5515_v60  ;;  %2384 = vmatpush1.bf16.msra.mxu1 %v5521_v62 }
 0x6ea   :  { %2344 = vmatprep.subr.bf16.mxu0 %v5527_v63  ;;  %2385 = vmatprep.subr.bf16.mxu1 %v5533_v32 }
 0x6ed   :  { %2345 = vmatpush1.bf16.msra.mxu0 %v5539_v1  ;;  %2386 = vmatpush1.bf16.msra.mxu1 %v5545_v2 }
 0x6ee   :  { %2346 = vmatprep.subr.bf16.mxu0 %v5551_v22  ;;  %2387 = vmatprep.subr.bf16.mxu1 %v5557_v24 }
 0x6f1   :  { %2347 = vmatpush1.bf16.msra.mxu0 %v5563_v53  ;;  %2388 = vmatpush1.bf16.msra.mxu1 %v5569_v16 }
 0x6f2   :  { %2348 = vmatprep.subr.bf16.mxu0 %v5575_v59  ;;  %2389 = vmatprep.subr.bf16.mxu1 %v5581_v18  ;;  %v5605_v18 = vld [vmem:[%s6005_s4 + $0x2c] ss:$16 sps:$4 sm:$0xff]  }
 0x6f3   :  { %6754 = vst [vmem:[#allocation63_spill] sm:$0xff] %v5605_v18 }
 0x6f5   :  { %2349 = vmatpush1.bf16.msra.mxu0 %v5587_v20  ;;  %2390 = vmatpush1.bf16.msra.mxu1 %v5593_v35  ;;  %v5611_v20 = vld [vmem:[%s6005_s4 + $0x20] ss:$16 sps:$4 sm:$0xff]   ;;  %v5617_v35 = vld [vmem:[%s6005_s4 + $0x28] ss:$16 sps:$4 sm:$0xff]  }
 0x6f6   :  { %2350 = vmatprep.subr.bf16.mxu0 %v5599_v23  ;;  %2391 = vmatprep.subr.bf16.mxu1 %v5605_v18  ;;  %6755 = vst [vmem:[#allocation64_spill] sm:$0xff] %v5611_v20  ;;  %6756 = vst [vmem:[#allocation62_spill] sm:$0xff] %v5617_v35  ;;  %v5623_v23 = vld [vmem:[%s6005_s4 + $0x4] ss:$16 sps:$4 sm:$0xff]   ;;  %v5629_v18 = vld [vmem:[%s6005_s4 + $0xc] ss:$16 sps:$4 sm:$0xff]  }
 0x6f7   :  { %6757 = vst [vmem:[#allocation36_spill] sm:$0xff] %v5623_v23  ;;  %6758 = vst [vmem:[#allocation37_spill] sm:$0xff] %v5629_v18 }
 0x6f9   :  { %2351 = vmatpush1.bf16.msra.mxu0 %v5611_v20  ;;  %2392 = vmatpush1.bf16.msra.mxu1 %v5617_v35  ;;  %v5635_v20 = vld [vmem:[%s6005_s4] ss:$16 sps:$4 sm:$0xff]   ;;  %v5641_v35 = vld [vmem:[%s6005_s4 + $0x8] ss:$16 sps:$4 sm:$0xff]  }
 0x6fa   :  { %2352 = vmatprep.subr.bf16.mxu0 %v5623_v23  ;;  %2393 = vmatprep.subr.bf16.mxu1 %v5629_v18  ;;  %6759 = vst [vmem:[#allocation38_spill] sm:$0xff] %v5635_v20  ;;  %6760 = vst [vmem:[#allocation39_spill] sm:$0xff] %v5641_v35  ;;  %v5647_v23 = vld [vmem:[%s6005_s4 + $0x1e4] ss:$16 sps:$4 sm:$0xff]   ;;  %v5653_v18 = vld [vmem:[%s6005_s4 + $0x1ec] ss:$16 sps:$4 sm:$0xff]  }
 0x6fb   :  { %6761 = vst [vmem:[#allocation40_spill] sm:$0xff] %v5647_v23  ;;  %6762 = vst [vmem:[#allocation41_spill] sm:$0xff] %v5653_v18 }
 0x6fd   :  { %2353 = vmatpush1.bf16.msra.mxu0 %v5635_v20  ;;  %2394 = vmatpush1.bf16.msra.mxu1 %v5641_v35  ;;  %v5659_v20 = vld [vmem:[%s6005_s4 + $0x1e0] ss:$16 sps:$4 sm:$0xff]   ;;  %v5665_v35 = vld [vmem:[%s6005_s4 + $0x1e8] ss:$16 sps:$4 sm:$0xff]  }
 0x6fe   :  { %2354 = vmatprep.subr.bf16.mxu0 %v5647_v23  ;;  %2395 = vmatprep.subr.bf16.mxu1 %v5653_v18  ;;  %6763 = vst [vmem:[#allocation42_spill] sm:$0xff] %v5659_v20  ;;  %6764 = vst [vmem:[#allocation43_spill] sm:$0xff] %v5665_v35  ;;  %v5671_v23 = vld [vmem:[%s6005_s4 + $0x1c4] ss:$16 sps:$4 sm:$0xff]   ;;  %v5677_v18 = vld [vmem:[%s6005_s4 + $0x1cc] ss:$16 sps:$4 sm:$0xff]  }
 0x6ff   :  { %6765 = vst [vmem:[#allocation44_spill] sm:$0xff] %v5671_v23  ;;  %6766 = vst [vmem:[#allocation45_spill] sm:$0xff] %v5677_v18 }
 0x701   :  { %2355 = vmatpush2.bf16.msra.mxu0 %v5659_v20  ;;  %2396 = vmatpush2.bf16.msra.mxu1 %v5665_v35  ;;  %v5683_v20 = vld [vmem:[%s6005_s4 + $0x1c0] ss:$16 sps:$4 sm:$0xff]   ;;  %v5689_v35 = vld [vmem:[%s6005_s4 + $0x1c8] ss:$16 sps:$4 sm:$0xff]  }
 0x702   :  { %2356 = vmatprep.subr.bf16.mxu0 %v5671_v23  ;;  %2397 = vmatprep.subr.bf16.mxu1 %v5677_v18  ;;  %6767 = vst [vmem:[#allocation73_spill] sm:$0xff] %v5683_v20  ;;  %6768 = vst [vmem:[#allocation75_spill] sm:$0xff] %v5689_v35  ;;  %v5695_v23 = vld [vmem:[%s6005_s4 + $0x1a4] ss:$16 sps:$4 sm:$0xff]   ;;  %v5701_v18 = vld [vmem:[%s6005_s4 + $0x1ac] ss:$16 sps:$4 sm:$0xff]  }
 0x703   :  { %6769 = vst [vmem:[#allocation76_spill] sm:$0xff] %v5695_v23  ;;  %6770 = vst [vmem:[#allocation74_spill] sm:$0xff] %v5701_v18 }
 0x705   :  { %2357 = vmatpush2.bf16.msra.mxu0 %v5683_v20  ;;  %2398 = vmatpush2.bf16.msra.mxu1 %v5689_v35  ;;  %v5707_v20 = vld [vmem:[%s6005_s4 + $0x1a0] ss:$16 sps:$4 sm:$0xff]   ;;  %v5713_v35 = vld [vmem:[%s6005_s4 + $0x1a8] ss:$16 sps:$4 sm:$0xff]  }
 0x706   :  { %2358 = vmatprep.subr.bf16.mxu0 %v5695_v23  ;;  %2399 = vmatprep.subr.bf16.mxu1 %v5701_v18  ;;  %6771 = vst [vmem:[#allocation46_spill] sm:$0xff] %v5707_v20  ;;  %6772 = vst [vmem:[#allocation47_spill] sm:$0xff] %v5713_v35  ;;  %v5719_v23 = vld [vmem:[%s6005_s4 + $0x184] ss:$16 sps:$4 sm:$0xff]   ;;  %v5725_v18 = vld [vmem:[%s6005_s4 + $0x18c] ss:$16 sps:$4 sm:$0xff]  }
 0x707   :  { %6773 = vst [vmem:[#allocation48_spill] sm:$0xff] %v5719_v23  ;;  %6774 = vst [vmem:[#allocation49_spill] sm:$0xff] %v5725_v18 }
 0x709   :  { %2359 = vmatpush2.bf16.msra.mxu0 %v5707_v20  ;;  %2400 = vmatpush2.bf16.msra.mxu1 %v5713_v35  ;;  %v5731_v20 = vld [vmem:[%s6005_s4 + $0x180] ss:$16 sps:$4 sm:$0xff]   ;;  %v5737_v35 = vld [vmem:[%s6005_s4 + $0x188] ss:$16 sps:$4 sm:$0xff]  }
 0x70a   :  { %2360 = vmatprep.subr.bf16.mxu0 %v5719_v23  ;;  %2401 = vmatprep.subr.bf16.mxu1 %v5725_v18  ;;  %6775 = vst [vmem:[#allocation50_spill] sm:$0xff] %v5731_v20  ;;  %6776 = vst [vmem:[#allocation51_spill] sm:$0xff] %v5737_v35  ;;  %v5743_v23 = vld [vmem:[%s6005_s4 + $0x164] ss:$16 sps:$4 sm:$0xff]   ;;  %v5749_v18 = vld [vmem:[%s6005_s4 + $0x16c] ss:$16 sps:$4 sm:$0xff]  }
 0x70b   :  { %6777 = vst [vmem:[#allocation52_spill] sm:$0xff] %v5743_v23  ;;  %6778 = vst [vmem:[#allocation53_spill] sm:$0xff] %v5749_v18 }
 0x70d   :  { %2361 = vmatpush2.bf16.msra.mxu0 %v5731_v20  ;;  %2402 = vmatpush2.bf16.msra.mxu1 %v5737_v35  ;;  %v5755_v20 = vld [vmem:[%s6005_s4 + $0x160] ss:$16 sps:$4 sm:$0xff]   ;;  %v5761_v35 = vld [vmem:[%s6005_s4 + $0x168] ss:$16 sps:$4 sm:$0xff]  }
 0x70e   :  { %2362 = vmatprep.subr.bf16.mxu0 %v5743_v23  ;;  %2403 = vmatprep.subr.bf16.mxu1 %v5749_v18  ;;  %6779 = vst [vmem:[#allocation54_spill] sm:$0xff] %v5755_v20  ;;  %6780 = vst [vmem:[#allocation55_spill] sm:$0xff] %v5761_v35  ;;  %v5767_v23 = vld [vmem:[%s6005_s4 + $0x144] ss:$16 sps:$4 sm:$0xff]   ;;  %v5773_v18 = vld [vmem:[%s6005_s4 + $0x14c] ss:$16 sps:$4 sm:$0xff]  }
 0x70f   :  { %6781 = vst [vmem:[#allocation56_spill] sm:$0xff] %v5767_v23  ;;  %6782 = vst [vmem:[#allocation57_spill] sm:$0xff] %v5773_v18 }
 0x711   :  { %2363 = vmatpush2.bf16.msra.mxu0 %v5755_v20  ;;  %2404 = vmatpush2.bf16.msra.mxu1 %v5761_v35  ;;  %v5779_v20 = vld [vmem:[%s6005_s4 + $0x140] ss:$16 sps:$4 sm:$0xff]   ;;  %v5785_v35 = vld [vmem:[%s6005_s4 + $0x148] ss:$16 sps:$4 sm:$0xff]  }
 0x712   :  { %2364 = vmatprep.subr.bf16.mxu0 %v5767_v23  ;;  %2405 = vmatprep.subr.bf16.mxu1 %v5773_v18  ;;  %6783 = vst [vmem:[#allocation58_spill] sm:$0xff] %v5779_v20  ;;  %6784 = vst [vmem:[#allocation59_spill] sm:$0xff] %v5785_v35  ;;  %v5791_v23 = vld [vmem:[%s6005_s4 + $0x124] ss:$16 sps:$4 sm:$0xff]   ;;  %v5797_v18 = vld [vmem:[%s6005_s4 + $0x12c] ss:$16 sps:$4 sm:$0xff]  }
 0x713   :  { %6785 = vst [vmem:[#allocation5_spill] sm:$0xff] %v5791_v23  ;;  %6786 = vst [vmem:[#allocation6_spill] sm:$0xff] %v5797_v18 }
 0x715   :  { %2365 = vmatpush2.bf16.msra.mxu0 %v5779_v20  ;;  %2406 = vmatpush2.bf16.msra.mxu1 %v5785_v35  ;;  %v5803_v20 = vld [vmem:[%s6005_s4 + $0x120] ss:$16 sps:$4 sm:$0xff]   ;;  %v5809_v35 = vld [vmem:[%s6005_s4 + $0x128] ss:$16 sps:$4 sm:$0xff]  }
 0x716   :  { %2366 = vmatprep.subr.bf16.mxu0 %v5791_v23  ;;  %2407 = vmatprep.subr.bf16.mxu1 %v5797_v18  ;;  %6787 = vst [vmem:[#allocation65_spill] sm:$0xff] %v5803_v20  ;;  %6788 = vst [vmem:[#allocation67_spill] sm:$0xff] %v5809_v35  ;;  %v5815_v23 = vld [vmem:[%s6005_s4 + $0x104] ss:$16 sps:$4 sm:$0xff]   ;;  %v5821_v18 = vld [vmem:[%s6005_s4 + $0x10c] ss:$16 sps:$4 sm:$0xff]  }
 0x717   :  { %6789 = vst [vmem:[#allocation68_spill] sm:$0xff] %v5815_v23  ;;  %6790 = vst [vmem:[#allocation66_spill] sm:$0xff] %v5821_v18 }
 0x719   :  { %2367 = vmatpush2.bf16.msra.mxu0 %v5803_v20  ;;  %2408 = vmatpush2.bf16.msra.mxu1 %v5809_v35  ;;  %v5827_v20 = vld [vmem:[%s6005_s4 + $0x100] ss:$16 sps:$4 sm:$0xff]   ;;  %v5833_v35 = vld [vmem:[%s6005_s4 + $0x108] ss:$16 sps:$4 sm:$0xff]  }
 0x71a   :  { %2368 = vmatprep.subr.bf16.mxu0 %v5815_v23  ;;  %2409 = vmatprep.subr.bf16.mxu1 %v5821_v18  ;;  %6791 = vst [vmem:[#allocation11_spill] sm:$0xff] %v5827_v20  ;;  %6792 = vst [vmem:[#allocation12_spill] sm:$0xff] %v5833_v35 }
 0x71d   :  { %2369 = vmatpush2.bf16.msra.mxu0 %v5827_v20  ;;  %2410 = vmatpush2.bf16.msra.mxu1 %v5833_v35 }
 0x71e   :  { %2444 = vmatprep.subr.bf16.mxu0 %v6719_v15  ;;  %2485 = vmatprep.subr.bf16.mxu1 %v6720_v0 }
 0x780   :  { %v2154_v23 = vpop.f32.mrf.mxu0  ;;  %v2195_v18 = vpop.f32.mrf.mxu1 }
 0x781   :  { %v2155_v59 = vadd.f32 %v2154_v23, %v6721_v42  ;;  %v2196_v62 = vadd.f32 %v2195_v18, %v6724_v61 }
 0x782   :  { %v2156_v16 = vpop.f32.mrf.mxu0  ;;  %v2197_v53 = vpop.f32.mrf.mxu1 }
 0x783   :  { %v2941_v24 = vmul.f32 -1.442695, %v2155_v59  ;;  %v2157_v20 = vadd.f32 %v2156_v16, %v6722_v39  ;;  %v2198_v15 = vadd.f32 %v2197_v53, %v6723_v34  ;;  %v6793_v16 = vld [vmem:[#allocation81_spill] sm:$0xff]  ;;  %v6794_v34 = vld [vmem:[#allocation83_spill] sm:$0xff] }
 0x784   :  { %v2158_v22 = vpop.f32.mrf.mxu0  ;;  %v2199_v2 = vpop.f32.mrf.mxu1 }
 0x785   :  { %3347 = vpow2.f32 %v2941_v24  ;;  %v2942_v1 = vmul.f32 -1.442695, %v2157_v20  ;;  %v2943_v35 = vmul.f32 -1.442695, %v2198_v15 }
 0x786   :  { %v2159_v32 = vpop.f32.mrf.mxu0  ;;  %v2200_v63 = vpop.f32.mrf.mxu1 }
 0x787   :  { %3349 = vpow2.f32 %v2942_v1 }
 0x788   :  { %3351 = vpow2.f32 %v2943_v35 }
 0x792   :  { %v3348_v0 = vpop.eup %3347 }
 0x793   :  { %v2205_v60 = vadd.f32 1.0, %v3348_v0 }
 0x794   :  { %v3350_v23 = vpop.eup %3349 }
 0x795   :  { %3353 = vrcp.f32 %v2205_v60  ;;  %v2211_v59 = vadd.f32 1.0, %v3350_v23  ;;  %v3352_v24 = vpop.eup %3351 }
 0x796   :  { %3355 = vtanh.f32 %v2196_v62  ;;  %v2218_v0 = vadd.f32 1.0, %v3352_v24 }
 0x797   :  { %3357 = vrcp.f32 %v2211_v59 }
 0x7a0   :  { %v2260_v22 = vpop.f32.mrf.mxu0  ;;  %v2301_v2 = vpop.f32.mrf.mxu1 }
 0x7a1   :  { %v2308_v32 = vadd.f32 %v2260_v22, %v6793_v16  ;;  %v6795_v16 = vld [vmem:[#allocation84_spill] sm:$0xff] }
 0x7a2   :  { %v3354_v63 = vpop.eup %3353  ;;  %v2262_v1 = vpop.f32.mrf.mxu0 }
 0x7a3   :  { %v2303_v20 = vpop.f32.mrf.mxu1  ;;  %v3356_v53 = vpop.eup %3355  ;;  %v2944_v15 = vmul.f32 -1.442695, %v2308_v32  ;;  %v2309_v39 = vadd.f32 %v2262_v1, %v6794_v34  ;;  %v6796_v34 = vld [vmem:[#allocation82_spill] sm:$0xff] }
 0x7a4   :  { %v3358_v18 = vpop.eup %3357  ;;  %v2264_v61 = vpop.f32.mrf.mxu0  ;;  %v2222_v60 = vmul.f32 %v3356_v53, %v3354_v63  ;;  %v2311_v32 = vadd.f32 %v2303_v20, %v6795_v16  ;;  %v2310_v1 = vadd.f32 %v2301_v2, %v6796_v34 }
 0x7a5   :  { %v2305_v35 = vpop.f32.mrf.mxu1  ;;  %v2221_v62 = vmul.f32 %v3358_v18, %v5411_v38  ;;  %3359 = vpow2.f32 %v2944_v15  ;;  %v2945_v23 = vmul.f32 -1.442695, %v2309_v39 }
 0x7a6   :  { %v2265_v59 = vpop.f32.mrf.mxu0  ;;  %v2946_v24 = vmul.f32 -1.442695, %v2311_v32 }
 0x7a7   :  { %v2306_v42 = vpop.f32.mrf.mxu1  ;;  %3361 = vpow2.f32 %v2945_v23  ;;  %v5845_v22 = vadd.f32 %v2222_v60, %v2221_v62 }
 0x7a8   :  { %3363 = vrcp.f32 %v2218_v0 }
 0x7a9   :  { %3365 = vtanh.f32 %v5845_v22 }
 0x7aa   :  { %3367 = vtanh.f32 %v2310_v1 }
 0x7ab   :  { %3369 = vpow2.f32 %v2946_v24  ;;  %v6839_v24 = vld [vmem:[#allocation56_spill] sm:$0xff] }
 0x7b2   :  { %v3360_v61 = vpop.eup %3359 }
 0x7b3   :  { %v2315_v35 = vadd.f32 1.0, %v3360_v61  ;;  %v6840_v61 = vld [vmem:[#allocation57_spill] sm:$0xff] }
 0x7b4   :  { %v3362_v63 = vpop.eup %3361 }
 0x7b5   :  { %v3364_v38 = vpop.eup %3363  ;;  %3371 = vrcp.f32 %v2315_v35  ;;  %v2321_v39 = vadd.f32 1.0, %v3362_v63  ;;  %v6841_v35 = vld [vmem:[#allocation58_spill] sm:$0xff]  ;;  %v6842_v63 = vld [vmem:[#allocation59_spill] sm:$0xff] }
 0x7b6   :  { %v3366_v42 = vpop.eup %3365 }
 0x7b7   :  { %3373 = vrcp.f32 %v2321_v39  ;;  %v2225_v53 = vmul.f32 %v3366_v42, %v3364_v38  ;;  %v3368_v18 = vpop.eup %3367  ;;  %v6843_v38 = vld [vmem:[#allocation5_spill] sm:$0xff]  ;;  %v6844_v39 = vld [vmem:[#allocation6_spill] sm:$0xff] }
 0x7b8   :  { %v3370_v0 = vpop.eup %3369  ;;  %v6845_v42 = vld [vmem:[#allocation65_spill] sm:$0xff] }
 0x7b9   :  { %v2337_v15 = vpack.c.bf16 %v2225_v53, %v2225_v53  ;;  %v2328_v62 = vadd.f32 1.0, %v3370_v0  ;;  %v6846_v53 = vld [vmem:[#allocation67_spill] sm:$0xff] }
 0x7ba   :  { %v6849_v0 = vld [vmem:[#allocation11_spill] sm:$0xff] }
 0x7bb   :  { %2370 = vmatprep.mubr.bf16.mxu0 %v2337_v15  ;;  %2411 = vmatprep.mubr.bf16.mxu1 %v2337_v15  ;;  %3375 = vrcp.f32 %v2328_v62  ;;  %v6847_v15 = vld [vmem:[#allocation68_spill] sm:$0xff]  ;;  %v6851_v62 = vld [vmem:[#allocation7_spill] sm:$0xff] }
 0x7c2   :  { %v3372_v20 = vpop.eup %3371 }
 0x7c3   :  { %v2332_v60 = vmul.f32 %v3372_v20, %v3368_v18  ;;  %v6848_v18 = vld [vmem:[#allocation66_spill] sm:$0xff]  ;;  %v6850_v20 = vld [vmem:[#allocation12_spill] sm:$0xff] }
 0x7c4   :  { %v3374_v2 = vpop.eup %3373 }
 0x7c5   :  { %v2331_v23 = vmul.f32 %v3374_v2, %v5417_v13  ;;  %v6818_v13 = vld [vmem:[#allocation39_spill] sm:$0xff] }
 0x7c7   :  { %v5851_v59 = vadd.f32 %v2332_v60, %v2331_v23 }
 0x7c8   :  { %v3376_v16 = vpop.eup %3375 }
 0x7c9   :  { %3377 = vtanh.f32 %v5851_v59 }
 0x7d6   :  { %v3378_v32 = vpop.eup %3377 }
 0x7d7   :  { %v2335_v34 = vmul.f32 %v3378_v32, %v3376_v16 }
 0x7d9   :  { %v2336_v1 = vpack.c.bf16 %v2335_v34, %v2335_v34 }
 0x7db   :  { %2371 = vmatmul.mubr.bf16.vlgmr.msra.gmra.mxu0 %v2336_v1  ;;  %2412 = vmatmul.mubr.bf16.vlgmr.msra.gmra.mxu1 %v2336_v1 }
 0x7dc   :  { %2445 = vmatpush1.bf16.msra.mxu0 %v5244_v45  ;;  %2486 = vmatpush1.bf16.msra.mxu1 %v5247_v4  ;;  %v6798_v45 = vld [vmem:[#allocation24_spill] sm:$0xff]  ;;  %v6799_v4 = vld [vmem:[#allocation25_spill] sm:$0xff] }
 0x7dd   :  { %2446 = vmatprep.subr.bf16.mxu0 %v5250_v29  ;;  %2487 = vmatprep.subr.bf16.mxu1 %v5253_v36  ;;  %v6800_v29 = vld [vmem:[#allocation26_spill] sm:$0xff]  ;;  %v6801_v36 = vld [vmem:[#allocation27_spill] sm:$0xff] }
 0x7de   :  { %2476 = vmatprep.mubr.bf16.mxu0 %v6438_v31  ;;  %2517 = vmatprep.mubr.bf16.mxu1 %v6438_v31  ;;  %v6797_v31 = vld [vmem:[#allocation23_spill] sm:$0xff] }
 0x7e0   :  { %2447 = vmatpush1.bf16.msra.mxu0 %v5258_v56  ;;  %2488 = vmatpush1.bf16.msra.mxu1 %v5261_v26  ;;  %v6802_v56 = vld [vmem:[#allocation28_spill] sm:$0xff]  ;;  %v6803_v26 = vld [vmem:[#allocation29_spill] sm:$0xff] }
 0x7e1   :  { %2448 = vmatprep.subr.bf16.mxu0 %v5264_v33  ;;  %2489 = vmatprep.subr.bf16.mxu1 %v5267_v37  ;;  %v6804_v33 = vld [vmem:[#allocation30_spill] sm:$0xff]  ;;  %v6805_v37 = vld [vmem:[#allocation31_spill] sm:$0xff] }
 0x7e4   :  { %2449 = vmatpush1.bf16.msra.mxu0 %v5270_v8  ;;  %2490 = vmatpush1.bf16.msra.mxu1 %v5273_v6  ;;  %v6806_v8 = vld [vmem:[#allocation32_spill] sm:$0xff]  ;;  %v6807_v6 = vld [vmem:[#allocation33_spill] sm:$0xff] }
 0x7e5   :  { %2450 = vmatprep.subr.bf16.mxu0 %v5276_v7  ;;  %2491 = vmatprep.subr.bf16.mxu1 %v5279_v5  ;;  %v6808_v7 = vld [vmem:[#allocation34_spill] sm:$0xff]  ;;  %v6809_v5 = vld [vmem:[#allocation35_spill] sm:$0xff] }
 0x7e8   :  { %2451 = vmatpush1.bf16.msra.mxu0 %v5282_v9  ;;  %2492 = vmatpush1.bf16.msra.mxu1 %v5285_v52  ;;  %v6810_v9 = vld [vmem:[#allocation60_spill] sm:$0xff]  ;;  %v6811_v52 = vld [vmem:[#allocation61_spill] sm:$0xff] }
 0x7e9   :  { %2452 = vmatprep.subr.bf16.mxu0 %v6729_v11  ;;  %2493 = vmatprep.subr.bf16.mxu1 %v6730_v19  ;;  %v6819_v11 = vld [vmem:[#allocation40_spill] sm:$0xff]  ;;  %v6820_v19 = vld [vmem:[#allocation41_spill] sm:$0xff] }
 0x7ec   :  { %2453 = vmatpush1.bf16.msra.mxu0 %v6731_v21  ;;  %2494 = vmatpush1.bf16.msra.mxu1 %v6732_v12  ;;  %v6821_v21 = vld [vmem:[#allocation42_spill] sm:$0xff]  ;;  %v6822_v12 = vld [vmem:[#allocation43_spill] sm:$0xff] }
 0x7ed   :  { %2454 = vmatprep.subr.bf16.mxu0 %v6733_v14  ;;  %2495 = vmatprep.subr.bf16.mxu1 %v6734_v46  ;;  %v6823_v14 = vld [vmem:[#allocation44_spill] sm:$0xff]  ;;  %v6824_v46 = vld [vmem:[#allocation45_spill] sm:$0xff] }
 0x7f0   :  { %2455 = vmatpush1.bf16.msra.mxu0 %v6735_v43  ;;  %2496 = vmatpush1.bf16.msra.mxu1 %v6736_v17  ;;  %v6825_v43 = vld [vmem:[#allocation73_spill] sm:$0xff]  ;;  %v6826_v17 = vld [vmem:[#allocation75_spill] sm:$0xff] }
 0x7f1   :  { %2456 = vmatprep.subr.bf16.mxu0 %v6737_v10  ;;  %2497 = vmatprep.subr.bf16.mxu1 %v6738_v30  ;;  %v6827_v10 = vld [vmem:[#allocation76_spill] sm:$0xff]  ;;  %v6828_v30 = vld [vmem:[#allocation74_spill] sm:$0xff] }
 0x7f4   :  { %2457 = vmatpush1.bf16.msra.mxu0 %v5318_v57  ;;  %2498 = vmatpush1.bf16.msra.mxu1 %v5321_v3  ;;  %v6816_v57 = vld [vmem:[#allocation37_spill] sm:$0xff]  ;;  %v6817_v3 = vld [vmem:[#allocation38_spill] sm:$0xff] }
 0x7f5   :  { %2458 = vmatprep.subr.bf16.mxu0 %v5324_v50  ;;  %2499 = vmatprep.subr.bf16.mxu1 %v5327_v27  ;;  %v6812_v50 = vld [vmem:[#allocation63_spill] sm:$0xff]  ;;  %v6813_v27 = vld [vmem:[#allocation64_spill] sm:$0xff] }
 0x7f8   :  { %2459 = vmatpush1.bf16.msra.mxu0 %v5330_v28  ;;  %2500 = vmatpush1.bf16.msra.mxu1 %v5333_v25  ;;  %v6814_v28 = vld [vmem:[#allocation62_spill] sm:$0xff]  ;;  %v6815_v25 = vld [vmem:[#allocation36_spill] sm:$0xff] }
 0x7f9   :  { %2556 = vmatprep.subr.bf16.mxu0 %v5455_v54  ;;  %2597 = vmatprep.subr.bf16.mxu1 %v5461_v40  ;;  %v6829_v54 = vld [vmem:[#allocation46_spill] sm:$0xff]  ;;  %v6830_v40 = vld [vmem:[#allocation47_spill] sm:$0xff] }
 0x7fb   :  { %2477 = vmatmul.mubr.bf16.vlgmr.msra.gmra.mxu0 %v2336_v1  ;;  %2518 = vmatmul.mubr.bf16.vlgmr.msra.gmra.mxu1 %v2336_v1  ;;  %v6852_v1 = vld [vmem:[#allocation8_spill] sm:$0xff] }
 0x7fc   :  { %2557 = vmatpush1.bf16.msra.mxu0 %v5467_v41  ;;  %2598 = vmatpush1.bf16.msra.mxu1 %v5473_v44  ;;  %v6831_v41 = vld [vmem:[#allocation48_spill] sm:$0xff]  ;;  %v6832_v44 = vld [vmem:[#allocation49_spill] sm:$0xff] }
 0x7fd   :  { %2558 = vmatprep.subr.bf16.mxu0 %v5479_v48  ;;  %2599 = vmatprep.subr.bf16.mxu1 %v5485_v49  ;;  %v6833_v48 = vld [vmem:[#allocation50_spill] sm:$0xff]  ;;  %v6834_v49 = vld [vmem:[#allocation51_spill] sm:$0xff] }
 0x800   :  { %2559 = vmatpush1.bf16.msra.mxu0 %v5491_v51  ;;  %2600 = vmatpush1.bf16.msra.mxu1 %v5497_v55  ;;  %v6835_v51 = vld [vmem:[#allocation52_spill] sm:$0xff]  ;;  %v6836_v55 = vld [vmem:[#allocation53_spill] sm:$0xff] }
 0x801   :  { %2560 = vmatprep.subr.bf16.mxu0 %v5503_v58  ;;  %2601 = vmatprep.subr.bf16.mxu1 %v5509_v47  ;;  %v6837_v58 = vld [vmem:[#allocation54_spill] sm:$0xff]  ;;  %v6838_v47 = vld [vmem:[#allocation55_spill] sm:$0xff] }
 0x804   :  { %2561 = vmatpush1.bf16.msra.mxu0 %v6797_v31  ;;  %2602 = vmatpush1.bf16.msra.mxu1 %v6798_v45 }
 0x805   :  { %2562 = vmatprep.subr.bf16.mxu0 %v6799_v4  ;;  %2603 = vmatprep.subr.bf16.mxu1 %v6800_v29 }
 0x808   :  { %2563 = vmatpush1.bf16.msra.mxu0 %v6801_v36  ;;  %2604 = vmatpush1.bf16.msra.mxu1 %v6802_v56 }
 0x809   :  { %2564 = vmatprep.subr.bf16.mxu0 %v6803_v26  ;;  %2605 = vmatprep.subr.bf16.mxu1 %v6804_v33  ;;  %v6853_v26 = vld [vmem:[#allocation9_spill] sm:$0xff] }
 0x80c   :  { %2565 = vmatpush1.bf16.msra.mxu0 %v6805_v37  ;;  %2606 = vmatpush1.bf16.msra.mxu1 %v6806_v8 }
 0x80d   :  { %2566 = vmatprep.subr.bf16.mxu0 %v6807_v6  ;;  %2607 = vmatprep.subr.bf16.mxu1 %v6808_v7  ;;  %v6854_v6 = vld [vmem:[#allocation10_spill] sm:$0xff] }
 0x810   :  { %2567 = vmatpush1.bf16.msra.mxu0 %v6809_v5  ;;  %2608 = vmatpush1.bf16.msra.mxu1 %v6810_v9 }
 0x811   :  { %2568 = vmatprep.subr.bf16.mxu0 %v6811_v52  ;;  %2609 = vmatprep.subr.bf16.mxu1 %v6812_v50 }
 0x814   :  { %2569 = vmatpush1.bf16.msra.mxu0 %v6813_v27  ;;  %2610 = vmatpush1.bf16.msra.mxu1 %v6814_v28 }
 0x815   :  { %2570 = vmatprep.subr.bf16.mxu0 %v6815_v25  ;;  %2611 = vmatprep.subr.bf16.mxu1 %v6816_v57  ;;  %v6855_v25 = vld [vmem:[#allocation85_spill] sm:$0xff] }
 0x818   :  { %2571 = vmatpush1.bf16.msra.mxu0 %v6817_v3  ;;  %2612 = vmatpush1.bf16.msra.mxu1 %v6818_v13 }
 0x819   :  { %2572 = vmatprep.subr.bf16.mxu0 %v6819_v11  ;;  %2613 = vmatprep.subr.bf16.mxu1 %v6820_v19 }
 0x81c   :  { %2573 = vmatpush2.bf16.msra.mxu0 %v6821_v21  ;;  %2614 = vmatpush2.bf16.msra.mxu1 %v6822_v12  ;;  %v6856_v12 = vld [vmem:[#allocation87_spill] sm:$0xff] }
 0x81d   :  { %2574 = vmatprep.subr.bf16.mxu0 %v6823_v14  ;;  %2615 = vmatprep.subr.bf16.mxu1 %v6824_v46 }
 0x820   :  { %2575 = vmatpush2.bf16.msra.mxu0 %v6825_v43  ;;  %2616 = vmatpush2.bf16.msra.mxu1 %v6826_v17 }
 0x821   :  { %2576 = vmatprep.subr.bf16.mxu0 %v6827_v10  ;;  %2617 = vmatprep.subr.bf16.mxu1 %v6828_v30 }
 0x824   :  { %2577 = vmatpush2.bf16.msra.mxu0 %v6829_v54  ;;  %2618 = vmatpush2.bf16.msra.mxu1 %v6830_v40 }
 0x825   :  { %2578 = vmatprep.subr.bf16.mxu0 %v6831_v41  ;;  %2619 = vmatprep.subr.bf16.mxu1 %v6832_v44 }
 0x828   :  { %2579 = vmatpush2.bf16.msra.mxu0 %v6833_v48  ;;  %2620 = vmatpush2.bf16.msra.mxu1 %v6834_v49  ;;  %v6857_v49 = vld [vmem:[#allocation88_spill] sm:$0xff] }
 0x829   :  { %2580 = vmatprep.subr.bf16.mxu0 %v6835_v51  ;;  %2621 = vmatprep.subr.bf16.mxu1 %v6836_v55  ;;  %v6858_v55 = vld [vmem:[#allocation86_spill] sm:$0xff] }
 0x82c   :  { %2581 = vmatpush2.bf16.msra.mxu0 %v6837_v58  ;;  %2622 = vmatpush2.bf16.msra.mxu1 %v6838_v47 }
 0x82d   :  { %2582 = vmatprep.subr.bf16.mxu0 %v6839_v24  ;;  %2623 = vmatprep.subr.bf16.mxu1 %v6840_v61 }
 0x830   :  { %2583 = vmatpush2.bf16.msra.mxu0 %v6841_v35  ;;  %2624 = vmatpush2.bf16.msra.mxu1 %v6842_v63 }
 0x831   :  { %2584 = vmatprep.subr.bf16.mxu0 %v6843_v38  ;;  %2625 = vmatprep.subr.bf16.mxu1 %v6844_v39 }
 0x834   :  { %2585 = vmatpush2.bf16.msra.mxu0 %v6845_v42  ;;  %2626 = vmatpush2.bf16.msra.mxu1 %v6846_v53 }
 0x835   :  { %2586 = vmatprep.subr.bf16.mxu0 %v6847_v15  ;;  %2627 = vmatprep.subr.bf16.mxu1 %v6848_v18 }
 0x838   :  { %2587 = vmatpush2.bf16.msra.mxu0 %v6849_v0  ;;  %2628 = vmatpush2.bf16.msra.mxu1 %v6850_v20 }
 0x89b   :  { %v2372_v60 = vpop.f32.mrf.mxu0  ;;  %v2413_v2 = vpop.f32.mrf.mxu1 }
 0x89c   :  { %v2373_v23 = vadd.f32 %v2372_v60, %v6851_v62  ;;  %v2414_v7 = vadd.f32 %v2413_v2, %v6854_v6 }
 0x89d   :  { %v2374_v16 = vpop.f32.mrf.mxu0  ;;  %v2415_v32 = vpop.f32.mrf.mxu1 }
 0x89e   :  { %v2947_v34 = vmul.f32 -1.442695, %v2373_v23  ;;  %v2375_v31 = vadd.f32 %v2374_v16, %v6852_v1  ;;  %v2416_v33 = vadd.f32 %v2415_v32, %v6853_v26 }
 0x89f   :  { %v2376_v45 = vpop.f32.mrf.mxu0  ;;  %v2417_v4 = vpop.f32.mrf.mxu1 }
 0x8a0   :  { %3379 = vpow2.f32 %v2947_v34  ;;  %v2948_v29 = vmul.f32 -1.442695, %v2375_v31  ;;  %v2949_v37 = vmul.f32 -1.442695, %v2416_v33  ;;  %v3163_v45 = vld [vmem:[%s6007_s6 + $0x38] sm:$0xff]   ;;  %v3650_v4 = vmov 0.0  }
 0x8a1   :  { %v2377_v36 = vpop.f32.mrf.mxu0  ;;  %v2418_v56 = vpop.f32.mrf.mxu1  ;;  %2974 = vmatprep.subr.bf16.mxu0 %v3650_v4  ;;  %v3168_v33 = vld [vmem:[%s6007_s6 + $0x10] sm:$0xff]  }
 0x8a2   :  { %3381 = vpow2.f32 %v2948_v29  ;;  %v3165_v29 = vld [vmem:[%s6007_s6 + $0x28] sm:$0xff]   ;;  %v3166_v36 = vld [vmem:[%s6007_s6 + $0x20] sm:$0xff]   ;;  %v3167_v56 = vld [vmem:[%s6007_s6 + $0x18] sm:$0xff]  }
 0x8a3   :  { %3383 = vpow2.f32 %v2949_v37  ;;  %v3169_v37 = vld [vmem:[%s6007_s6 + $0x8] sm:$0xff]  }
 0x8ad   :  { %v3380_v8 = vpop.eup %3379 }
 0x8ae   :  { %v2423_v5 = vadd.f32 1.0, %v3380_v8  ;;  %v3170_v8 = vld [vmem:[%s6007_s6] sm:$0xff]  }
 0x8af   :  { %v3382_v9 = vpop.eup %3381 }
 0x8b0   :  { %3385 = vrcp.f32 %v2423_v5  ;;  %v2429_v52 = vadd.f32 1.0, %v3382_v9  ;;  %v3384_v28 = vpop.eup %3383 }
 0x8b1   :  { %3387 = vtanh.f32 %v2414_v7  ;;  %v2436_v43 = vadd.f32 1.0, %v3384_v28 }
 0x8b2   :  { %3389 = vrcp.f32 %v2429_v52 }
 0x8bb   :  { %v2478_v50 = vpop.f32.mrf.mxu0  ;;  %v2519_v27 = vpop.f32.mrf.mxu1 }
 0x8bc   :  { %v2526_v57 = vadd.f32 %v2478_v50, %v6855_v25  ;;  %v2528_v58 = vadd.f32 %v2519_v27, %v6858_v55  ;;  %v2956_v55 = vld [vmem:[%s6008_s7] ss:$0 sm:$0xff] }
 0x8bd   :  { %v3386_v3 = vpop.eup %3385  ;;  %v2480_v13 = vpop.f32.mrf.mxu0 }
 0x8be   :  { %v2521_v11 = vpop.f32.mrf.mxu1  ;;  %v3388_v19 = vpop.eup %3387  ;;  %v2950_v21 = vmul.f32 -1.442695, %v2526_v57  ;;  %v2527_v14 = vadd.f32 %v2480_v13, %v6856_v12 }
 0x8bf   :  { %v3390_v46 = vpop.eup %3389  ;;  %v2482_v17 = vpop.f32.mrf.mxu0  ;;  %v2440_v30 = vmul.f32 %v3388_v19, %v3386_v3  ;;  %v2529_v51 = vadd.f32 %v2521_v11, %v6857_v49 }
 0x8c0   :  { %v2523_v10 = vpop.f32.mrf.mxu1  ;;  %v2439_v54 = vmul.f32 %v3390_v46, %v5845_v22  ;;  %3391 = vpow2.f32 %v2950_v21  ;;  %v2951_v40 = vmul.f32 -1.442695, %v2527_v14 }
 0x8c1   :  { %v2483_v41 = vpop.f32.mrf.mxu0  ;;  %v2952_v47 = vmul.f32 -1.442695, %v2529_v51 }
 0x8c2   :  { %v2524_v44 = vpop.f32.mrf.mxu1  ;;  %3393 = vpow2.f32 %v2951_v40  ;;  %v5957_v48 = vadd.f32 %v2440_v30, %v2439_v54 }
 0x8c3   :  { %3395 = vrcp.f32 %v2436_v43 }
 0x8c4   :  { %3397 = vtanh.f32 %v5957_v48 }
 0x8c5   :  { %3399 = vtanh.f32 %v2528_v58 }
 0x8c6   :  { %3401 = vpow2.f32 %v2952_v47 }
 0x8cd   :  { %v3392_v24 = vpop.eup %3391 }
 0x8ce   :  { %v2533_v61 = vadd.f32 1.0, %v3392_v24 }
 0x8cf   :  { %v3394_v35 = vpop.eup %3393 }
 0x8d0   :  { %v3396_v22 = vpop.eup %3395  ;;  %3403 = vrcp.f32 %v2533_v61  ;;  %v2539_v63 = vadd.f32 1.0, %v3394_v35 }
 0x8d1   :  { %v3398_v38 = vpop.eup %3397 }
 0x8d2   :  { %3405 = vrcp.f32 %v2539_v63  ;;  %v2443_v39 = vmul.f32 %v3398_v38, %v3396_v22  ;;  %v3400_v53 = vpop.eup %3399 }
 0x8d3   :  { %v3402_v15 = vpop.eup %3401 }
 0x8d4   :  { %v2555_v42 = vpack.c.bf16 %v2443_v39, %v2443_v39  ;;  %v2546_v60 = vadd.f32 1.0, %v3402_v15 }
 0x8d6   :  { %2588 = vmatprep.mubr.bf16.mxu0 %v2555_v42  ;;  %2629 = vmatprep.mubr.bf16.mxu1 %v2555_v42  ;;  %3407 = vrcp.f32 %v2546_v60 }
 0x8dd   :  { %v3404_v18 = vpop.eup %3403 }
 0x8de   :  { %v2550_v0 = vmul.f32 %v3404_v18, %v3400_v53 }
 0x8df   :  { %v3406_v20 = vpop.eup %3405 }
 0x8e0   :  { %v2549_v2 = vmul.f32 %v3406_v20, %v5851_v59  ;;  %v3164_v59 = vld [vmem:[%s6007_s6 + $0x30] sm:$0xff]  }
 0x8e2   :  { %v2551_v23 = vadd.f32 %v2550_v0, %v2549_v2 }
 0x8e3   :  { %v3408_v16 = vpop.eup %3407 }
 0x8e4   :  { %3409 = vtanh.f32 %v2551_v23 }
 0x8f1   :  { %v3410_v32 = vpop.eup %3409 }
 0x8f2   :  { %v2553_v34 = vmul.f32 %v3410_v32, %v3408_v16 }
 0x8f4   :  { %v2554_v31 = vpack.c.bf16 %v2553_v34, %v2553_v34 }
 0x8f6   :  { %2589 = vmatmul.mubr.bf16.vlgmr.msra.gmra.mxu0 %v2554_v31  ;;  %2630 = vmatmul.mubr.bf16.vlgmr.msra.gmra.mxu1 %v2554_v31 }
 0x8f7   :  { %2975 = vmatpush3.bf16.msra.mxu0 %v3163_v45  ;;  %2990 = vmatprep.mubr.msk.bf16.mxu0 %vm3651_vm3, %v3650_v4 }
 0x8f8   :  { %2976 = vmatprep.subr.bf16.mxu0 %v3650_v4 }
 0x8fb   :  { %2977 = vmatpush3.bf16.msra.mxu0 %v3164_v59 }
 0x8fc   :  { %2978 = vmatprep.subr.bf16.mxu0 %v3650_v4 }
 0x8ff   :  { %2979 = vmatpush3.bf16.msra.mxu0 %v3165_v29 }
 0x900   :  { %2980 = vmatprep.subr.bf16.mxu0 %v3650_v4 }
 0x903   :  { %2981 = vmatpush3.bf16.msra.mxu0 %v3166_v36 }
 0x904   :  { %2982 = vmatprep.subr.bf16.mxu0 %v3650_v4 }
 0x907   :  { %2983 = vmatpush3.bf16.msra.mxu0 %v3167_v56 }
 0x908   :  { %2984 = vmatprep.subr.bf16.mxu0 %v3650_v4 }
 0x90b   :  { %2985 = vmatpush3.bf16.msra.mxu0 %v3168_v33 }
 0x90c   :  { %2986 = vmatprep.subr.bf16.mxu0 %v3650_v4 }
 0x90f   :  { %2987 = vmatpush3.bf16.msra.mxu0 %v3169_v37 }
 0x910   :  { %2988 = vmatprep.subr.bf16.mxu0 %v3650_v4 }
 0x913   :  { %2989 = vmatpush3.bf16.msra.mxu0 %v3170_v8 }
 0x9b6   :  { %v2590_v7 = vpop.f32.mrf.mxu0  ;;  %v2631_v5 = vpop.f32.mrf.mxu1 }
 0x9b7   :  { %v2591_v9 = vadd.f32 %v2590_v7, %v6851_v62  ;;  %v2632_v14 = vadd.f32 %v2631_v5, %v6854_v6 }
 0x9b8   :  { %v2592_v52 = vpop.f32.mrf.mxu0  ;;  %v2633_v50 = vpop.f32.mrf.mxu1 }
 0x9b9   :  { %v2953_v27 = vmul.f32 -1.442695, %v2591_v9  ;;  %v2593_v28 = vadd.f32 %v2592_v52, %v6852_v1  ;;  %v2634_v19 = vadd.f32 %v2633_v50, %v6853_v26 }
 0x9ba   :  { %v2594_v25 = vpop.f32.mrf.mxu0  ;;  %v2635_v57 = vpop.f32.mrf.mxu1 }
 0x9bb   :  { %3411 = vpow2.f32 %v2953_v27  ;;  %v2954_v3 = vmul.f32 -1.442695, %v2593_v28  ;;  %v2955_v21 = vmul.f32 -1.442695, %v2634_v19 }
 0x9bc   :  { %v2595_v13 = vpop.f32.mrf.mxu0  ;;  %v2636_v11 = vpop.f32.mrf.mxu1 }
 0x9bd   :  { %3413 = vpow2.f32 %v2954_v3 }
 0x9be   :  { %3415 = vpow2.f32 %v2955_v21 }
 0x9c8   :  { %v3412_v12 = vpop.eup %3411 }
 0x9c9   :  { %v2641_v46 = vadd.f32 1.0, %v3412_v12 }
 0x9ca   :  { %v3414_v62 = vpop.eup %3413 }
 0x9cb   :  { %3417 = vrcp.f32 %v2641_v46  ;;  %v2647_v43 = vadd.f32 1.0, %v3414_v62  ;;  %v3416_v1 = vpop.eup %3415 }
 0x9cc   :  { %3419 = vtanh.f32 %v2632_v14  ;;  %v2654_v54 = vadd.f32 1.0, %v3416_v1 }
 0x9cd   :  { %3421 = vrcp.f32 %v2647_v43 }
 0x9ce   :  { %3423 = vrcp.f32 %v2654_v54 }
 0x9d8   :  { %v3418_v17 = vpop.eup %3417 }
 0x9d9   :  { %v3420_v10 = vpop.eup %3419 }
 0x9da   :  { %v3422_v30 = vpop.eup %3421  ;;  %v2658_v40 = vmul.f32 %v3420_v10, %v3418_v17 }
 0x9db   :  { %v2657_v41 = vmul.f32 %v3422_v30, %v5957_v48  ;;  %v3424_v44 = vpop.eup %3423 }
 0x9dd   :  { %v2659_v26 = vadd.f32 %v2658_v40, %v2657_v41 }
 0x9df   :  { %3425 = vtanh.f32 %v2659_v26 }
 0x9ec   :  { %v3426_v6 = vpop.eup %3425 }
 0x9ed   :  { %v2661_v49 = vmul.f32 %v3426_v6, %v3424_v44 }
 0x9ef   :  { %v2662_v51 = vpack.c.bf16 %v2661_v49, %v2661_v49 }
 0x9f1   :  { %2991 = vmatmul.mubr.bf16.vlgmr.msra.gmra.mxu0 %v2662_v51 }
 0xab1   :  { %v2768_v58 = vpop.f32.mrf.mxu0 }
 0xab2   :  { %v2769_v47 = vadd.f32 %v2956_v55, %v2768_v58 }
 0xab3   :  { %v2992_v24 = vpop.f32.mrf.mxu0 }
 0xab4   :  { %v2775_v61 = vsel %vm2774_vm4, %v2769_v47, -inf }
 0xab5   :  { %2776 = vmax.xlane.f32.xlu0 %v2775_v61  ;;  %v2771_v48 = vpop.f32.mrf.mxu0 }
 0xab7   :  { %v2993_v35 = vpop.f32.mrf.mxu0 }
 0xb3e   :  { %v2777_v22 = vpop.xlane.xlu0 %2776 }
 0xb3f   :  { %v2778_v63 = vsub.f32 %v2769_v47, %v2777_v22 }
 0xb41   :  { %v2779_v38 = vmul.f32 1.442695, %v2778_v63 }
 0xb43   :  { %3427 = vpow2.f32 %v2779_v38 }
 0xb50   :  { %v3428_v39 = vpop.eup %3427 }
 0xb51   :  { %v2781_v42 = vsel %vm2774_vm4, %v3428_v39, 0.0 }
 0xb52   :  { %2782 = vadd.xlane.f32.xlu0 %v2781_v42 }
 0xbdb   :  { %v2783_v53 = vpop.xlane.xlu0 %2782 }
 0xbdc   :  { %3429 = vrcp.f32 %v2783_v53 }
 0xbe9   :  { %v3430_v15 = vpop.eup %3429 }
 0xbea   :  { %v2785_v18 = vmul.f32 %v3430_v15, %v3428_v39 }
 0xbec   :  { %2786 = vst.msk [vmem:[%s6009_s8] sm:$0xff] %vm2774_vm4, %v2785_v18 }
 0xbed   :  { %2791 = vsyncpa [#allocation3], 1 }

</bundles_post_ra>
